<compile_context>
chip_gen: v5e
topology: v5e:2x2
jax: 0.10.0
libtpu: 0.0.40
codegen_flags: <defaults>
</compile_context>

<pallas_src>
import numpy as np
import jax
import jax.numpy as jnp
from jax import lax
from jax.experimental import pallas as pl
from jax.experimental.pallas import tpu as pltpu

# ----------------------------- configuration --------------------------------
BATCH = 2          # batch size
SEQ = 16           # wordpiece sequence length
WORDS = 8          # number of first-token (word-level) positions per sequence
HIDDEN = 32        # sim_dim
NUM_LABEL = 6      # num_label (CRF tags)
VOCAB = 64


# ----------------------------- fused Pallas kernel ---------------------------
def fused_head_crf_kernel(labels_ref, crf_s_ref, x_ref, w_ref, b_ref,
                          crf_v_ref, trans_t_ref,
                          em_ref, nll_ref, path_ref):
    """Fused ReLU -> Linear -> softmax head + torchcrf CRF (NLL + Viterbi).

    labels_ref  : SMEM [B, W]   int32  gold tags
    crf_s_ref   : SMEM [L+2, L] f32    rows 0..L-1 = transitions, L = start, L+1 = end
    x_ref       : VMEM [B*W, H] f32    first-token embeddings
    w_ref       : VMEM [H, L]   f32    linear weight, pre-transposed
    b_ref       : VMEM [1, L]   f32    linear bias
    crf_v_ref   : VMEM [L+2, L] f32    same packed CRF params (vector use)
    trans_t_ref : VMEM [L, L]   f32    transitions transposed
    em_ref      : VMEM [B*W, L] f32    out: CRF emissions (softmax probs)
    nll_ref     : VMEM [B, 1]   f32    out: per-sequence negative log-likelihood
    path_ref    : VMEM [B, W]   int32  out: Viterbi decode
    """
    B, W = path_ref.shape
    L = em_ref.shape[1]

    # ---------------- head: ReLU -> x @ W^T + b -> softmax (one MXU dot) ------
    x = jnp.maximum(x_ref[...], 0.0)
    logits = jnp.dot(x, w_ref[...], preferred_element_type=jnp.float32) + b_ref[...]
    mx = jnp.max(logits, axis=-1, keepdims=True)
    ex = jnp.exp(logits - mx)
    em_all = ex / jnp.sum(ex, axis=-1, keepdims=True)                 # [B*W, L]
    em_ref[...] = em_all

    # ---------------- hoisted constants / params ------------------------------
    crf = crf_v_ref[...]                                              # [L+2, L]
    trans = crf[0:L, :]                                               # [L, L]
    start_row = crf[L:L + 1, :]                                       # [1, L]
    end_row = crf[L + 1:L + 2, :]                                     # [1, L]
    trans_t = trans_t_ref[...]                                        # [L, L]

    eye = (lax.broadcasted_iota(jnp.int32, (L, L), 0) ==
           lax.broadcasted_iota(jnp.int32, (L, L), 1))
    lane_iota_LL = lax.broadcasted_iota(jnp.int32, (L, L), 1)
    sub_iota_LL = lax.broadcasted_iota(jnp.int32, (L, L), 0)
    lane_iota_1L = lax.broadcasted_iota(jnp.int32, (1, L), 1)
    sub_iota_L1 = lax.broadcasted_iota(jnp.int32, (L, 1), 0)
    w_iota_1W = lax.broadcasted_iota(jnp.int32, (1, W), 1)

    def to_col(v_row):                                                # [1,L] -> [L,1]
        vb = jnp.broadcast_to(v_row, (L, L))
        return jnp.sum(jnp.where(eye, vb, 0.0), axis=1, keepdims=True)

    end_col = to_col(end_row)

    for b in range(B):                                                # static unroll
        em = em_all[b * W:(b + 1) * W, :]                             # [W, L]
        em_rows = [em[t:t + 1, :] for t in range(W)]                  # static slices
        # column-form emissions only needed on odd (row->col) steps; these do not
        # depend on the recursion carry, so they sit off the serial critical path.
        em_cols = {t: to_col(em_rows[t]) for t in range(1, W) if t % 2 == 1}

        # -------- numerator: gold-path score (scalar gathers from SMEM) --------
        lab = [labels_ref[b, t] for t in range(W)]                    # int32 scalars
        gold = jnp.zeros((1, 1), jnp.float32)
        gold = gold + crf_s_ref[L, lab[0]]                            # start[tags[0]]
        for t in range(1, W):
            gold = gold + crf_s_ref[lab[t - 1], lab[t]]               # trans[y_{t-1}, y_t]
        gold = gold + crf_s_ref[L + 1, lab[W - 1]]                    # end[tags[-1]]
        acc = jnp.zeros((1, L), jnp.float32)
        for t in range(W):                                            # emission term
            acc = acc + jnp.where(lane_iota_1L == lab[t], em_rows[t], 0.0)
        numerator = gold + jnp.sum(acc, axis=1, keepdims=True)        # [1, 1]

        # -------- denominator: forward algorithm, alternating layout -----------
        # odd t  : carry is a row  [1,L] over lanes   -> reduce over lanes -> col
        # even t : carry is a col  [L,1] over sublanes-> reduce over sublanes -> row
        alpha = start_row + em_rows[0]                                # row [1, L]
        for t in range(1, W):
            if t % 2 == 1:                                            # row -> col
                s = alpha + trans_t                                   # s[j,i]=a[i]+T[i,j]
                m = jnp.max(s, axis=1, keepdims=True)
                alpha = m + jnp.log(jnp.sum(jnp.exp(s - m), axis=1, keepdims=True))
                alpha = alpha + em_cols[t]                            # [L, 1]
            else:                                                     # col -> row
                s = alpha + trans                                     # s[i,j]=a[i]+T[i,j]
                m = jnp.max(s, axis=0, keepdims=True)
                alpha = m + jnp.log(jnp.sum(jnp.exp(s - m), axis=0, keepdims=True))
                alpha = alpha + em_rows[t]                            # [1, L]
        if (W - 1) % 2 == 1:                                          # final is a column
            a_end = alpha + end_col
            m = jnp.max(a_end, axis=0, keepdims=True)
            den = m + jnp.log(jnp.sum(jnp.exp(a_end - m), axis=0, keepdims=True))
        else:
            a_end = alpha + end_row
            m = jnp.max(a_end, axis=1, keepdims=True)
            den = m + jnp.log(jnp.sum(jnp.exp(a_end - m), axis=1, keepdims=True))
        nll_ref[b:b + 1, 0:1] = den - numerator                       # -log p(y|x)

        # -------- Viterbi decode (same alternating layout, backptrs in regs) ---
        score = start_row + em_rows[0]                                # row [1, L]
        hist = {}
        for t in range(1, W):
            if t % 2 == 1:                                            # row -> col
                s = score + trans_t + em_cols[t]                      # s[j,i]
                maxv = jnp.max(s, axis=1, keepdims=True)              # [L, 1]
                bp = jnp.min(jnp.where(s == maxv, lane_iota_LL, L),
                             axis=1, keepdims=True)                   # [L, 1] int32
                score = maxv
                hist[t] = (True, bp)
            else:                                                     # col -> row
                s = score + trans + em_rows[t]                        # s[i,j]
                maxv = jnp.max(s, axis=0, keepdims=True)              # [1, L]
                bp = jnp.min(jnp.where(s == maxv, sub_iota_LL, L),
                             axis=0, keepdims=True)                   # [1, L] int32
                score = maxv
                hist[t] = (False, bp)
        if (W - 1) % 2 == 1:                                          # final column
            sc = score + end_col
            smax = jnp.max(sc, axis=0, keepdims=True)
            best = jnp.min(jnp.where(sc == smax, sub_iota_L1, L),
                           axis=0, keepdims=True)                     # [1, 1]
        else:
            sc = score + end_row
            smax = jnp.max(sc, axis=1, keepdims=True)
            best = jnp.min(jnp.where(sc == smax, lane_iota_1L, L),
                           axis=1, keepdims=True)

        path_row = jnp.where(w_iota_1W == (W - 1), best,
                             jnp.zeros((1, W), jnp.int32))
        for t in range(W - 2, -1, -1):                                # backtrace
            is_col, bp = hist[t + 1]
            if is_col:                                                # bp [L,1] over sublanes
                best = jnp.sum(jnp.where(sub_iota_L1 == best, bp, 0),
                               axis=0, keepdims=True)
            else:                                                     # bp [1,L] over lanes
                best = jnp.sum(jnp.where(lane_iota_1L == best, bp, 0),
                               axis=1, keepdims=True)
            path_row = jnp.where(w_iota_1W == t, best, path_row)
        path_ref[b:b + 1, :] = path_row


def fused_forward(labels, crf_pack, x, w_t, b_row, trans_t):
    """Single pallas_call: emissions, per-sequence NLL, Viterbi paths."""
    B, W = labels.shape
    L = crf_pack.shape[1]
    N = x.shape[0]
    return pl.pallas_call(
        fused_head_crf_kernel,
        out_shape=(jax.ShapeDtypeStruct((N, L), jnp.float32),
                   jax.ShapeDtypeStruct((B, 1), jnp.float32),
                   jax.ShapeDtypeStruct((B, W), jnp.int32)),
        in_specs=[pl.BlockSpec(memory_space=pltpu.MemorySpace.SMEM),   # labels
                  pl.BlockSpec(memory_space=pltpu.MemorySpace.SMEM),   # crf params (scalars)
                  pl.BlockSpec(memory_space=pltpu.MemorySpace.VMEM),   # x
                  pl.BlockSpec(memory_space=pltpu.MemorySpace.VMEM),   # w_t
                  pl.BlockSpec(memory_space=pltpu.MemorySpace.VMEM),   # bias row
                  pl.BlockSpec(memory_space=pltpu.MemorySpace.VMEM),   # crf params (vectors)
                  pl.BlockSpec(memory_space=pltpu.MemorySpace.VMEM)],  # trans.T
        out_specs=(pl.BlockSpec(memory_space=pltpu.MemorySpace.VMEM),
                   pl.BlockSpec(memory_space=pltpu.MemorySpace.VMEM),
                   pl.BlockSpec(memory_space=pltpu.MemorySpace.VMEM)),
    )(labels, crf_pack, x, w_t, b_row, crf_pack, trans_t)


# ----------------------------- model glue (plain JAX / numpy) ----------------
def get_first_token_index(word_ids):
    """Exact port of BaselineLllama.get_first_token_index (incl. [-1] wraparound)."""
    result = []
    batch_size, sequence_len = word_ids.shape
    for batch_index in range(batch_size):
        unit = []
        for token_index in range(sequence_len):
            if word_ids[batch_index][token_index] < 0:
                continue
            if word_ids[batch_index][token_index] > word_ids[batch_index][token_index - 1]:
                unit.append(token_index)
        result.append(unit)
    return result


def make_params(key):
    k_emb, k_w, k_b, k_t, k_s, k_e = jax.random.split(key, 6)
    w_lin = (jax.random.normal(k_w, (NUM_LABEL, HIDDEN), dtype=jnp.float32)
             / jnp.sqrt(jnp.float32(HIDDEN)))
    b_lin = 0.01 * jax.random.normal(k_b, (NUM_LABEL,), dtype=jnp.float32)
    trans = jax.random.uniform(k_t, (NUM_LABEL, NUM_LABEL), minval=-0.1, maxval=0.1)
    start = jax.random.uniform(k_s, (NUM_LABEL,), minval=-0.1, maxval=0.1)
    end = jax.random.uniform(k_e, (NUM_LABEL,), minval=-0.1, maxval=0.1)
    return {
        # backbone stand-in (fp16, like the torch_dtype=float16 LLaMA backbone)
        "emb_table": jax.random.normal(k_emb, (VOCAB, HIDDEN), dtype=jnp.float32
                                       ).astype(jnp.float16),
        # torch.nn.Linear(sim_dim, num_label): weight [L, H], bias [L]
        "w_lin": w_lin, "b_lin": b_lin,
        # torchcrf.CRF params: uniform(-0.1, 0.1)
        "trans": trans, "start": start, "end": end,
        # ---- hoisted / pre-packed inference-time layouts (computed once) ----
        "w_lin_t": w_lin.T,                                    # [H, L]
        "b_row": b_lin.reshape(1, NUM_LABEL),                  # [1, L]
        "crf_pack": jnp.concatenate(                           # [L+2, L]
            [trans, start.reshape(1, NUM_LABEL), end.reshape(1, NUM_LABEL)], axis=0),
        "trans_t": trans.T,                                    # [L, L]
    }


def baseline_llama_forward(params, data, goal="test"):
    """forward_sentence with no_pad=False, general=False, goal != 'train' (no dropout)."""
    # backbone stand-in: last_hidden_state = emb_table[input_ids]  (fp16 -> fp32 cast)
    hidden = params["emb_table"][data["input_ids"]].astype(jnp.float32)   # [B, S, H]

    first_token_index = get_first_token_index(data["word_ids"])

    labels, first_emb = [], []
    for b in range(BATCH):
        lab_b = data["label"][b]
        lab_b = lab_b[lab_b != -1]
        assert len(lab_b) == len(first_token_index[b])
        labels.append(lab_b)
        first_emb.append(hidden[b][jnp.asarray(first_token_index[b], dtype=jnp.int32)])
    labels = np.stack(labels).astype(np.int32)                            # [B, W]
    x = jnp.stack(first_emb).reshape(BATCH * WORDS, HIDDEN)               # [B*W, H]

    # ---- single fused Pallas kernel: head + CRF nll + Viterbi decode ----
    em, nll, path = fused_forward(jnp.asarray(labels), params["crf_pack"], x,
                                  params["w_lin_t"], params["b_row"],
                                  params["trans_t"])
    emissions = em.reshape(BATCH, WORDS, NUM_LABEL)

    return {"path": [list(map(int, p)) for p in np.asarray(path)],
            "loss": jnp.sum(nll),
            "emissions": emissions,
            "labels": labels}


# ----------------------------- numpy reference (for verification) ------------
def ref_crf_single(em, tags, trans, start, end):
    W, L = em.shape
    num = start[tags[0]] + em[0, tags[0]]
    for t in range(1, W):
        num += trans[tags[t - 1], tags[t]] + em[t, tags[t]]
    num += end[tags[-1]]
    alpha = start + em[0]
    for t in range(1, W):
        mat = alpha[:, None] + trans + em[t][None, :]
        m = mat.max(axis=0)
        alpha = m + np.log(np.exp(mat - m[None, :]).sum(axis=0))
    alpha = alpha + end
    m = alpha.max()
    den = m + np.log(np.exp(alpha - m).sum())
    score = start + em[0]
    hist = []
    for t in range(1, W):
        mat = score[:, None] + trans + em[t][None, :]
        hist.append(mat.argmax(axis=0))
        score = mat.max(axis=0)
    score = score + end
    last = int(score.argmax())
    path = [last]
    for h in reversed(hist):
        last = int(h[path[-1]])
        path.append(last)
    path.reverse()
    return den - num, path


# ----------------------------- main ------------------------------------------
if __name__ == "__main__":
    key = jax.random.PRNGKey(0)
    k_par, k_ids, k_lab = jax.random.split(key, 3)
    params = make_params(k_par)

    # deterministic synthetic batch (each sequence has exactly WORDS first tokens)
    word_ids = np.array([[-1, 0, 0, 1, 1, 2, 3, 3, 4, 5, 5, 6, 7, 7, -1, -1],
                         [-1, 0, 1, 1, 2, 2, 2, 3, 4, 4, 5, 6, 7, 7, -1, -1]],
                        dtype=np.int32)
    input_ids = jax.random.randint(k_ids, (BATCH, SEQ), 0, VOCAB)
    attention_mask = jnp.ones((BATCH, SEQ), jnp.int32)
    labels_valid = np.asarray(jax.random.randint(k_lab, (BATCH, WORDS), 0, NUM_LABEL),
                              dtype=np.int32)
    labels_padded = np.concatenate(
        [labels_valid, -np.ones((BATCH, 2), dtype=np.int32)], axis=1)     # -1 padding

    data = {"input_ids": input_ids, "attention_mask": attention_mask,
            "word_ids": word_ids, "label": labels_padded,
            "label_general": labels_padded}

    out = baseline_llama_forward(params, data, goal="test")
    loss = jax.block_until_ready(out["loss"])
    em_kernel = np.asarray(jax.block_until_ready(out["emissions"]))

    # ---- verification against a pure numpy reference ----
    hidden_np = np.asarray(params["emb_table"])[np.asarray(input_ids)].astype(np.float32)
    fti = get_first_token_index(word_ids)
    first_emb_np = np.stack([hidden_np[b][fti[b]] for b in range(BATCH)])
    h = np.maximum(first_emb_np, 0.0)
    logits = h @ np.asarray(params["w_lin"]).T + np.asarray(params["b_lin"])
    e = np.exp(logits - logits.max(-1, keepdims=True))
    em_ref = e / e.sum(-1, keepdims=True)
    np.testing.assert_allclose(em_kernel, em_ref, rtol=2e-2, atol=2e-2)

    trans_np = np.asarray(params["trans"])
    start_np = np.asarray(params["start"])
    end_np = np.asarray(params["end"])
    ref_losses, ref_paths = [], []
    for b in range(BATCH):
        l, p = ref_crf_single(em_kernel[b], out["labels"][b], trans_np, start_np, end_np)
        ref_losses.append(l)
        ref_paths.append(p)
    np.testing.assert_allclose(float(loss), float(np.sum(ref_losses)),
                               rtol=2e-3, atol=2e-2)
    assert out["path"] == ref_paths, (out["path"], ref_paths)

    print("KERNEL_OK")
</pallas_src>

<mosaic_0001>
module attributes {stable_mosaic.version = 11 : i64} {
  func.func @fused_head_crf_kernel(%arg0: memref<2x8xi32, #tpu.memory_space<smem>>, %arg1: memref<8x6xf32, #tpu.memory_space<smem>>, %arg2: memref<16x32xf32, #tpu.memory_space<vmem>>, %arg3: memref<32x6xf32, #tpu.memory_space<vmem>>, %arg4: memref<1x6xf32, #tpu.memory_space<vmem>>, %arg5: memref<8x6xf32, #tpu.memory_space<vmem>>, %arg6: memref<6x6xf32, #tpu.memory_space<vmem>>, %arg7: memref<16x6xf32, #tpu.memory_space<vmem>>, %arg8: memref<2x1xf32, #tpu.memory_space<vmem>>, %arg9: memref<2x8xi32, #tpu.memory_space<vmem>>) attributes {dimension_semantics = [], scalar_prefetch = 0 : i64, scratch_operands = 0 : i64, tpu.core_type = #tpu.core_type<tc>} {
    %c0 = arith.constant 0 : index
    %c0_0 = arith.constant 0 : index
    %0 = vector.load %arg2[%c0, %c0_0] : memref<16x32xf32, #tpu.memory_space<vmem>>, vector<16x32xf32>
    %cst = arith.constant 0.000000e+00 : f32
    %1 = vector.broadcast %cst : f32 to vector<16x32xf32>
    %2 = arith.maximumf %0, %1 : vector<16x32xf32>
    %c0_1 = arith.constant 0 : index
    %c0_2 = arith.constant 0 : index
    %3 = vector.load %arg3[%c0_1, %c0_2] : memref<32x6xf32, #tpu.memory_space<vmem>>, vector<32x6xf32>
    %cst_3 = arith.constant dense<0.000000e+00> : vector<16x6xf32>
    %4 = tpu.matmul %2, %3, %cst_3 {dimension_numbers = #tpu.dot_dimension_numbers<[1], [0], [0], [1], [0, 0, 1, 1], [], []>} : vector<16x32xf32>, vector<32x6xf32>, vector<16x6xf32> -> vector<16x6xf32>
    %c0_4 = arith.constant 0 : index
    %c0_5 = arith.constant 0 : index
    %5 = vector.load %arg4[%c0_4, %c0_5] : memref<1x6xf32, #tpu.memory_space<vmem>>, vector<1x6xf32>
    %6 = vector.broadcast %5 : vector<1x6xf32> to vector<16x6xf32>
    %7 = arith.addf %4, %6 : vector<16x6xf32>
    %cst_6 = arith.constant dense<0xFF800000> : vector<16xf32>
    %8 = vector.multi_reduction <maximumf>, %7, %cst_6 [1] : vector<16x6xf32> to vector<16xf32>
    %9 = vector.shape_cast %8 : vector<16xf32> to vector<16x1xf32>
    %10 = vector.broadcast %9 : vector<16x1xf32> to vector<16x6xf32>
    %11 = arith.subf %7, %10 : vector<16x6xf32>
    %12 = math.exp %11 : vector<16x6xf32>
    %cst_7 = arith.constant dense<0.000000e+00> : vector<16xf32>
    %13 = vector.multi_reduction <add>, %12, %cst_7 [1] : vector<16x6xf32> to vector<16xf32>
    %14 = vector.shape_cast %13 : vector<16xf32> to vector<16x1xf32>
    %15 = vector.broadcast %14 : vector<16x1xf32> to vector<16x6xf32>
    %16 = arith.divf %12, %15 : vector<16x6xf32>
    %c0_8 = arith.constant 0 : index
    %c0_9 = arith.constant 0 : index
    %17 = vector.load %arg7[%c0_8, %c0_9] : memref<16x6xf32, #tpu.memory_space<vmem>>, vector<16x6xf32>
    tpu.vector_store %arg7[%c0_8, %c0_9], %16 {strides = array<i32>} : memref<16x6xf32, #tpu.memory_space<vmem>>, vector<16x6xf32>,
    %c0_10 = arith.constant 0 : index
    %c0_11 = arith.constant 0 : index
    %18 = vector.load %arg5[%c0_10, %c0_11] : memref<8x6xf32, #tpu.memory_space<vmem>>, vector<8x6xf32>
    %19 = vector.extract_strided_slice %18 {offsets = [0, 0], sizes = [6, 6], strides = [1, 1]} : vector<8x6xf32> to vector<6x6xf32>
    %20 = vector.extract_strided_slice %18 {offsets = [6, 0], sizes = [1, 6], strides = [1, 1]} : vector<8x6xf32> to vector<1x6xf32>
    %21 = vector.extract_strided_slice %18 {offsets = [7, 0], sizes = [1, 6], strides = [1, 1]} : vector<8x6xf32> to vector<1x6xf32>
    %c0_12 = arith.constant 0 : index
    %c0_13 = arith.constant 0 : index
    %22 = vector.load %arg6[%c0_12, %c0_13] : memref<6x6xf32, #tpu.memory_space<vmem>>, vector<6x6xf32>
    %23 = tpu.iota {dimensions = array<i32: 0>} : vector<6x6xi32>
    %24 = tpu.iota {dimensions = array<i32: 1>} : vector<6x6xi32>
    %25 = arith.cmpi eq, %23, %24 : vector<6x6xi32>
    %26 = tpu.iota {dimensions = array<i32: 1>} : vector<6x6xi32>
    %27 = tpu.iota {dimensions = array<i32: 0>} : vector<6x6xi32>
    %28 = tpu.iota {dimensions = array<i32: 1>} : vector<1x6xi32>
    %29 = tpu.iota {dimensions = array<i32: 0>} : vector<6x1xi32>
    %30 = tpu.iota {dimensions = array<i32: 1>} : vector<1x8xi32>
    %31 = vector.shape_cast %21 : vector<1x6xf32> to vector<1x6xf32>
    %32 = vector.broadcast %31 : vector<1x6xf32> to vector<6x6xf32>
    %cst_14 = arith.constant 0.000000e+00 : f32
    %33 = vector.broadcast %cst_14 : f32 to vector<6x6xf32>
    %34 = arith.select %25, %32, %33 : vector<6x6xi1>, vector<6x6xf32>
    %cst_15 = arith.constant dense<0.000000e+00> : vector<6xf32>
    %35 = vector.multi_reduction <add>, %34, %cst_15 [1] : vector<6x6xf32> to vector<6xf32>
    %36 = vector.shape_cast %35 : vector<6xf32> to vector<6x1xf32>
    %37 = vector.extract_strided_slice %16 {offsets = [0, 0], sizes = [8, 6], strides = [1, 1]} : vector<16x6xf32> to vector<8x6xf32>
    %38 = vector.extract_strided_slice %37 {offsets = [0, 0], sizes = [1, 6], strides = [1, 1]} : vector<8x6xf32> to vector<1x6xf32>
    %39 = vector.extract_strided_slice %37 {offsets = [1, 0], sizes = [1, 6], strides = [1, 1]} : vector<8x6xf32> to vector<1x6xf32>
    %40 = vector.extract_strided_slice %37 {offsets = [2, 0], sizes = [1, 6], strides = [1, 1]} : vector<8x6xf32> to vector<1x6xf32>
    %41 = vector.extract_strided_slice %37 {offsets = [3, 0], sizes = [1, 6], strides = [1, 1]} : vector<8x6xf32> to vector<1x6xf32>
    %42 = vector.extract_strided_slice %37 {offsets = [4, 0], sizes = [1, 6], strides = [1, 1]} : vector<8x6xf32> to vector<1x6xf32>
    %43 = vector.extract_strided_slice %37 {offsets = [5, 0], sizes = [1, 6], strides = [1, 1]} : vector<8x6xf32> to vector<1x6xf32>
    %44 = vector.extract_strided_slice %37 {offsets = [6, 0], sizes = [1, 6], strides = [1, 1]} : vector<8x6xf32> to vector<1x6xf32>
    %45 = vector.extract_strided_slice %37 {offsets = [7, 0], sizes = [1, 6], strides = [1, 1]} : vector<8x6xf32> to vector<1x6xf32>
    %46 = vector.shape_cast %39 : vector<1x6xf32> to vector<1x6xf32>
    %47 = vector.broadcast %46 : vector<1x6xf32> to vector<6x6xf32>
    %cst_16 = arith.constant 0.000000e+00 : f32
    %48 = vector.broadcast %cst_16 : f32 to vector<6x6xf32>
    %49 = arith.select %25, %47, %48 : vector<6x6xi1>, vector<6x6xf32>
    %cst_17 = arith.constant dense<0.000000e+00> : vector<6xf32>
    %50 = vector.multi_reduction <add>, %49, %cst_17 [1] : vector<6x6xf32> to vector<6xf32>
    %51 = vector.shape_cast %50 : vector<6xf32> to vector<6x1xf32>
    %52 = vector.shape_cast %41 : vector<1x6xf32> to vector<1x6xf32>
    %53 = vector.broadcast %52 : vector<1x6xf32> to vector<6x6xf32>
    %cst_18 = arith.constant 0.000000e+00 : f32
    %54 = vector.broadcast %cst_18 : f32 to vector<6x6xf32>
    %55 = arith.select %25, %53, %54 : vector<6x6xi1>, vector<6x6xf32>
    %cst_19 = arith.constant dense<0.000000e+00> : vector<6xf32>
    %56 = vector.multi_reduction <add>, %55, %cst_19 [1] : vector<6x6xf32> to vector<6xf32>
    %57 = vector.shape_cast %56 : vector<6xf32> to vector<6x1xf32>
    %58 = vector.shape_cast %43 : vector<1x6xf32> to vector<1x6xf32>
    %59 = vector.broadcast %58 : vector<1x6xf32> to vector<6x6xf32>
    %cst_20 = arith.constant 0.000000e+00 : f32
    %60 = vector.broadcast %cst_20 : f32 to vector<6x6xf32>
    %61 = arith.select %25, %59, %60 : vector<6x6xi1>, vector<6x6xf32>
    %cst_21 = arith.constant dense<0.000000e+00> : vector<6xf32>
    %62 = vector.multi_reduction <add>, %61, %cst_21 [1] : vector<6x6xf32> to vector<6xf32>
    %63 = vector.shape_cast %62 : vector<6xf32> to vector<6x1xf32>
    %64 = vector.shape_cast %45 : vector<1x6xf32> to vector<1x6xf32>
    %65 = vector.broadcast %64 : vector<1x6xf32> to vector<6x6xf32>
    %cst_22 = arith.constant 0.000000e+00 : f32
    %66 = vector.broadcast %cst_22 : f32 to vector<6x6xf32>
    %67 = arith.select %25, %65, %66 : vector<6x6xi1>, vector<6x6xf32>
    %cst_23 = arith.constant dense<0.000000e+00> : vector<6xf32>
    %68 = vector.multi_reduction <add>, %67, %cst_23 [1] : vector<6x6xf32> to vector<6xf32>
    %69 = vector.shape_cast %68 : vector<6xf32> to vector<6x1xf32>
    %c0_24 = arith.constant 0 : index
    %c0_25 = arith.constant 0 : index
    %70 = memref.load %arg0[%c0_24, %c0_25] : memref<2x8xi32, #tpu.memory_space<smem>>
    %c0_26 = arith.constant 0 : index
    %c1 = arith.constant 1 : index
    %71 = memref.load %arg0[%c0_26, %c1] : memref<2x8xi32, #tpu.memory_space<smem>>
    %c0_27 = arith.constant 0 : index
    %c2 = arith.constant 2 : index
    %72 = memref.load %arg0[%c0_27, %c2] : memref<2x8xi32, #tpu.memory_space<smem>>
    %c0_28 = arith.constant 0 : index
    %c3 = arith.constant 3 : index
    %73 = memref.load %arg0[%c0_28, %c3] : memref<2x8xi32, #tpu.memory_space<smem>>
    %c0_29 = arith.constant 0 : index
    %c4 = arith.constant 4 : index
    %74 = memref.load %arg0[%c0_29, %c4] : memref<2x8xi32, #tpu.memory_space<smem>>
    %c0_30 = arith.constant 0 : index
    %c5 = arith.constant 5 : index
    %75 = memref.load %arg0[%c0_30, %c5] : memref<2x8xi32, #tpu.memory_space<smem>>
    %c0_31 = arith.constant 0 : index
    %c6 = arith.constant 6 : index
    %76 = memref.load %arg0[%c0_31, %c6] : memref<2x8xi32, #tpu.memory_space<smem>>
    %c0_32 = arith.constant 0 : index
    %c7 = arith.constant 7 : index
    %77 = memref.load %arg0[%c0_32, %c7] : memref<2x8xi32, #tpu.memory_space<smem>>
    %cst_33 = arith.constant 0.000000e+00 : f32
    %78 = vector.broadcast %cst_33 : f32 to vector<1x1xf32>
    %c6_34 = arith.constant 6 : index
    %79 = arith.index_cast %70 : i32 to index
    %80 = memref.load %arg1[%c6_34, %79] : memref<8x6xf32, #tpu.memory_space<smem>>
    %81 = vector.broadcast %80 : f32 to vector<1x1xf32>
    %82 = arith.addf %78, %81 : vector<1x1xf32>
    %83 = arith.index_cast %70 : i32 to index
    %84 = arith.index_cast %71 : i32 to index
    %85 = memref.load %arg1[%83, %84] : memref<8x6xf32, #tpu.memory_space<smem>>
    %86 = vector.broadcast %85 : f32 to vector<1x1xf32>
    %87 = arith.addf %82, %86 : vector<1x1xf32>
    %88 = arith.index_cast %71 : i32 to index
    %89 = arith.index_cast %72 : i32 to index
    %90 = memref.load %arg1[%88, %89] : memref<8x6xf32, #tpu.memory_space<smem>>
    %91 = vector.broadcast %90 : f32 to vector<1x1xf32>
    %92 = arith.addf %87, %91 : vector<1x1xf32>
    %93 = arith.index_cast %72 : i32 to index
    %94 = arith.index_cast %73 : i32 to index
    %95 = memref.load %arg1[%93, %94] : memref<8x6xf32, #tpu.memory_space<smem>>
    %96 = vector.broadcast %95 : f32 to vector<1x1xf32>
    %97 = arith.addf %92, %96 : vector<1x1xf32>
    %98 = arith.index_cast %73 : i32 to index
    %99 = arith.index_cast %74 : i32 to index
    %100 = memref.load %arg1[%98, %99] : memref<8x6xf32, #tpu.memory_space<smem>>
    %101 = vector.broadcast %100 : f32 to vector<1x1xf32>
    %102 = arith.addf %97, %101 : vector<1x1xf32>
    %103 = arith.index_cast %74 : i32 to index
    %104 = arith.index_cast %75 : i32 to index
    %105 = memref.load %arg1[%103, %104] : memref<8x6xf32, #tpu.memory_space<smem>>
    %106 = vector.broadcast %105 : f32 to vector<1x1xf32>
    %107 = arith.addf %102, %106 : vector<1x1xf32>
    %108 = arith.index_cast %75 : i32 to index
    %109 = arith.index_cast %76 : i32 to index
    %110 = memref.load %arg1[%108, %109] : memref<8x6xf32, #tpu.memory_space<smem>>
    %111 = vector.broadcast %110 : f32 to vector<1x1xf32>
    %112 = arith.addf %107, %111 : vector<1x1xf32>
    %113 = arith.index_cast %76 : i32 to index
    %114 = arith.index_cast %77 : i32 to index
    %115 = memref.load %arg1[%113, %114] : memref<8x6xf32, #tpu.memory_space<smem>>
    %116 = vector.broadcast %115 : f32 to vector<1x1xf32>
    %117 = arith.addf %112, %116 : vector<1x1xf32>
    %c7_35 = arith.constant 7 : index
    %118 = arith.index_cast %77 : i32 to index
    %119 = memref.load %arg1[%c7_35, %118] : memref<8x6xf32, #tpu.memory_space<smem>>
    %120 = vector.broadcast %119 : f32 to vector<1x1xf32>
    %121 = arith.addf %117, %120 : vector<1x1xf32>
    %cst_36 = arith.constant 0.000000e+00 : f32
    %122 = vector.broadcast %cst_36 : f32 to vector<1x6xf32>
    %123 = vector.broadcast %70 : i32 to vector<1x6xi32>
    %124 = arith.cmpi eq, %28, %123 : vector<1x6xi32>
    %cst_37 = arith.constant 0.000000e+00 : f32
    %125 = vector.broadcast %cst_37 : f32 to vector<1x6xf32>
    %126 = arith.select %124, %38, %125 : vector<1x6xi1>, vector<1x6xf32>
    %127 = arith.addf %122, %126 : vector<1x6xf32>
    %128 = vector.broadcast %71 : i32 to vector<1x6xi32>
    %129 = arith.cmpi eq, %28, %128 : vector<1x6xi32>
    %cst_38 = arith.constant 0.000000e+00 : f32
    %130 = vector.broadcast %cst_38 : f32 to vector<1x6xf32>
    %131 = arith.select %129, %39, %130 : vector<1x6xi1>, vector<1x6xf32>
    %132 = arith.addf %127, %131 : vector<1x6xf32>
    %133 = vector.broadcast %72 : i32 to vector<1x6xi32>
    %134 = arith.cmpi eq, %28, %133 : vector<1x6xi32>
    %cst_39 = arith.constant 0.000000e+00 : f32
    %135 = vector.broadcast %cst_39 : f32 to vector<1x6xf32>
    %136 = arith.select %134, %40, %135 : vector<1x6xi1>, vector<1x6xf32>
    %137 = arith.addf %132, %136 : vector<1x6xf32>
    %138 = vector.broadcast %73 : i32 to vector<1x6xi32>
    %139 = arith.cmpi eq, %28, %138 : vector<1x6xi32>
    %cst_40 = arith.constant 0.000000e+00 : f32
    %140 = vector.broadcast %cst_40 : f32 to vector<1x6xf32>
    %141 = arith.select %139, %41, %140 : vector<1x6xi1>, vector<1x6xf32>
    %142 = arith.addf %137, %141 : vector<1x6xf32>
    %143 = vector.broadcast %74 : i32 to vector<1x6xi32>
    %144 = arith.cmpi eq, %28, %143 : vector<1x6xi32>
    %cst_41 = arith.constant 0.000000e+00 : f32
    %145 = vector.broadcast %cst_41 : f32 to vector<1x6xf32>
    %146 = arith.select %144, %42, %145 : vector<1x6xi1>, vector<1x6xf32>
    %147 = arith.addf %142, %146 : vector<1x6xf32>
    %148 = vector.broadcast %75 : i32 to vector<1x6xi32>
    %149 = arith.cmpi eq, %28, %148 : vector<1x6xi32>
    %cst_42 = arith.constant 0.000000e+00 : f32
    %150 = vector.broadcast %cst_42 : f32 to vector<1x6xf32>
    %151 = arith.select %149, %43, %150 : vector<1x6xi1>, vector<1x6xf32>
    %152 = arith.addf %147, %151 : vector<1x6xf32>
    %153 = vector.broadcast %76 : i32 to vector<1x6xi32>
    %154 = arith.cmpi eq, %28, %153 : vector<1x6xi32>
    %cst_43 = arith.constant 0.000000e+00 : f32
    %155 = vector.broadcast %cst_43 : f32 to vector<1x6xf32>
    %156 = arith.select %154, %44, %155 : vector<1x6xi1>, vector<1x6xf32>
    %157 = arith.addf %152, %156 : vector<1x6xf32>
    %158 = vector.broadcast %77 : i32 to vector<1x6xi32>
    %159 = arith.cmpi eq, %28, %158 : vector<1x6xi32>
    %cst_44 = arith.constant 0.000000e+00 : f32
    %160 = vector.broadcast %cst_44 : f32 to vector<1x6xf32>
    %161 = arith.select %159, %45, %160 : vector<1x6xi1>, vector<1x6xf32>
    %162 = arith.addf %157, %161 : vector<1x6xf32>
    %cst_45 = arith.constant dense<0.000000e+00> : vector<1xf32>
    %163 = vector.multi_reduction <add>, %162, %cst_45 [1] : vector<1x6xf32> to vector<1xf32>
    %164 = vector.shape_cast %163 : vector<1xf32> to vector<1x1xf32>
    %165 = arith.addf %121, %164 : vector<1x1xf32>
    %166 = arith.addf %20, %38 : vector<1x6xf32>
    %167 = vector.broadcast %166 : vector<1x6xf32> to vector<6x6xf32>
    %168 = arith.addf %167, %22 : vector<6x6xf32>
    %cst_46 = arith.constant dense<0xFF800000> : vector<6xf32>
    %169 = vector.multi_reduction <maximumf>, %168, %cst_46 [1] : vector<6x6xf32> to vector<6xf32>
    %170 = vector.shape_cast %169 : vector<6xf32> to vector<6x1xf32>
    %171 = vector.broadcast %170 : vector<6x1xf32> to vector<6x6xf32>
    %172 = arith.subf %168, %171 : vector<6x6xf32>
    %173 = math.exp %172 : vector<6x6xf32>
    %cst_47 = arith.constant dense<0.000000e+00> : vector<6xf32>
    %174 = vector.multi_reduction <add>, %173, %cst_47 [1] : vector<6x6xf32> to vector<6xf32>
    %175 = vector.shape_cast %174 : vector<6xf32> to vector<6x1xf32>
    %176 = math.log %175 : vector<6x1xf32>
    %177 = arith.addf %170, %176 : vector<6x1xf32>
    %178 = arith.addf %177, %51 : vector<6x1xf32>
    %179 = vector.broadcast %178 : vector<6x1xf32> to vector<6x6xf32>
    %180 = arith.addf %179, %19 : vector<6x6xf32>
    %cst_48 = arith.constant dense<0xFF800000> : vector<6xf32>
    %181 = vector.multi_reduction <maximumf>, %180, %cst_48 [0] : vector<6x6xf32> to vector<6xf32>
    %182 = vector.shape_cast %181 : vector<6xf32> to vector<1x6xf32>
    %183 = vector.broadcast %182 : vector<1x6xf32> to vector<6x6xf32>
    %184 = arith.subf %180, %183 : vector<6x6xf32>
    %185 = math.exp %184 : vector<6x6xf32>
    %cst_49 = arith.constant dense<0.000000e+00> : vector<6xf32>
    %186 = vector.multi_reduction <add>, %185, %cst_49 [0] : vector<6x6xf32> to vector<6xf32>
    %187 = vector.shape_cast %186 : vector<6xf32> to vector<1x6xf32>
    %188 = math.log %187 : vector<1x6xf32>
    %189 = arith.addf %182, %188 : vector<1x6xf32>
    %190 = arith.addf %189, %40 : vector<1x6xf32>
    %191 = vector.broadcast %190 : vector<1x6xf32> to vector<6x6xf32>
    %192 = arith.addf %191, %22 : vector<6x6xf32>
    %cst_50 = arith.constant dense<0xFF800000> : vector<6xf32>
    %193 = vector.multi_reduction <maximumf>, %192, %cst_50 [1] : vector<6x6xf32> to vector<6xf32>
    %194 = vector.shape_cast %193 : vector<6xf32> to vector<6x1xf32>
    %195 = vector.broadcast %194 : vector<6x1xf32> to vector<6x6xf32>
    %196 = arith.subf %192, %195 : vector<6x6xf32>
    %197 = math.exp %196 : vector<6x6xf32>
    %cst_51 = arith.constant dense<0.000000e+00> : vector<6xf32>
    %198 = vector.multi_reduction <add>, %197, %cst_51 [1] : vector<6x6xf32> to vector<6xf32>
    %199 = vector.shape_cast %198 : vector<6xf32> to vector<6x1xf32>
    %200 = math.log %199 : vector<6x1xf32>
    %201 = arith.addf %194, %200 : vector<6x1xf32>
    %202 = arith.addf %201, %57 : vector<6x1xf32>
    %203 = vector.broadcast %202 : vector<6x1xf32> to vector<6x6xf32>
    %204 = arith.addf %203, %19 : vector<6x6xf32>
    %cst_52 = arith.constant dense<0xFF800000> : vector<6xf32>
    %205 = vector.multi_reduction <maximumf>, %204, %cst_52 [0] : vector<6x6xf32> to vector<6xf32>
    %206 = vector.shape_cast %205 : vector<6xf32> to vector<1x6xf32>
    %207 = vector.broadcast %206 : vector<1x6xf32> to vector<6x6xf32>
    %208 = arith.subf %204, %207 : vector<6x6xf32>
    %209 = math.exp %208 : vector<6x6xf32>
    %cst_53 = arith.constant dense<0.000000e+00> : vector<6xf32>
    %210 = vector.multi_reduction <add>, %209, %cst_53 [0] : vector<6x6xf32> to vector<6xf32>
    %211 = vector.shape_cast %210 : vector<6xf32> to vector<1x6xf32>
    %212 = math.log %211 : vector<1x6xf32>
    %213 = arith.addf %206, %212 : vector<1x6xf32>
    %214 = arith.addf %213, %42 : vector<1x6xf32>
    %215 = vector.broadcast %214 : vector<1x6xf32> to vector<6x6xf32>
    %216 = arith.addf %215, %22 : vector<6x6xf32>
    %cst_54 = arith.constant dense<0xFF800000> : vector<6xf32>
    %217 = vector.multi_reduction <maximumf>, %216, %cst_54 [1] : vector<6x6xf32> to vector<6xf32>
    %218 = vector.shape_cast %217 : vector<6xf32> to vector<6x1xf32>
    %219 = vector.broadcast %218 : vector<6x1xf32> to vector<6x6xf32>
    %220 = arith.subf %216, %219 : vector<6x6xf32>
    %221 = math.exp %220 : vector<6x6xf32>
    %cst_55 = arith.constant dense<0.000000e+00> : vector<6xf32>
    %222 = vector.multi_reduction <add>, %221, %cst_55 [1] : vector<6x6xf32> to vector<6xf32>
    %223 = vector.shape_cast %222 : vector<6xf32> to vector<6x1xf32>
    %224 = math.log %223 : vector<6x1xf32>
    %225 = arith.addf %218, %224 : vector<6x1xf32>
    %226 = arith.addf %225, %63 : vector<6x1xf32>
    %227 = vector.broadcast %226 : vector<6x1xf32> to vector<6x6xf32>
    %228 = arith.addf %227, %19 : vector<6x6xf32>
    %cst_56 = arith.constant dense<0xFF800000> : vector<6xf32>
    %229 = vector.multi_reduction <maximumf>, %228, %cst_56 [0] : vector<6x6xf32> to vector<6xf32>
    %230 = vector.shape_cast %229 : vector<6xf32> to vector<1x6xf32>
    %231 = vector.broadcast %230 : vector<1x6xf32> to vector<6x6xf32>
    %232 = arith.subf %228, %231 : vector<6x6xf32>
    %233 = math.exp %232 : vector<6x6xf32>
    %cst_57 = arith.constant dense<0.000000e+00> : vector<6xf32>
    %234 = vector.multi_reduction <add>, %233, %cst_57 [0] : vector<6x6xf32> to vector<6xf32>
    %235 = vector.shape_cast %234 : vector<6xf32> to vector<1x6xf32>
    %236 = math.log %235 : vector<1x6xf32>
    %237 = arith.addf %230, %236 : vector<1x6xf32>
    %238 = arith.addf %237, %44 : vector<1x6xf32>
    %239 = vector.broadcast %238 : vector<1x6xf32> to vector<6x6xf32>
    %240 = arith.addf %239, %22 : vector<6x6xf32>
    %cst_58 = arith.constant dense<0xFF800000> : vector<6xf32>
    %241 = vector.multi_reduction <maximumf>, %240, %cst_58 [1] : vector<6x6xf32> to vector<6xf32>
    %242 = vector.shape_cast %241 : vector<6xf32> to vector<6x1xf32>
    %243 = vector.broadcast %242 : vector<6x1xf32> to vector<6x6xf32>
    %244 = arith.subf %240, %243 : vector<6x6xf32>
    %245 = math.exp %244 : vector<6x6xf32>
    %cst_59 = arith.constant dense<0.000000e+00> : vector<6xf32>
    %246 = vector.multi_reduction <add>, %245, %cst_59 [1] : vector<6x6xf32> to vector<6xf32>
    %247 = vector.shape_cast %246 : vector<6xf32> to vector<6x1xf32>
    %248 = math.log %247 : vector<6x1xf32>
    %249 = arith.addf %242, %248 : vector<6x1xf32>
    %250 = arith.addf %249, %69 : vector<6x1xf32>
    %251 = arith.addf %250, %36 : vector<6x1xf32>
    %cst_60 = arith.constant dense<0xFF800000> : vector<1xf32>
    %252 = vector.multi_reduction <maximumf>, %251, %cst_60 [0] : vector<6x1xf32> to vector<1xf32>
    %253 = vector.shape_cast %252 : vector<1xf32> to vector<1x1xf32>
    %254 = vector.broadcast %253 : vector<1x1xf32> to vector<6x1xf32>
    %255 = arith.subf %251, %254 : vector<6x1xf32>
    %256 = math.exp %255 : vector<6x1xf32>
    %cst_61 = arith.constant dense<0.000000e+00> : vector<1xf32>
    %257 = vector.multi_reduction <add>, %256, %cst_61 [0] : vector<6x1xf32> to vector<1xf32>
    %258 = vector.shape_cast %257 : vector<1xf32> to vector<1x1xf32>
    %259 = math.log %258 : vector<1x1xf32>
    %260 = arith.addf %253, %259 : vector<1x1xf32>
    %261 = arith.subf %260, %165 : vector<1x1xf32>
    %c0_62 = arith.constant 0 : index
    %c0_63 = arith.constant 0 : index
    %262 = vector.load %arg8[%c0_62, %c0_63] : memref<2x1xf32, #tpu.memory_space<vmem>>, vector<1x1xf32>
    tpu.vector_store %arg8[%c0_62, %c0_63], %261 {strides = array<i32>} : memref<2x1xf32, #tpu.memory_space<vmem>>, vector<1x1xf32>,
    %263 = arith.addf %20, %38 : vector<1x6xf32>
    %264 = vector.broadcast %263 : vector<1x6xf32> to vector<6x6xf32>
    %265 = arith.addf %264, %22 : vector<6x6xf32>
    %266 = vector.broadcast %51 : vector<6x1xf32> to vector<6x6xf32>
    %267 = arith.addf %265, %266 : vector<6x6xf32>
    %cst_64 = arith.constant dense<0xFF800000> : vector<6xf32>
    %268 = vector.multi_reduction <maximumf>, %267, %cst_64 [1] : vector<6x6xf32> to vector<6xf32>
    %269 = vector.shape_cast %268 : vector<6xf32> to vector<6x1xf32>
    %270 = vector.broadcast %269 : vector<6x1xf32> to vector<6x6xf32>
    %271 = arith.cmpf oeq, %267, %270 : vector<6x6xf32>
    %c6_i32 = arith.constant 6 : i32
    %272 = vector.broadcast %c6_i32 : i32 to vector<6x6xi32>
    %273 = arith.select %271, %26, %272 : vector<6x6xi1>, vector<6x6xi32>
    %cst_65 = arith.constant dense<2147483647> : vector<6xi32>
    %274 = vector.multi_reduction <minsi>, %273, %cst_65 [1] : vector<6x6xi32> to vector<6xi32>
    %275 = vector.shape_cast %274 : vector<6xi32> to vector<6x1xi32>
    %276 = vector.broadcast %269 : vector<6x1xf32> to vector<6x6xf32>
    %277 = arith.addf %276, %19 : vector<6x6xf32>
    %278 = vector.broadcast %40 : vector<1x6xf32> to vector<6x6xf32>
    %279 = arith.addf %277, %278 : vector<6x6xf32>
    %cst_66 = arith.constant dense<0xFF800000> : vector<6xf32>
    %280 = vector.multi_reduction <maximumf>, %279, %cst_66 [0] : vector<6x6xf32> to vector<6xf32>
    %281 = vector.shape_cast %280 : vector<6xf32> to vector<1x6xf32>
    %282 = vector.broadcast %281 : vector<1x6xf32> to vector<6x6xf32>
    %283 = arith.cmpf oeq, %279, %282 : vector<6x6xf32>
    %c6_i32_67 = arith.constant 6 : i32
    %284 = vector.broadcast %c6_i32_67 : i32 to vector<6x6xi32>
    %285 = arith.select %283, %27, %284 : vector<6x6xi1>, vector<6x6xi32>
    %cst_68 = arith.constant dense<2147483647> : vector<6xi32>
    %286 = vector.multi_reduction <minsi>, %285, %cst_68 [0] : vector<6x6xi32> to vector<6xi32>
    %287 = vector.shape_cast %286 : vector<6xi32> to vector<1x6xi32>
    %288 = vector.broadcast %281 : vector<1x6xf32> to vector<6x6xf32>
    %289 = arith.addf %288, %22 : vector<6x6xf32>
    %290 = vector.broadcast %57 : vector<6x1xf32> to vector<6x6xf32>
    %291 = arith.addf %289, %290 : vector<6x6xf32>
    %cst_69 = arith.constant dense<0xFF800000> : vector<6xf32>
    %292 = vector.multi_reduction <maximumf>, %291, %cst_69 [1] : vector<6x6xf32> to vector<6xf32>
    %293 = vector.shape_cast %292 : vector<6xf32> to vector<6x1xf32>
    %294 = vector.broadcast %293 : vector<6x1xf32> to vector<6x6xf32>
    %295 = arith.cmpf oeq, %291, %294 : vector<6x6xf32>
    %c6_i32_70 = arith.constant 6 : i32
    %296 = vector.broadcast %c6_i32_70 : i32 to vector<6x6xi32>
    %297 = arith.select %295, %26, %296 : vector<6x6xi1>, vector<6x6xi32>
    %cst_71 = arith.constant dense<2147483647> : vector<6xi32>
    %298 = vector.multi_reduction <minsi>, %297, %cst_71 [1] : vector<6x6xi32> to vector<6xi32>
    %299 = vector.shape_cast %298 : vector<6xi32> to vector<6x1xi32>
    %300 = vector.broadcast %293 : vector<6x1xf32> to vector<6x6xf32>
    %301 = arith.addf %300, %19 : vector<6x6xf32>
    %302 = vector.broadcast %42 : vector<1x6xf32> to vector<6x6xf32>
    %303 = arith.addf %301, %302 : vector<6x6xf32>
    %cst_72 = arith.constant dense<0xFF800000> : vector<6xf32>
    %304 = vector.multi_reduction <maximumf>, %303, %cst_72 [0] : vector<6x6xf32> to vector<6xf32>
    %305 = vector.shape_cast %304 : vector<6xf32> to vector<1x6xf32>
    %306 = vector.broadcast %305 : vector<1x6xf32> to vector<6x6xf32>
    %307 = arith.cmpf oeq, %303, %306 : vector<6x6xf32>
    %c6_i32_73 = arith.constant 6 : i32
    %308 = vector.broadcast %c6_i32_73 : i32 to vector<6x6xi32>
    %309 = arith.select %307, %27, %308 : vector<6x6xi1>, vector<6x6xi32>
    %cst_74 = arith.constant dense<2147483647> : vector<6xi32>
    %310 = vector.multi_reduction <minsi>, %309, %cst_74 [0] : vector<6x6xi32> to vector<6xi32>
    %311 = vector.shape_cast %310 : vector<6xi32> to vector<1x6xi32>
    %312 = vector.broadcast %305 : vector<1x6xf32> to vector<6x6xf32>
    %313 = arith.addf %312, %22 : vector<6x6xf32>
    %314 = vector.broadcast %63 : vector<6x1xf32> to vector<6x6xf32>
    %315 = arith.addf %313, %314 : vector<6x6xf32>
    %cst_75 = arith.constant dense<0xFF800000> : vector<6xf32>
    %316 = vector.multi_reduction <maximumf>, %315, %cst_75 [1] : vector<6x6xf32> to vector<6xf32>
    %317 = vector.shape_cast %316 : vector<6xf32> to vector<6x1xf32>
    %318 = vector.broadcast %317 : vector<6x1xf32> to vector<6x6xf32>
    %319 = arith.cmpf oeq, %315, %318 : vector<6x6xf32>
    %c6_i32_76 = arith.constant 6 : i32
    %320 = vector.broadcast %c6_i32_76 : i32 to vector<6x6xi32>
    %321 = arith.select %319, %26, %320 : vector<6x6xi1>, vector<6x6xi32>
    %cst_77 = arith.constant dense<2147483647> : vector<6xi32>
    %322 = vector.multi_reduction <minsi>, %321, %cst_77 [1] : vector<6x6xi32> to vector<6xi32>
    %323 = vector.shape_cast %322 : vector<6xi32> to vector<6x1xi32>
    %324 = vector.broadcast %317 : vector<6x1xf32> to vector<6x6xf32>
    %325 = arith.addf %324, %19 : vector<6x6xf32>
    %326 = vector.broadcast %44 : vector<1x6xf32> to vector<6x6xf32>
    %327 = arith.addf %325, %326 : vector<6x6xf32>
    %cst_78 = arith.constant dense<0xFF800000> : vector<6xf32>
    %328 = vector.multi_reduction <maximumf>, %327, %cst_78 [0] : vector<6x6xf32> to vector<6xf32>
    %329 = vector.shape_cast %328 : vector<6xf32> to vector<1x6xf32>
    %330 = vector.broadcast %329 : vector<1x6xf32> to vector<6x6xf32>
    %331 = arith.cmpf oeq, %327, %330 : vector<6x6xf32>
    %c6_i32_79 = arith.constant 6 : i32
    %332 = vector.broadcast %c6_i32_79 : i32 to vector<6x6xi32>
    %333 = arith.select %331, %27, %332 : vector<6x6xi1>, vector<6x6xi32>
    %cst_80 = arith.constant dense<2147483647> : vector<6xi32>
    %334 = vector.multi_reduction <minsi>, %333, %cst_80 [0] : vector<6x6xi32> to vector<6xi32>
    %335 = vector.shape_cast %334 : vector<6xi32> to vector<1x6xi32>
    %336 = vector.broadcast %329 : vector<1x6xf32> to vector<6x6xf32>
    %337 = arith.addf %336, %22 : vector<6x6xf32>
    %338 = vector.broadcast %69 : vector<6x1xf32> to vector<6x6xf32>
    %339 = arith.addf %337, %338 : vector<6x6xf32>
    %cst_81 = arith.constant dense<0xFF800000> : vector<6xf32>
    %340 = vector.multi_reduction <maximumf>, %339, %cst_81 [1] : vector<6x6xf32> to vector<6xf32>
    %341 = vector.shape_cast %340 : vector<6xf32> to vector<6x1xf32>
    %342 = vector.broadcast %341 : vector<6x1xf32> to vector<6x6xf32>
    %343 = arith.cmpf oeq, %339, %342 : vector<6x6xf32>
    %c6_i32_82 = arith.constant 6 : i32
    %344 = vector.broadcast %c6_i32_82 : i32 to vector<6x6xi32>
    %345 = arith.select %343, %26, %344 : vector<6x6xi1>, vector<6x6xi32>
    %cst_83 = arith.constant dense<2147483647> : vector<6xi32>
    %346 = vector.multi_reduction <minsi>, %345, %cst_83 [1] : vector<6x6xi32> to vector<6xi32>
    %347 = vector.shape_cast %346 : vector<6xi32> to vector<6x1xi32>
    %348 = arith.addf %341, %36 : vector<6x1xf32>
    %cst_84 = arith.constant dense<0xFF800000> : vector<1xf32>
    %349 = vector.multi_reduction <maximumf>, %348, %cst_84 [0] : vector<6x1xf32> to vector<1xf32>
    %350 = vector.shape_cast %349 : vector<1xf32> to vector<1x1xf32>
    %351 = vector.broadcast %350 : vector<1x1xf32> to vector<6x1xf32>
    %352 = arith.cmpf oeq, %348, %351 : vector<6x1xf32>
    %c6_i32_85 = arith.constant 6 : i32
    %353 = vector.broadcast %c6_i32_85 : i32 to vector<6x1xi32>
    %354 = arith.select %352, %29, %353 : vector<6x1xi1>, vector<6x1xi32>
    %cst_86 = arith.constant dense<2147483647> : vector<1xi32>
    %355 = vector.multi_reduction <minsi>, %354, %cst_86 [0] : vector<6x1xi32> to vector<1xi32>
    %356 = vector.shape_cast %355 : vector<1xi32> to vector<1x1xi32>
    %c7_i32 = arith.constant 7 : i32
    %357 = vector.broadcast %c7_i32 : i32 to vector<1x8xi32>
    %358 = arith.cmpi eq, %30, %357 : vector<1x8xi32>
    %c0_i32 = arith.constant 0 : i32
    %359 = vector.broadcast %c0_i32 : i32 to vector<1x8xi32>
    %360 = vector.shape_cast %356 : vector<1x1xi32> to vector<1x1xi32>
    %361 = vector.broadcast %360 : vector<1x1xi32> to vector<1x8xi32>
    %362 = arith.select %358, %361, %359 : vector<1x8xi1>, vector<1x8xi32>
    %363 = vector.broadcast %356 : vector<1x1xi32> to vector<6x1xi32>
    %364 = arith.cmpi eq, %29, %363 : vector<6x1xi32>
    %c0_i32_87 = arith.constant 0 : i32
    %365 = vector.broadcast %c0_i32_87 : i32 to vector<6x1xi32>
    %366 = arith.select %364, %347, %365 : vector<6x1xi1>, vector<6x1xi32>
    %cst_88 = arith.constant dense<0> : vector<1xi32>
    %367 = vector.multi_reduction <add>, %366, %cst_88 [0] : vector<6x1xi32> to vector<1xi32>
    %368 = vector.shape_cast %367 : vector<1xi32> to vector<1x1xi32>
    %c6_i32_89 = arith.constant 6 : i32
    %369 = vector.broadcast %c6_i32_89 : i32 to vector<1x8xi32>
    %370 = arith.cmpi eq, %30, %369 : vector<1x8xi32>
    %371 = vector.shape_cast %368 : vector<1x1xi32> to vector<1x1xi32>
    %372 = vector.broadcast %371 : vector<1x1xi32> to vector<1x8xi32>
    %373 = arith.select %370, %372, %362 : vector<1x8xi1>, vector<1x8xi32>
    %374 = vector.broadcast %368 : vector<1x1xi32> to vector<1x6xi32>
    %375 = arith.cmpi eq, %28, %374 : vector<1x6xi32>
    %c0_i32_90 = arith.constant 0 : i32
    %376 = vector.broadcast %c0_i32_90 : i32 to vector<1x6xi32>
    %377 = arith.select %375, %335, %376 : vector<1x6xi1>, vector<1x6xi32>
    %cst_91 = arith.constant dense<0> : vector<1xi32>
    %378 = vector.multi_reduction <add>, %377, %cst_91 [1] : vector<1x6xi32> to vector<1xi32>
    %379 = vector.shape_cast %378 : vector<1xi32> to vector<1x1xi32>
    %c5_i32 = arith.constant 5 : i32
    %380 = vector.broadcast %c5_i32 : i32 to vector<1x8xi32>
    %381 = arith.cmpi eq, %30, %380 : vector<1x8xi32>
    %382 = vector.shape_cast %379 : vector<1x1xi32> to vector<1x1xi32>
    %383 = vector.broadcast %382 : vector<1x1xi32> to vector<1x8xi32>
    %384 = arith.select %381, %383, %373 : vector<1x8xi1>, vector<1x8xi32>
    %385 = vector.broadcast %379 : vector<1x1xi32> to vector<6x1xi32>
    %386 = arith.cmpi eq, %29, %385 : vector<6x1xi32>
    %c0_i32_92 = arith.constant 0 : i32
    %387 = vector.broadcast %c0_i32_92 : i32 to vector<6x1xi32>
    %388 = arith.select %386, %323, %387 : vector<6x1xi1>, vector<6x1xi32>
    %cst_93 = arith.constant dense<0> : vector<1xi32>
    %389 = vector.multi_reduction <add>, %388, %cst_93 [0] : vector<6x1xi32> to vector<1xi32>
    %390 = vector.shape_cast %389 : vector<1xi32> to vector<1x1xi32>
    %c4_i32 = arith.constant 4 : i32
    %391 = vector.broadcast %c4_i32 : i32 to vector<1x8xi32>
    %392 = arith.cmpi eq, %30, %391 : vector<1x8xi32>
    %393 = vector.shape_cast %390 : vector<1x1xi32> to vector<1x1xi32>
    %394 = vector.broadcast %393 : vector<1x1xi32> to vector<1x8xi32>
    %395 = arith.select %392, %394, %384 : vector<1x8xi1>, vector<1x8xi32>
    %396 = vector.broadcast %390 : vector<1x1xi32> to vector<1x6xi32>
    %397 = arith.cmpi eq, %28, %396 : vector<1x6xi32>
    %c0_i32_94 = arith.constant 0 : i32
    %398 = vector.broadcast %c0_i32_94 : i32 to vector<1x6xi32>
    %399 = arith.select %397, %311, %398 : vector<1x6xi1>, vector<1x6xi32>
    %cst_95 = arith.constant dense<0> : vector<1xi32>
    %400 = vector.multi_reduction <add>, %399, %cst_95 [1] : vector<1x6xi32> to vector<1xi32>
    %401 = vector.shape_cast %400 : vector<1xi32> to vector<1x1xi32>
    %c3_i32 = arith.constant 3 : i32
    %402 = vector.broadcast %c3_i32 : i32 to vector<1x8xi32>
    %403 = arith.cmpi eq, %30, %402 : vector<1x8xi32>
    %404 = vector.shape_cast %401 : vector<1x1xi32> to vector<1x1xi32>
    %405 = vector.broadcast %404 : vector<1x1xi32> to vector<1x8xi32>
    %406 = arith.select %403, %405, %395 : vector<1x8xi1>, vector<1x8xi32>
    %407 = vector.broadcast %401 : vector<1x1xi32> to vector<6x1xi32>
    %408 = arith.cmpi eq, %29, %407 : vector<6x1xi32>
    %c0_i32_96 = arith.constant 0 : i32
    %409 = vector.broadcast %c0_i32_96 : i32 to vector<6x1xi32>
    %410 = arith.select %408, %299, %409 : vector<6x1xi1>, vector<6x1xi32>
    %cst_97 = arith.constant dense<0> : vector<1xi32>
    %411 = vector.multi_reduction <add>, %410, %cst_97 [0] : vector<6x1xi32> to vector<1xi32>
    %412 = vector.shape_cast %411 : vector<1xi32> to vector<1x1xi32>
    %c2_i32 = arith.constant 2 : i32
    %413 = vector.broadcast %c2_i32 : i32 to vector<1x8xi32>
    %414 = arith.cmpi eq, %30, %413 : vector<1x8xi32>
    %415 = vector.shape_cast %412 : vector<1x1xi32> to vector<1x1xi32>
    %416 = vector.broadcast %415 : vector<1x1xi32> to vector<1x8xi32>
    %417 = arith.select %414, %416, %406 : vector<1x8xi1>, vector<1x8xi32>
    %418 = vector.broadcast %412 : vector<1x1xi32> to vector<1x6xi32>
    %419 = arith.cmpi eq, %28, %418 : vector<1x6xi32>
    %c0_i32_98 = arith.constant 0 : i32
    %420 = vector.broadcast %c0_i32_98 : i32 to vector<1x6xi32>
    %421 = arith.select %419, %287, %420 : vector<1x6xi1>, vector<1x6xi32>
    %cst_99 = arith.constant dense<0> : vector<1xi32>
    %422 = vector.multi_reduction <add>, %421, %cst_99 [1] : vector<1x6xi32> to vector<1xi32>
    %423 = vector.shape_cast %422 : vector<1xi32> to vector<1x1xi32>
    %c1_i32 = arith.constant 1 : i32
    %424 = vector.broadcast %c1_i32 : i32 to vector<1x8xi32>
    %425 = arith.cmpi eq, %30, %424 : vector<1x8xi32>
    %426 = vector.shape_cast %423 : vector<1x1xi32> to vector<1x1xi32>
    %427 = vector.broadcast %426 : vector<1x1xi32> to vector<1x8xi32>
    %428 = arith.select %425, %427, %417 : vector<1x8xi1>, vector<1x8xi32>
    %429 = vector.broadcast %423 : vector<1x1xi32> to vector<6x1xi32>
    %430 = arith.cmpi eq, %29, %429 : vector<6x1xi32>
    %c0_i32_100 = arith.constant 0 : i32
    %431 = vector.broadcast %c0_i32_100 : i32 to vector<6x1xi32>
    %432 = arith.select %430, %275, %431 : vector<6x1xi1>, vector<6x1xi32>
    %cst_101 = arith.constant dense<0> : vector<1xi32>
    %433 = vector.multi_reduction <add>, %432, %cst_101 [0] : vector<6x1xi32> to vector<1xi32>
    %434 = vector.shape_cast %433 : vector<1xi32> to vector<1x1xi32>
    %c0_i32_102 = arith.constant 0 : i32
    %435 = vector.broadcast %c0_i32_102 : i32 to vector<1x8xi32>
    %436 = arith.cmpi eq, %30, %435 : vector<1x8xi32>
    %437 = vector.shape_cast %434 : vector<1x1xi32> to vector<1x1xi32>
    %438 = vector.broadcast %437 : vector<1x1xi32> to vector<1x8xi32>
    %439 = arith.select %436, %438, %428 : vector<1x8xi1>, vector<1x8xi32>
    %c0_103 = arith.constant 0 : index
    %c0_104 = arith.constant 0 : index
    %440 = vector.load %arg9[%c0_103, %c0_104] : memref<2x8xi32, #tpu.memory_space<vmem>>, vector<1x8xi32>
    tpu.vector_store %arg9[%c0_103, %c0_104], %439 {strides = array<i32>} : memref<2x8xi32, #tpu.memory_space<vmem>>, vector<1x8xi32>,
    %441 = vector.extract_strided_slice %16 {offsets = [8, 0], sizes = [8, 6], strides = [1, 1]} : vector<16x6xf32> to vector<8x6xf32>
    %442 = vector.extract_strided_slice %441 {offsets = [0, 0], sizes = [1, 6], strides = [1, 1]} : vector<8x6xf32> to vector<1x6xf32>
    %443 = vector.extract_strided_slice %441 {offsets = [1, 0], sizes = [1, 6], strides = [1, 1]} : vector<8x6xf32> to vector<1x6xf32>
    %444 = vector.extract_strided_slice %441 {offsets = [2, 0], sizes = [1, 6], strides = [1, 1]} : vector<8x6xf32> to vector<1x6xf32>
    %445 = vector.extract_strided_slice %441 {offsets = [3, 0], sizes = [1, 6], strides = [1, 1]} : vector<8x6xf32> to vector<1x6xf32>
    %446 = vector.extract_strided_slice %441 {offsets = [4, 0], sizes = [1, 6], strides = [1, 1]} : vector<8x6xf32> to vector<1x6xf32>
    %447 = vector.extract_strided_slice %441 {offsets = [5, 0], sizes = [1, 6], strides = [1, 1]} : vector<8x6xf32> to vector<1x6xf32>
    %448 = vector.extract_strided_slice %441 {offsets = [6, 0], sizes = [1, 6], strides = [1, 1]} : vector<8x6xf32> to vector<1x6xf32>
    %449 = vector.extract_strided_slice %441 {offsets = [7, 0], sizes = [1, 6], strides = [1, 1]} : vector<8x6xf32> to vector<1x6xf32>
    %450 = vector.shape_cast %443 : vector<1x6xf32> to vector<1x6xf32>
    %451 = vector.broadcast %450 : vector<1x6xf32> to vector<6x6xf32>
    %cst_105 = arith.constant 0.000000e+00 : f32
    %452 = vector.broadcast %cst_105 : f32 to vector<6x6xf32>
    %453 = arith.select %25, %451, %452 : vector<6x6xi1>, vector<6x6xf32>
    %cst_106 = arith.constant dense<0.000000e+00> : vector<6xf32>
    %454 = vector.multi_reduction <add>, %453, %cst_106 [1] : vector<6x6xf32> to vector<6xf32>
    %455 = vector.shape_cast %454 : vector<6xf32> to vector<6x1xf32>
    %456 = vector.shape_cast %445 : vector<1x6xf32> to vector<1x6xf32>
    %457 = vector.broadcast %456 : vector<1x6xf32> to vector<6x6xf32>
    %cst_107 = arith.constant 0.000000e+00 : f32
    %458 = vector.broadcast %cst_107 : f32 to vector<6x6xf32>
    %459 = arith.select %25, %457, %458 : vector<6x6xi1>, vector<6x6xf32>
    %cst_108 = arith.constant dense<0.000000e+00> : vector<6xf32>
    %460 = vector.multi_reduction <add>, %459, %cst_108 [1] : vector<6x6xf32> to vector<6xf32>
    %461 = vector.shape_cast %460 : vector<6xf32> to vector<6x1xf32>
    %462 = vector.shape_cast %447 : vector<1x6xf32> to vector<1x6xf32>
    %463 = vector.broadcast %462 : vector<1x6xf32> to vector<6x6xf32>
    %cst_109 = arith.constant 0.000000e+00 : f32
    %464 = vector.broadcast %cst_109 : f32 to vector<6x6xf32>
    %465 = arith.select %25, %463, %464 : vector<6x6xi1>, vector<6x6xf32>
    %cst_110 = arith.constant dense<0.000000e+00> : vector<6xf32>
    %466 = vector.multi_reduction <add>, %465, %cst_110 [1] : vector<6x6xf32> to vector<6xf32>
    %467 = vector.shape_cast %466 : vector<6xf32> to vector<6x1xf32>
    %468 = vector.shape_cast %449 : vector<1x6xf32> to vector<1x6xf32>
    %469 = vector.broadcast %468 : vector<1x6xf32> to vector<6x6xf32>
    %cst_111 = arith.constant 0.000000e+00 : f32
    %470 = vector.broadcast %cst_111 : f32 to vector<6x6xf32>
    %471 = arith.select %25, %469, %470 : vector<6x6xi1>, vector<6x6xf32>
    %cst_112 = arith.constant dense<0.000000e+00> : vector<6xf32>
    %472 = vector.multi_reduction <add>, %471, %cst_112 [1] : vector<6x6xf32> to vector<6xf32>
    %473 = vector.shape_cast %472 : vector<6xf32> to vector<6x1xf32>
    %c1_113 = arith.constant 1 : index
    %c0_114 = arith.constant 0 : index
    %474 = memref.load %arg0[%c1_113, %c0_114] : memref<2x8xi32, #tpu.memory_space<smem>>
    %c1_115 = arith.constant 1 : index
    %c1_116 = arith.constant 1 : index
    %475 = memref.load %arg0[%c1_115, %c1_116] : memref<2x8xi32, #tpu.memory_space<smem>>
    %c1_117 = arith.constant 1 : index
    %c2_118 = arith.constant 2 : index
    %476 = memref.load %arg0[%c1_117, %c2_118] : memref<2x8xi32, #tpu.memory_space<smem>>
    %c1_119 = arith.constant 1 : index
    %c3_120 = arith.constant 3 : index
    %477 = memref.load %arg0[%c1_119, %c3_120] : memref<2x8xi32, #tpu.memory_space<smem>>
    %c1_121 = arith.constant 1 : index
    %c4_122 = arith.constant 4 : index
    %478 = memref.load %arg0[%c1_121, %c4_122] : memref<2x8xi32, #tpu.memory_space<smem>>
    %c1_123 = arith.constant 1 : index
    %c5_124 = arith.constant 5 : index
    %479 = memref.load %arg0[%c1_123, %c5_124] : memref<2x8xi32, #tpu.memory_space<smem>>
    %c1_125 = arith.constant 1 : index
    %c6_126 = arith.constant 6 : index
    %480 = memref.load %arg0[%c1_125, %c6_126] : memref<2x8xi32, #tpu.memory_space<smem>>
    %c1_127 = arith.constant 1 : index
    %c7_128 = arith.constant 7 : index
    %481 = memref.load %arg0[%c1_127, %c7_128] : memref<2x8xi32, #tpu.memory_space<smem>>
    %cst_129 = arith.constant 0.000000e+00 : f32
    %482 = vector.broadcast %cst_129 : f32 to vector<1x1xf32>
    %c6_130 = arith.constant 6 : index
    %483 = arith.index_cast %474 : i32 to index
    %484 = memref.load %arg1[%c6_130, %483] : memref<8x6xf32, #tpu.memory_space<smem>>
    %485 = vector.broadcast %484 : f32 to vector<1x1xf32>
    %486 = arith.addf %482, %485 : vector<1x1xf32>
    %487 = arith.index_cast %474 : i32 to index
    %488 = arith.index_cast %475 : i32 to index
    %489 = memref.load %arg1[%487, %488] : memref<8x6xf32, #tpu.memory_space<smem>>
    %490 = vector.broadcast %489 : f32 to vector<1x1xf32>
    %491 = arith.addf %486, %490 : vector<1x1xf32>
    %492 = arith.index_cast %475 : i32 to index
    %493 = arith.index_cast %476 : i32 to index
    %494 = memref.load %arg1[%492, %493] : memref<8x6xf32, #tpu.memory_space<smem>>
    %495 = vector.broadcast %494 : f32 to vector<1x1xf32>
    %496 = arith.addf %491, %495 : vector<1x1xf32>
    %497 = arith.index_cast %476 : i32 to index
    %498 = arith.index_cast %477 : i32 to index
    %499 = memref.load %arg1[%497, %498] : memref<8x6xf32, #tpu.memory_space<smem>>
    %500 = vector.broadcast %499 : f32 to vector<1x1xf32>
    %501 = arith.addf %496, %500 : vector<1x1xf32>
    %502 = arith.index_cast %477 : i32 to index
    %503 = arith.index_cast %478 : i32 to index
    %504 = memref.load %arg1[%502, %503] : memref<8x6xf32, #tpu.memory_space<smem>>
    %505 = vector.broadcast %504 : f32 to vector<1x1xf32>
    %506 = arith.addf %501, %505 : vector<1x1xf32>
    %507 = arith.index_cast %478 : i32 to index
    %508 = arith.index_cast %479 : i32 to index
    %509 = memref.load %arg1[%507, %508] : memref<8x6xf32, #tpu.memory_space<smem>>
    %510 = vector.broadcast %509 : f32 to vector<1x1xf32>
    %511 = arith.addf %506, %510 : vector<1x1xf32>
    %512 = arith.index_cast %479 : i32 to index
    %513 = arith.index_cast %480 : i32 to index
    %514 = memref.load %arg1[%512, %513] : memref<8x6xf32, #tpu.memory_space<smem>>
    %515 = vector.broadcast %514 : f32 to vector<1x1xf32>
    %516 = arith.addf %511, %515 : vector<1x1xf32>
    %517 = arith.index_cast %480 : i32 to index
    %518 = arith.index_cast %481 : i32 to index
    %519 = memref.load %arg1[%517, %518] : memref<8x6xf32, #tpu.memory_space<smem>>
    %520 = vector.broadcast %519 : f32 to vector<1x1xf32>
    %521 = arith.addf %516, %520 : vector<1x1xf32>
    %c7_131 = arith.constant 7 : index
    %522 = arith.index_cast %481 : i32 to index
    %523 = memref.load %arg1[%c7_131, %522] : memref<8x6xf32, #tpu.memory_space<smem>>
    %524 = vector.broadcast %523 : f32 to vector<1x1xf32>
    %525 = arith.addf %521, %524 : vector<1x1xf32>
    %cst_132 = arith.constant 0.000000e+00 : f32
    %526 = vector.broadcast %cst_132 : f32 to vector<1x6xf32>
    %527 = vector.broadcast %474 : i32 to vector<1x6xi32>
    %528 = arith.cmpi eq, %28, %527 : vector<1x6xi32>
    %cst_133 = arith.constant 0.000000e+00 : f32
    %529 = vector.broadcast %cst_133 : f32 to vector<1x6xf32>
    %530 = arith.select %528, %442, %529 : vector<1x6xi1>, vector<1x6xf32>
    %531 = arith.addf %526, %530 : vector<1x6xf32>
    %532 = vector.broadcast %475 : i32 to vector<1x6xi32>
    %533 = arith.cmpi eq, %28, %532 : vector<1x6xi32>
    %cst_134 = arith.constant 0.000000e+00 : f32
    %534 = vector.broadcast %cst_134 : f32 to vector<1x6xf32>
    %535 = arith.select %533, %443, %534 : vector<1x6xi1>, vector<1x6xf32>
    %536 = arith.addf %531, %535 : vector<1x6xf32>
    %537 = vector.broadcast %476 : i32 to vector<1x6xi32>
    %538 = arith.cmpi eq, %28, %537 : vector<1x6xi32>
    %cst_135 = arith.constant 0.000000e+00 : f32
    %539 = vector.broadcast %cst_135 : f32 to vector<1x6xf32>
    %540 = arith.select %538, %444, %539 : vector<1x6xi1>, vector<1x6xf32>
    %541 = arith.addf %536, %540 : vector<1x6xf32>
    %542 = vector.broadcast %477 : i32 to vector<1x6xi32>
    %543 = arith.cmpi eq, %28, %542 : vector<1x6xi32>
    %cst_136 = arith.constant 0.000000e+00 : f32
    %544 = vector.broadcast %cst_136 : f32 to vector<1x6xf32>
    %545 = arith.select %543, %445, %544 : vector<1x6xi1>, vector<1x6xf32>
    %546 = arith.addf %541, %545 : vector<1x6xf32>
    %547 = vector.broadcast %478 : i32 to vector<1x6xi32>
    %548 = arith.cmpi eq, %28, %547 : vector<1x6xi32>
    %cst_137 = arith.constant 0.000000e+00 : f32
    %549 = vector.broadcast %cst_137 : f32 to vector<1x6xf32>
    %550 = arith.select %548, %446, %549 : vector<1x6xi1>, vector<1x6xf32>
    %551 = arith.addf %546, %550 : vector<1x6xf32>
    %552 = vector.broadcast %479 : i32 to vector<1x6xi32>
    %553 = arith.cmpi eq, %28, %552 : vector<1x6xi32>
    %cst_138 = arith.constant 0.000000e+00 : f32
    %554 = vector.broadcast %cst_138 : f32 to vector<1x6xf32>
    %555 = arith.select %553, %447, %554 : vector<1x6xi1>, vector<1x6xf32>
    %556 = arith.addf %551, %555 : vector<1x6xf32>
    %557 = vector.broadcast %480 : i32 to vector<1x6xi32>
    %558 = arith.cmpi eq, %28, %557 : vector<1x6xi32>
    %cst_139 = arith.constant 0.000000e+00 : f32
    %559 = vector.broadcast %cst_139 : f32 to vector<1x6xf32>
    %560 = arith.select %558, %448, %559 : vector<1x6xi1>, vector<1x6xf32>
    %561 = arith.addf %556, %560 : vector<1x6xf32>
    %562 = vector.broadcast %481 : i32 to vector<1x6xi32>
    %563 = arith.cmpi eq, %28, %562 : vector<1x6xi32>
    %cst_140 = arith.constant 0.000000e+00 : f32
    %564 = vector.broadcast %cst_140 : f32 to vector<1x6xf32>
    %565 = arith.select %563, %449, %564 : vector<1x6xi1>, vector<1x6xf32>
    %566 = arith.addf %561, %565 : vector<1x6xf32>
    %cst_141 = arith.constant dense<0.000000e+00> : vector<1xf32>
    %567 = vector.multi_reduction <add>, %566, %cst_141 [1] : vector<1x6xf32> to vector<1xf32>
    %568 = vector.shape_cast %567 : vector<1xf32> to vector<1x1xf32>
    %569 = arith.addf %525, %568 : vector<1x1xf32>
    %570 = arith.addf %20, %442 : vector<1x6xf32>
    %571 = vector.broadcast %570 : vector<1x6xf32> to vector<6x6xf32>
    %572 = arith.addf %571, %22 : vector<6x6xf32>
    %cst_142 = arith.constant dense<0xFF800000> : vector<6xf32>
    %573 = vector.multi_reduction <maximumf>, %572, %cst_142 [1] : vector<6x6xf32> to vector<6xf32>
    %574 = vector.shape_cast %573 : vector<6xf32> to vector<6x1xf32>
    %575 = vector.broadcast %574 : vector<6x1xf32> to vector<6x6xf32>
    %576 = arith.subf %572, %575 : vector<6x6xf32>
    %577 = math.exp %576 : vector<6x6xf32>
    %cst_143 = arith.constant dense<0.000000e+00> : vector<6xf32>
    %578 = vector.multi_reduction <add>, %577, %cst_143 [1] : vector<6x6xf32> to vector<6xf32>
    %579 = vector.shape_cast %578 : vector<6xf32> to vector<6x1xf32>
    %580 = math.log %579 : vector<6x1xf32>
    %581 = arith.addf %574, %580 : vector<6x1xf32>
    %582 = arith.addf %581, %455 : vector<6x1xf32>
    %583 = vector.broadcast %582 : vector<6x1xf32> to vector<6x6xf32>
    %584 = arith.addf %583, %19 : vector<6x6xf32>
    %cst_144 = arith.constant dense<0xFF800000> : vector<6xf32>
    %585 = vector.multi_reduction <maximumf>, %584, %cst_144 [0] : vector<6x6xf32> to vector<6xf32>
    %586 = vector.shape_cast %585 : vector<6xf32> to vector<1x6xf32>
    %587 = vector.broadcast %586 : vector<1x6xf32> to vector<6x6xf32>
    %588 = arith.subf %584, %587 : vector<6x6xf32>
    %589 = math.exp %588 : vector<6x6xf32>
    %cst_145 = arith.constant dense<0.000000e+00> : vector<6xf32>
    %590 = vector.multi_reduction <add>, %589, %cst_145 [0] : vector<6x6xf32> to vector<6xf32>
    %591 = vector.shape_cast %590 : vector<6xf32> to vector<1x6xf32>
    %592 = math.log %591 : vector<1x6xf32>
    %593 = arith.addf %586, %592 : vector<1x6xf32>
    %594 = arith.addf %593, %444 : vector<1x6xf32>
    %595 = vector.broadcast %594 : vector<1x6xf32> to vector<6x6xf32>
    %596 = arith.addf %595, %22 : vector<6x6xf32>
    %cst_146 = arith.constant dense<0xFF800000> : vector<6xf32>
    %597 = vector.multi_reduction <maximumf>, %596, %cst_146 [1] : vector<6x6xf32> to vector<6xf32>
    %598 = vector.shape_cast %597 : vector<6xf32> to vector<6x1xf32>
    %599 = vector.broadcast %598 : vector<6x1xf32> to vector<6x6xf32>
    %600 = arith.subf %596, %599 : vector<6x6xf32>
    %601 = math.exp %600 : vector<6x6xf32>
    %cst_147 = arith.constant dense<0.000000e+00> : vector<6xf32>
    %602 = vector.multi_reduction <add>, %601, %cst_147 [1] : vector<6x6xf32> to vector<6xf32>
    %603 = vector.shape_cast %602 : vector<6xf32> to vector<6x1xf32>
    %604 = math.log %603 : vector<6x1xf32>
    %605 = arith.addf %598, %604 : vector<6x1xf32>
    %606 = arith.addf %605, %461 : vector<6x1xf32>
    %607 = vector.broadcast %606 : vector<6x1xf32> to vector<6x6xf32>
    %608 = arith.addf %607, %19 : vector<6x6xf32>
    %cst_148 = arith.constant dense<0xFF800000> : vector<6xf32>
    %609 = vector.multi_reduction <maximumf>, %608, %cst_148 [0] : vector<6x6xf32> to vector<6xf32>
    %610 = vector.shape_cast %609 : vector<6xf32> to vector<1x6xf32>
    %611 = vector.broadcast %610 : vector<1x6xf32> to vector<6x6xf32>
    %612 = arith.subf %608, %611 : vector<6x6xf32>
    %613 = math.exp %612 : vector<6x6xf32>
    %cst_149 = arith.constant dense<0.000000e+00> : vector<6xf32>
    %614 = vector.multi_reduction <add>, %613, %cst_149 [0] : vector<6x6xf32> to vector<6xf32>
    %615 = vector.shape_cast %614 : vector<6xf32> to vector<1x6xf32>
    %616 = math.log %615 : vector<1x6xf32>
    %617 = arith.addf %610, %616 : vector<1x6xf32>
    %618 = arith.addf %617, %446 : vector<1x6xf32>
    %619 = vector.broadcast %618 : vector<1x6xf32> to vector<6x6xf32>
    %620 = arith.addf %619, %22 : vector<6x6xf32>
    %cst_150 = arith.constant dense<0xFF800000> : vector<6xf32>
    %621 = vector.multi_reduction <maximumf>, %620, %cst_150 [1] : vector<6x6xf32> to vector<6xf32>
    %622 = vector.shape_cast %621 : vector<6xf32> to vector<6x1xf32>
    %623 = vector.broadcast %622 : vector<6x1xf32> to vector<6x6xf32>
    %624 = arith.subf %620, %623 : vector<6x6xf32>
    %625 = math.exp %624 : vector<6x6xf32>
    %cst_151 = arith.constant dense<0.000000e+00> : vector<6xf32>
    %626 = vector.multi_reduction <add>, %625, %cst_151 [1] : vector<6x6xf32> to vector<6xf32>
    %627 = vector.shape_cast %626 : vector<6xf32> to vector<6x1xf32>
    %628 = math.log %627 : vector<6x1xf32>
    %629 = arith.addf %622, %628 : vector<6x1xf32>
    %630 = arith.addf %629, %467 : vector<6x1xf32>
    %631 = vector.broadcast %630 : vector<6x1xf32> to vector<6x6xf32>
    %632 = arith.addf %631, %19 : vector<6x6xf32>
    %cst_152 = arith.constant dense<0xFF800000> : vector<6xf32>
    %633 = vector.multi_reduction <maximumf>, %632, %cst_152 [0] : vector<6x6xf32> to vector<6xf32>
    %634 = vector.shape_cast %633 : vector<6xf32> to vector<1x6xf32>
    %635 = vector.broadcast %634 : vector<1x6xf32> to vector<6x6xf32>
    %636 = arith.subf %632, %635 : vector<6x6xf32>
    %637 = math.exp %636 : vector<6x6xf32>
    %cst_153 = arith.constant dense<0.000000e+00> : vector<6xf32>
    %638 = vector.multi_reduction <add>, %637, %cst_153 [0] : vector<6x6xf32> to vector<6xf32>
    %639 = vector.shape_cast %638 : vector<6xf32> to vector<1x6xf32>
    %640 = math.log %639 : vector<1x6xf32>
    %641 = arith.addf %634, %640 : vector<1x6xf32>
    %642 = arith.addf %641, %448 : vector<1x6xf32>
    %643 = vector.broadcast %642 : vector<1x6xf32> to vector<6x6xf32>
    %644 = arith.addf %643, %22 : vector<6x6xf32>
    %cst_154 = arith.constant dense<0xFF800000> : vector<6xf32>
    %645 = vector.multi_reduction <maximumf>, %644, %cst_154 [1] : vector<6x6xf32> to vector<6xf32>
    %646 = vector.shape_cast %645 : vector<6xf32> to vector<6x1xf32>
    %647 = vector.broadcast %646 : vector<6x1xf32> to vector<6x6xf32>
    %648 = arith.subf %644, %647 : vector<6x6xf32>
    %649 = math.exp %648 : vector<6x6xf32>
    %cst_155 = arith.constant dense<0.000000e+00> : vector<6xf32>
    %650 = vector.multi_reduction <add>, %649, %cst_155 [1] : vector<6x6xf32> to vector<6xf32>
    %651 = vector.shape_cast %650 : vector<6xf32> to vector<6x1xf32>
    %652 = math.log %651 : vector<6x1xf32>
    %653 = arith.addf %646, %652 : vector<6x1xf32>
    %654 = arith.addf %653, %473 : vector<6x1xf32>
    %655 = arith.addf %654, %36 : vector<6x1xf32>
    %cst_156 = arith.constant dense<0xFF800000> : vector<1xf32>
    %656 = vector.multi_reduction <maximumf>, %655, %cst_156 [0] : vector<6x1xf32> to vector<1xf32>
    %657 = vector.shape_cast %656 : vector<1xf32> to vector<1x1xf32>
    %658 = vector.broadcast %657 : vector<1x1xf32> to vector<6x1xf32>
    %659 = arith.subf %655, %658 : vector<6x1xf32>
    %660 = math.exp %659 : vector<6x1xf32>
    %cst_157 = arith.constant dense<0.000000e+00> : vector<1xf32>
    %661 = vector.multi_reduction <add>, %660, %cst_157 [0] : vector<6x1xf32> to vector<1xf32>
    %662 = vector.shape_cast %661 : vector<1xf32> to vector<1x1xf32>
    %663 = math.log %662 : vector<1x1xf32>
    %664 = arith.addf %657, %663 : vector<1x1xf32>
    %665 = arith.subf %664, %569 : vector<1x1xf32>
    %c1_158 = arith.constant 1 : index
    %c0_159 = arith.constant 0 : index
    %666 = vector.load %arg8[%c1_158, %c0_159] : memref<2x1xf32, #tpu.memory_space<vmem>>, vector<1x1xf32>
    tpu.vector_store %arg8[%c1_158, %c0_159], %665 {strides = array<i32>} : memref<2x1xf32, #tpu.memory_space<vmem>>, vector<1x1xf32>,
    %667 = arith.addf %20, %442 : vector<1x6xf32>
    %668 = vector.broadcast %667 : vector<1x6xf32> to vector<6x6xf32>
    %669 = arith.addf %668, %22 : vector<6x6xf32>
    %670 = vector.broadcast %455 : vector<6x1xf32> to vector<6x6xf32>
    %671 = arith.addf %669, %670 : vector<6x6xf32>
    %cst_160 = arith.constant dense<0xFF800000> : vector<6xf32>
    %672 = vector.multi_reduction <maximumf>, %671, %cst_160 [1] : vector<6x6xf32> to vector<6xf32>
    %673 = vector.shape_cast %672 : vector<6xf32> to vector<6x1xf32>
    %674 = vector.broadcast %673 : vector<6x1xf32> to vector<6x6xf32>
    %675 = arith.cmpf oeq, %671, %674 : vector<6x6xf32>
    %c6_i32_161 = arith.constant 6 : i32
    %676 = vector.broadcast %c6_i32_161 : i32 to vector<6x6xi32>
    %677 = arith.select %675, %26, %676 : vector<6x6xi1>, vector<6x6xi32>
    %cst_162 = arith.constant dense<2147483647> : vector<6xi32>
    %678 = vector.multi_reduction <minsi>, %677, %cst_162 [1] : vector<6x6xi32> to vector<6xi32>
    %679 = vector.shape_cast %678 : vector<6xi32> to vector<6x1xi32>
    %680 = vector.broadcast %673 : vector<6x1xf32> to vector<6x6xf32>
    %681 = arith.addf %680, %19 : vector<6x6xf32>
    %682 = vector.broadcast %444 : vector<1x6xf32> to vector<6x6xf32>
    %683 = arith.addf %681, %682 : vector<6x6xf32>
    %cst_163 = arith.constant dense<0xFF800000> : vector<6xf32>
    %684 = vector.multi_reduction <maximumf>, %683, %cst_163 [0] : vector<6x6xf32> to vector<6xf32>
    %685 = vector.shape_cast %684 : vector<6xf32> to vector<1x6xf32>
    %686 = vector.broadcast %685 : vector<1x6xf32> to vector<6x6xf32>
    %687 = arith.cmpf oeq, %683, %686 : vector<6x6xf32>
    %c6_i32_164 = arith.constant 6 : i32
    %688 = vector.broadcast %c6_i32_164 : i32 to vector<6x6xi32>
    %689 = arith.select %687, %27, %688 : vector<6x6xi1>, vector<6x6xi32>
    %cst_165 = arith.constant dense<2147483647> : vector<6xi32>
    %690 = vector.multi_reduction <minsi>, %689, %cst_165 [0] : vector<6x6xi32> to vector<6xi32>
    %691 = vector.shape_cast %690 : vector<6xi32> to vector<1x6xi32>
    %692 = vector.broadcast %685 : vector<1x6xf32> to vector<6x6xf32>
    %693 = arith.addf %692, %22 : vector<6x6xf32>
    %694 = vector.broadcast %461 : vector<6x1xf32> to vector<6x6xf32>
    %695 = arith.addf %693, %694 : vector<6x6xf32>
    %cst_166 = arith.constant dense<0xFF800000> : vector<6xf32>
    %696 = vector.multi_reduction <maximumf>, %695, %cst_166 [1] : vector<6x6xf32> to vector<6xf32>
    %697 = vector.shape_cast %696 : vector<6xf32> to vector<6x1xf32>
    %698 = vector.broadcast %697 : vector<6x1xf32> to vector<6x6xf32>
    %699 = arith.cmpf oeq, %695, %698 : vector<6x6xf32>
    %c6_i32_167 = arith.constant 6 : i32
    %700 = vector.broadcast %c6_i32_167 : i32 to vector<6x6xi32>
    %701 = arith.select %699, %26, %700 : vector<6x6xi1>, vector<6x6xi32>
    %cst_168 = arith.constant dense<2147483647> : vector<6xi32>
    %702 = vector.multi_reduction <minsi>, %701, %cst_168 [1] : vector<6x6xi32> to vector<6xi32>
    %703 = vector.shape_cast %702 : vector<6xi32> to vector<6x1xi32>
    %704 = vector.broadcast %697 : vector<6x1xf32> to vector<6x6xf32>
    %705 = arith.addf %704, %19 : vector<6x6xf32>
    %706 = vector.broadcast %446 : vector<1x6xf32> to vector<6x6xf32>
    %707 = arith.addf %705, %706 : vector<6x6xf32>
    %cst_169 = arith.constant dense<0xFF800000> : vector<6xf32>
    %708 = vector.multi_reduction <maximumf>, %707, %cst_169 [0] : vector<6x6xf32> to vector<6xf32>
    %709 = vector.shape_cast %708 : vector<6xf32> to vector<1x6xf32>
    %710 = vector.broadcast %709 : vector<1x6xf32> to vector<6x6xf32>
    %711 = arith.cmpf oeq, %707, %710 : vector<6x6xf32>
    %c6_i32_170 = arith.constant 6 : i32
    %712 = vector.broadcast %c6_i32_170 : i32 to vector<6x6xi32>
    %713 = arith.select %711, %27, %712 : vector<6x6xi1>, vector<6x6xi32>
    %cst_171 = arith.constant dense<2147483647> : vector<6xi32>
    %714 = vector.multi_reduction <minsi>, %713, %cst_171 [0] : vector<6x6xi32> to vector<6xi32>
    %715 = vector.shape_cast %714 : vector<6xi32> to vector<1x6xi32>
    %716 = vector.broadcast %709 : vector<1x6xf32> to vector<6x6xf32>
    %717 = arith.addf %716, %22 : vector<6x6xf32>
    %718 = vector.broadcast %467 : vector<6x1xf32> to vector<6x6xf32>
    %719 = arith.addf %717, %718 : vector<6x6xf32>
    %cst_172 = arith.constant dense<0xFF800000> : vector<6xf32>
    %720 = vector.multi_reduction <maximumf>, %719, %cst_172 [1] : vector<6x6xf32> to vector<6xf32>
    %721 = vector.shape_cast %720 : vector<6xf32> to vector<6x1xf32>
    %722 = vector.broadcast %721 : vector<6x1xf32> to vector<6x6xf32>
    %723 = arith.cmpf oeq, %719, %722 : vector<6x6xf32>
    %c6_i32_173 = arith.constant 6 : i32
    %724 = vector.broadcast %c6_i32_173 : i32 to vector<6x6xi32>
    %725 = arith.select %723, %26, %724 : vector<6x6xi1>, vector<6x6xi32>
    %cst_174 = arith.constant dense<2147483647> : vector<6xi32>
    %726 = vector.multi_reduction <minsi>, %725, %cst_174 [1] : vector<6x6xi32> to vector<6xi32>
    %727 = vector.shape_cast %726 : vector<6xi32> to vector<6x1xi32>
    %728 = vector.broadcast %721 : vector<6x1xf32> to vector<6x6xf32>
    %729 = arith.addf %728, %19 : vector<6x6xf32>
    %730 = vector.broadcast %448 : vector<1x6xf32> to vector<6x6xf32>
    %731 = arith.addf %729, %730 : vector<6x6xf32>
    %cst_175 = arith.constant dense<0xFF800000> : vector<6xf32>
    %732 = vector.multi_reduction <maximumf>, %731, %cst_175 [0] : vector<6x6xf32> to vector<6xf32>
    %733 = vector.shape_cast %732 : vector<6xf32> to vector<1x6xf32>
    %734 = vector.broadcast %733 : vector<1x6xf32> to vector<6x6xf32>
    %735 = arith.cmpf oeq, %731, %734 : vector<6x6xf32>
    %c6_i32_176 = arith.constant 6 : i32
    %736 = vector.broadcast %c6_i32_176 : i32 to vector<6x6xi32>
    %737 = arith.select %735, %27, %736 : vector<6x6xi1>, vector<6x6xi32>
    %cst_177 = arith.constant dense<2147483647> : vector<6xi32>
    %738 = vector.multi_reduction <minsi>, %737, %cst_177 [0] : vector<6x6xi32> to vector<6xi32>
    %739 = vector.shape_cast %738 : vector<6xi32> to vector<1x6xi32>
    %740 = vector.broadcast %733 : vector<1x6xf32> to vector<6x6xf32>
    %741 = arith.addf %740, %22 : vector<6x6xf32>
    %742 = vector.broadcast %473 : vector<6x1xf32> to vector<6x6xf32>
    %743 = arith.addf %741, %742 : vector<6x6xf32>
    %cst_178 = arith.constant dense<0xFF800000> : vector<6xf32>
    %744 = vector.multi_reduction <maximumf>, %743, %cst_178 [1] : vector<6x6xf32> to vector<6xf32>
    %745 = vector.shape_cast %744 : vector<6xf32> to vector<6x1xf32>
    %746 = vector.broadcast %745 : vector<6x1xf32> to vector<6x6xf32>
    %747 = arith.cmpf oeq, %743, %746 : vector<6x6xf32>
    %c6_i32_179 = arith.constant 6 : i32
    %748 = vector.broadcast %c6_i32_179 : i32 to vector<6x6xi32>
    %749 = arith.select %747, %26, %748 : vector<6x6xi1>, vector<6x6xi32>
    %cst_180 = arith.constant dense<2147483647> : vector<6xi32>
    %750 = vector.multi_reduction <minsi>, %749, %cst_180 [1] : vector<6x6xi32> to vector<6xi32>
    %751 = vector.shape_cast %750 : vector<6xi32> to vector<6x1xi32>
    %752 = arith.addf %745, %36 : vector<6x1xf32>
    %cst_181 = arith.constant dense<0xFF800000> : vector<1xf32>
    %753 = vector.multi_reduction <maximumf>, %752, %cst_181 [0] : vector<6x1xf32> to vector<1xf32>
    %754 = vector.shape_cast %753 : vector<1xf32> to vector<1x1xf32>
    %755 = vector.broadcast %754 : vector<1x1xf32> to vector<6x1xf32>
    %756 = arith.cmpf oeq, %752, %755 : vector<6x1xf32>
    %c6_i32_182 = arith.constant 6 : i32
    %757 = vector.broadcast %c6_i32_182 : i32 to vector<6x1xi32>
    %758 = arith.select %756, %29, %757 : vector<6x1xi1>, vector<6x1xi32>
    %cst_183 = arith.constant dense<2147483647> : vector<1xi32>
    %759 = vector.multi_reduction <minsi>, %758, %cst_183 [0] : vector<6x1xi32> to vector<1xi32>
    %760 = vector.shape_cast %759 : vector<1xi32> to vector<1x1xi32>
    %c7_i32_184 = arith.constant 7 : i32
    %761 = vector.broadcast %c7_i32_184 : i32 to vector<1x8xi32>
    %762 = arith.cmpi eq, %30, %761 : vector<1x8xi32>
    %c0_i32_185 = arith.constant 0 : i32
    %763 = vector.broadcast %c0_i32_185 : i32 to vector<1x8xi32>
    %764 = vector.shape_cast %760 : vector<1x1xi32> to vector<1x1xi32>
    %765 = vector.broadcast %764 : vector<1x1xi32> to vector<1x8xi32>
    %766 = arith.select %762, %765, %763 : vector<1x8xi1>, vector<1x8xi32>
    %767 = vector.broadcast %760 : vector<1x1xi32> to vector<6x1xi32>
    %768 = arith.cmpi eq, %29, %767 : vector<6x1xi32>
    %c0_i32_186 = arith.constant 0 : i32
    %769 = vector.broadcast %c0_i32_186 : i32 to vector<6x1xi32>
    %770 = arith.select %768, %751, %769 : vector<6x1xi1>, vector<6x1xi32>
    %cst_187 = arith.constant dense<0> : vector<1xi32>
    %771 = vector.multi_reduction <add>, %770, %cst_187 [0] : vector<6x1xi32> to vector<1xi32>
    %772 = vector.shape_cast %771 : vector<1xi32> to vector<1x1xi32>
    %c6_i32_188 = arith.constant 6 : i32
    %773 = vector.broadcast %c6_i32_188 : i32 to vector<1x8xi32>
    %774 = arith.cmpi eq, %30, %773 : vector<1x8xi32>
    %775 = vector.shape_cast %772 : vector<1x1xi32> to vector<1x1xi32>
    %776 = vector.broadcast %775 : vector<1x1xi32> to vector<1x8xi32>
    %777 = arith.select %774, %776, %766 : vector<1x8xi1>, vector<1x8xi32>
    %778 = vector.broadcast %772 : vector<1x1xi32> to vector<1x6xi32>
    %779 = arith.cmpi eq, %28, %778 : vector<1x6xi32>
    %c0_i32_189 = arith.constant 0 : i32
    %780 = vector.broadcast %c0_i32_189 : i32 to vector<1x6xi32>
    %781 = arith.select %779, %739, %780 : vector<1x6xi1>, vector<1x6xi32>
    %cst_190 = arith.constant dense<0> : vector<1xi32>
    %782 = vector.multi_reduction <add>, %781, %cst_190 [1] : vector<1x6xi32> to vector<1xi32>
    %783 = vector.shape_cast %782 : vector<1xi32> to vector<1x1xi32>
    %c5_i32_191 = arith.constant 5 : i32
    %784 = vector.broadcast %c5_i32_191 : i32 to vector<1x8xi32>
    %785 = arith.cmpi eq, %30, %784 : vector<1x8xi32>
    %786 = vector.shape_cast %783 : vector<1x1xi32> to vector<1x1xi32>
    %787 = vector.broadcast %786 : vector<1x1xi32> to vector<1x8xi32>
    %788 = arith.select %785, %787, %777 : vector<1x8xi1>, vector<1x8xi32>
    %789 = vector.broadcast %783 : vector<1x1xi32> to vector<6x1xi32>
    %790 = arith.cmpi eq, %29, %789 : vector<6x1xi32>
    %c0_i32_192 = arith.constant 0 : i32
    %791 = vector.broadcast %c0_i32_192 : i32 to vector<6x1xi32>
    %792 = arith.select %790, %727, %791 : vector<6x1xi1>, vector<6x1xi32>
    %cst_193 = arith.constant dense<0> : vector<1xi32>
    %793 = vector.multi_reduction <add>, %792, %cst_193 [0] : vector<6x1xi32> to vector<1xi32>
    %794 = vector.shape_cast %793 : vector<1xi32> to vector<1x1xi32>
    %c4_i32_194 = arith.constant 4 : i32
    %795 = vector.broadcast %c4_i32_194 : i32 to vector<1x8xi32>
    %796 = arith.cmpi eq, %30, %795 : vector<1x8xi32>
    %797 = vector.shape_cast %794 : vector<1x1xi32> to vector<1x1xi32>
    %798 = vector.broadcast %797 : vector<1x1xi32> to vector<1x8xi32>
    %799 = arith.select %796, %798, %788 : vector<1x8xi1>, vector<1x8xi32>
    %800 = vector.broadcast %794 : vector<1x1xi32> to vector<1x6xi32>
    %801 = arith.cmpi eq, %28, %800 : vector<1x6xi32>
    %c0_i32_195 = arith.constant 0 : i32
    %802 = vector.broadcast %c0_i32_195 : i32 to vector<1x6xi32>
    %803 = arith.select %801, %715, %802 : vector<1x6xi1>, vector<1x6xi32>
    %cst_196 = arith.constant dense<0> : vector<1xi32>
    %804 = vector.multi_reduction <add>, %803, %cst_196 [1] : vector<1x6xi32> to vector<1xi32>
    %805 = vector.shape_cast %804 : vector<1xi32> to vector<1x1xi32>
    %c3_i32_197 = arith.constant 3 : i32
    %806 = vector.broadcast %c3_i32_197 : i32 to vector<1x8xi32>
    %807 = arith.cmpi eq, %30, %806 : vector<1x8xi32>
    %808 = vector.shape_cast %805 : vector<1x1xi32> to vector<1x1xi32>
    %809 = vector.broadcast %808 : vector<1x1xi32> to vector<1x8xi32>
    %810 = arith.select %807, %809, %799 : vector<1x8xi1>, vector<1x8xi32>
    %811 = vector.broadcast %805 : vector<1x1xi32> to vector<6x1xi32>
    %812 = arith.cmpi eq, %29, %811 : vector<6x1xi32>
    %c0_i32_198 = arith.constant 0 : i32
    %813 = vector.broadcast %c0_i32_198 : i32 to vector<6x1xi32>
    %814 = arith.select %812, %703, %813 : vector<6x1xi1>, vector<6x1xi32>
    %cst_199 = arith.constant dense<0> : vector<1xi32>
    %815 = vector.multi_reduction <add>, %814, %cst_199 [0] : vector<6x1xi32> to vector<1xi32>
    %816 = vector.shape_cast %815 : vector<1xi32> to vector<1x1xi32>
    %c2_i32_200 = arith.constant 2 : i32
    %817 = vector.broadcast %c2_i32_200 : i32 to vector<1x8xi32>
    %818 = arith.cmpi eq, %30, %817 : vector<1x8xi32>
    %819 = vector.shape_cast %816 : vector<1x1xi32> to vector<1x1xi32>
    %820 = vector.broadcast %819 : vector<1x1xi32> to vector<1x8xi32>
    %821 = arith.select %818, %820, %810 : vector<1x8xi1>, vector<1x8xi32>
    %822 = vector.broadcast %816 : vector<1x1xi32> to vector<1x6xi32>
    %823 = arith.cmpi eq, %28, %822 : vector<1x6xi32>
    %c0_i32_201 = arith.constant 0 : i32
    %824 = vector.broadcast %c0_i32_201 : i32 to vector<1x6xi32>
    %825 = arith.select %823, %691, %824 : vector<1x6xi1>, vector<1x6xi32>
    %cst_202 = arith.constant dense<0> : vector<1xi32>
    %826 = vector.multi_reduction <add>, %825, %cst_202 [1] : vector<1x6xi32> to vector<1xi32>
    %827 = vector.shape_cast %826 : vector<1xi32> to vector<1x1xi32>
    %c1_i32_203 = arith.constant 1 : i32
    %828 = vector.broadcast %c1_i32_203 : i32 to vector<1x8xi32>
    %829 = arith.cmpi eq, %30, %828 : vector<1x8xi32>
    %830 = vector.shape_cast %827 : vector<1x1xi32> to vector<1x1xi32>
    %831 = vector.broadcast %830 : vector<1x1xi32> to vector<1x8xi32>
    %832 = arith.select %829, %831, %821 : vector<1x8xi1>, vector<1x8xi32>
    %833 = vector.broadcast %827 : vector<1x1xi32> to vector<6x1xi32>
    %834 = arith.cmpi eq, %29, %833 : vector<6x1xi32>
    %c0_i32_204 = arith.constant 0 : i32
    %835 = vector.broadcast %c0_i32_204 : i32 to vector<6x1xi32>
    %836 = arith.select %834, %679, %835 : vector<6x1xi1>, vector<6x1xi32>
    %cst_205 = arith.constant dense<0> : vector<1xi32>
    %837 = vector.multi_reduction <add>, %836, %cst_205 [0] : vector<6x1xi32> to vector<1xi32>
    %838 = vector.shape_cast %837 : vector<1xi32> to vector<1x1xi32>
    %c0_i32_206 = arith.constant 0 : i32
    %839 = vector.broadcast %c0_i32_206 : i32 to vector<1x8xi32>
    %840 = arith.cmpi eq, %30, %839 : vector<1x8xi32>
    %841 = vector.shape_cast %838 : vector<1x1xi32> to vector<1x1xi32>
    %842 = vector.broadcast %841 : vector<1x1xi32> to vector<1x8xi32>
    %843 = arith.select %840, %842, %832 : vector<1x8xi1>, vector<1x8xi32>
    %c1_207 = arith.constant 1 : index
    %c0_208 = arith.constant 0 : index
    %844 = vector.load %arg9[%c1_207, %c0_208] : memref<2x8xi32, #tpu.memory_space<vmem>>, vector<1x8xi32>
    tpu.vector_store %arg9[%c1_207, %c0_208], %843 {strides = array<i32>} : memref<2x8xi32, #tpu.memory_space<vmem>>, vector<1x8xi32>,
    return
  }
}

</mosaic_0001>

<bundles_post_ra>
// kernel: tpu_custom_call.1
= control target key start
LH: loop header
LB: loop body
LE: loop exit
PB: predicated region body
PF: predicated region fallthrough
CT: control target
= control target key end

     0   :  { %s2500_s0 = inlined_call_operand.hbm [shape: s32[2,8], index: 0, kind: input, shape index: {}]   ;;  %s2501_s1 = inlined_call_operand.vmem [shape: f32[8,6], index: 1, kind: input, shape index: {}]   ;;  %s2502_s2 = inlined_call_operand.vmem [shape: f32[16,32], index: 2, kind: input, shape index: {}]   ;;  %s2503_s3 = inlined_call_operand.vmem [shape: f32[32,6], index: 3, kind: input, shape index: {}]   ;;  %s2504_s4 = inlined_call_operand.vmem [shape: f32[1,6], index: 4, kind: input, shape index: {}]   ;;  %s2505_s5 = inlined_call_operand.vmem [shape: f32[8,6], index: 5, kind: input, shape index: {}]   ;;  %s2506_s6 = inlined_call_operand.vmem [shape: f32[6,6], index: 6, kind: input, shape index: {}]   ;;  %s2507_s7 = inlined_call_operand.vmem [shape: f32[16,6], index: 7, kind: output, shape index: {0}]   ;;  %s2508_s8 = inlined_call_operand.vmem [shape: f32[2,1], index: 8, kind: output, shape index: {1}]   ;;  %s2509_s9 = inlined_call_operand.hbm [shape: s32[2,8], index: 9, kind: output, shape index: {2}]  }
   0x1   :  { %2511 = sst [smem:[#allocation11_spill]] %s2508_s8 }
   0x2   :  { %2512 = sst [smem:[#allocation12_spill]] %s2509_s9 }
   0x3   :  { %15 = vsyncpa [#allocation4], 0 }
   0x4   :  { %16 = vsyncpa [#allocation5], 0 }
   0x5   :  { %17 = vsyncpa [#allocation3], 0  ;;  %s23_s11 = sshll.u32 %s2500_s0, 4  ;;  %s32_s14 = sshll.u32 %s2501_s1, 4  ;;  %s24_s11 = int_to_ptr.hbm [resolvable:$true] %s23_s11  ;;  %s33_s14 = int_to_ptr.vmem [resolvable:$true] %s32_s14 }
   0x6   :  { %s1551_s15 = smov [#allocation2]   ;;  %s1552_s16 = smov [#allocation6]  }
   0x7   :  { %26 = dma.hbm_to_smem %s24_s11, 32, %s1551_s15, [#allocation4]  }
   0x8   :  { %35 = dma.vmem_to_smem %s33_s14, 128, %s1552_s16, [#allocation5]  }
   0x9   :  { %1545 = dma.done.wait [#allocation4], 32  }
   0xa   :  { %1546 = vsyncadd [#allocation4], 4294967264 }
   0xb   :  { %1547 = dma.done.wait [#allocation5], 128  }
   0xc   :  { %1548 = vsyncadd [#allocation5], 4294967168 }
   0xd   :  { %54 = sfence }
   0xe   :  { %v62_v0 = vld [vmem:[%s2503_s3 + $0x18] sm:$0xff]  ;;  %v61_v1 = vld [vmem:[%s2503_s3 + $0x10] sm:$0xff]  ;;  %v55_v2 = vld [vmem:[%s2502_s2] sm:$0xff]  ;;  %vm67_vm0 = vcmask 261120   ;;  %vm97_vm1 = vcmask 48128   ;;  %vm157_vm10 = vcmask 46080   ;;  %v150_v59 = vlaneseq }
   0xf   :  { %86 = vmatpush.msra.mxu0 %v62_v0  ;;  %1416 = vmatpush.msra.mxu1 %v62_v0  ;;  %v56_v3 = vld [vmem:[%s2502_s2 + $0x8] sm:$0xff]  ;;  %v59_v5 = vld [vmem:[%s2503_s3] sm:$0xff]  ;;  %v57_v6 = vmax.f32 %v55_v2, 0.0  ;;  %s2103_s13 = sld [smem:[#allocation2]] }
  0x10   :  { %v60_v4 = vld [vmem:[%s2503_s3 + $0x8] sm:$0xff]  ;;  %v58_v7 = vmax.f32 %v56_v3, 0.0  ;;  %v1423_v8 = vld [vmem:[%s2504_s4] ss:$0 sm:$0xff]  ;;  %v1666_v61 = vshrl.u32 %v150_v59, 7  ;;  %v1669_v63 = vand.u32 127, %v150_v59 }
  0x11   :  { %87 = vmatpush.msra.mxu0 %v61_v1  ;;  %1417 = vmatpush.msra.mxu1 %v61_v1  ;;  %v1640_v42 = vld [vmem:[%s2505_s5] sm:$0xff]  ;;  %s2109_s14 = sld [smem:[#allocation2 + $0x2]] }
  0x12   :  { %v1652_v49 = vld [vmem:[%s2506_s6] sm:$0x3f]  ;;  %vm1674_vm11 = vcmp.eq.s32.totalorder %v1666_v61, %v1669_v63  ;;  %s2111_s15 = sld [smem:[#allocation2 + $0x3]] }
  0x13   :  { %88 = vmatpush.msra.mxu0 %v60_v4  ;;  %1418 = vmatpush.msra.mxu1 %v60_v4  ;;  %s2114_s16 = sld [smem:[#allocation2 + $0x4]] }
  0x14   :  { %s2117_s17 = sld [smem:[#allocation2 + $0x81]] }
  0x15   :  { %89 = vmatpush.msra.mxu0 %v59_v5  ;;  %1419 = vmatpush.msra.mxu1 %v59_v5  ;;  %s2120_s18 = sld [smem:[#allocation2 + $0x5]]  ;;  %s189_s26 = sshra.s32 %s2103_s13, 7 }
  0x16   :  { %1373 = vmatmul.msk.f32.vlgmr.msra.gmra.mxu0 %vm67_vm0, %v57_v6  ;;  %1374 = vmatmul.msk.f32.vlgmr.msra.gmra.mxu1 %vm67_vm0, %v58_v7  ;;  %s2122_s0 = sld [smem:[#allocation2 + $0x6]]  ;;  %s1408_s3 = sshll.u32 %s189_s26, 7 }
  0x17   :  { %s2133_s19 = sld [smem:[#allocation2 + $0x80]]  ;;  %s209_s27 = sshra.s32 %s2109_s14, 7 }
  0x18   :  { %s2144_s1 = sld [smem:[#allocation2 + $0x82]]  ;;  %s1409_s29 = sadd.s32 768, %s1408_s3 }
  0x19   :  { %s2169_s20 = sld [smem:[#allocation2 + $0x83]]  ;;  %s194_s30 = sand.u32 127, %s2103_s13 }
  0x1a   :  { %s2202_s21 = sld [smem:[#allocation2 + $0x84]]  ;;  %s195_s12 = sadd.s32 %s1409_s29, %s194_s30 }
  0x1b   :  { %s2211_s22 = sld [smem:[#allocation2 + $0x85]]  ;;  %s219_s9 = sshra.s32 %s2111_s15, 7 }
  0x1c   :  { %s2231_s23 = sld [smem:[#allocation2 + $0x7]]  ;;  %s239_s3 = sshra.s32 %s2120_s18, 7 }
  0x1d   :  { %s2268_s24 = sld [smem:[#allocation2 + $0x86]]  ;;  %s241_s30 = sadd.s32 %s2114_s16, %s239_s3 }
  0x1e   :  { %s2285_s25 = sld [smem:[#allocation2 + $0x87]] }
  0x93   :  { %v91_v9 = vpop.f32.mrf.mxu0  ;;  %v94_v11 = vpop.f32.mrf.mxu1 }
  0x94   :  { %v92_v10 = vadd.f32 %v1423_v8, %v91_v9  ;;  %v95_v13 = vadd.f32 %v1423_v8, %v94_v11 }
  0x96   :  { %v98_v12 = vsel %vm97_vm1, %v92_v10, -inf  ;;  %v101_v14 = vsel %vm97_vm1, %v95_v13, -inf }
  0x97   :  { %99 = vmax.xlane.f32.xlu0 %v98_v12 }
  0x9f   :  { %102 = vmax.xlane.f32.xlu0 %v101_v14 }
 0x10a   :  { %v100_v15 = vpop.xlane.xlu0 %99 }
 0x10b   :  { %v104_v16 = vsub.f32 %v92_v10, %v100_v15 }
 0x10d   :  { %v106_v17 = vmul.f32 1.442695, %v104_v16 }
 0x10f   :  { %1424 = vpow2.f32 %v106_v17 }
 0x112   :  { %v103_v18 = vpop.xlane.xlu0 %102 }
 0x113   :  { %v105_v19 = vsub.f32 %v95_v13, %v103_v18 }
 0x115   :  { %v1425_v20 = vpop.eup %1424  ;;  %v108_v21 = vmul.f32 1.442695, %v105_v19 }
 0x116   :  { %v110_v22 = vsel %vm97_vm1, %v1425_v20, 0.0 }
 0x117   :  { %1426 = vpow2.f32 %v108_v21  ;;  %111 = vadd.xlane.f32.xlu1 %v110_v22 }
 0x11d   :  { %v1427_v23 = vpop.eup %1426 }
 0x11e   :  { %v113_v24 = vsel %vm97_vm1, %v1427_v23, 0.0 }
 0x11f   :  { %114 = vadd.xlane.f32.xlu1 %v113_v24 }
 0x18a   :  { %v112_v25 = vpop.xlane.xlu1 %111 }
 0x18b   :  { %1428 = vrcp.f32 %v112_v25  ;;  %v127_v30 = vand.u32 2147483648, %v112_v25  ;;  %v125_v32 = vand.u32 2147483647, %v112_v25  ;;  %vm121_vm3 = vweird.f32 %v112_v25 }
 0x18d   :  { %v128_v35 = vor.u32 1.1754944e-38, %v127_v30  ;;  %vm126_vm5 = vcmp.eq.f32.partialorder %v125_v32, 8.507059e+37 }
 0x191   :  { %v1429_v26 = vpop.eup %1428 }
 0x192   :  { %v117_v27 = vmul.f32 %v1429_v26, %v112_v25  ;;  %v115_v28 = vpop.xlane.xlu1 %114  ;;  %vm122_vm2 = vweird.f32 %v1429_v26 }
 0x193   :  { %1430 = vrcp.f32 %v115_v28  ;;  %vm123_vm4 = vmor %vm121_vm3, %vm122_vm2  ;;  %v142_v41 = vand.u32 2147483648, %v115_v28  ;;  %v140_v44 = vand.u32 2147483647, %v115_v28  ;;  %vm136_vm7 = vweird.f32 %v115_v28 }
 0x194   :  { %v118_v29 = vsub.f32 1.0, %v117_v27 }
 0x195   :  { %v143_v48 = vor.u32 1.1754944e-38, %v142_v41  ;;  %vm141_vm9 = vcmp.eq.f32.partialorder %v140_v44, 8.507059e+37 }
 0x196   :  { %v119_v31 = vmul.f32 %v1429_v26, %v118_v29 }
 0x198   :  { %v120_v33 = vadd.f32 %v1429_v26, %v119_v31 }
 0x199   :  { %v1431_v34 = vpop.eup %1430 }
 0x19a   :  { %v124_v36 = vsel %vm123_vm4, %v1429_v26, %v120_v33  ;;  %v132_v37 = vmul.f32 %v1431_v34, %v115_v28  ;;  %vm137_vm6 = vweird.f32 %v1431_v34 }
 0x19b   :  { %v129_v38 = vsel %vm126_vm5, %v128_v35, %v124_v36  ;;  %vm138_vm8 = vmor %vm136_vm7, %vm137_vm6 }
 0x19c   :  { %v1635_v39 = vmul.f32 %v1425_v20, %v129_v38  ;;  %v133_v40 = vsub.f32 1.0, %v132_v37 }
 0x19e   :  { %146 = vst.msk [vmem:[%s2507_s7] sm:$0xff] %vm97_vm1, %v1635_v39  ;;  %v134_v43 = vmul.f32 %v1431_v34, %v133_v40  ;;  %v334_v45 = vrot.slane %v1635_v39, 2  ;;  %v161_v0 = vperm.slane %v1635_v39, 1  ;;  %v166_v18 = vperm.slane %v1635_v39, 3 }
 0x1a0   :  { %v135_v46 = vadd.f32 %v1431_v34, %v134_v43  ;;  %v336_v47 = vadd.f32 %v334_v45, %v1640_v42  ;;  %v162_v2 = vsel %vm1674_vm11, %v161_v0, 0.0  ;;  %v167_v20 = vsel %vm1674_vm11, %v166_v18, 0.0 }
 0x1a1   :  { %v163_v3 = vsel %vm157_vm10, %v162_v2, 0.0  ;;  %v168_v22 = vsel %vm157_vm10, %v167_v20, 0.0  ;;  %v510_v43 = vperm.slane %v1635_v39, 2 }
 0x1a2   :  { %v139_v50 = vsel %vm138_vm8, %v1431_v34, %v135_v46  ;;  %v337_v51 = vperm.slane %v336_v47, 6  ;;  %vm464_vm8 = vcmask 1045504  }
 0x1a3   :  { %v144_v52 = vsel %vm141_vm9, %v143_v48, %v139_v50 }
 0x1a4   :  { %v1654_v53 = vmul.f32 %v1427_v23, %v144_v52  ;;  %v338_v54 = vadd.f32 %v337_v51, %v1652_v49 }
 0x1a6   :  { %147 = vst.msk [vmem:[%s2507_s7 + $0x8] sm:$0xff] %vm97_vm1, %v1654_v53  ;;  %v339_v55 = vsel %vm157_vm10, %v338_v54, -inf  ;;  %v932_v56 = vrot.slane %v1654_v53, 2  ;;  %v760_v12 = vperm.slane %v1654_v53, 1  ;;  %v765_v23 = vperm.slane %v1654_v53, 3  ;;  %s214_s7 = sand.u32 127, %s2109_s14 }
 0x1a7   :  { %340 = vmax.xlane.f32.xlu2 %v339_v55  ;;  %v770_v18 = vperm.slane %v1654_v53, 5 }
 0x1a8   :  { %v934_v57 = vadd.f32 %v932_v56, %v1640_v42  ;;  %v761_v13 = vsel %vm1674_vm11, %v760_v12, 0.0  ;;  %v766_v24 = vsel %vm1674_vm11, %v765_v23, 0.0 }
 0x1a9   :  { %v762_v16 = vsel %vm157_vm10, %v761_v13, 0.0  ;;  %v767_v25 = vsel %vm157_vm10, %v766_v24, 0.0 }
 0x1aa   :  { %v935_v58 = vperm.slane %v934_v57, 6 }
 0x1ac   :  { %v936_v60 = vadd.f32 %v935_v58, %v1652_v49 }
 0x1ae   :  { %v937_v62 = vsel %vm157_vm10, %v936_v60, -inf }
 0x1af   :  { %938 = vmax.xlane.f32.xlu2 %v937_v62 }
 0x1b7   :  { %164 = vadd.xlane.f32.xlu2 %v163_v3 }
 0x21a   :  { %v341_v4 = vpop.xlane.xlu2 %340 }
 0x21b   :  { %v342_v5 = vsub.f32 %v338_v54, %v341_v4 }
 0x21d   :  { %v343_v6 = vmul.f32 1.442695, %v342_v5 }
 0x21f   :  { %1432 = vpow2.f32 %v343_v6 }
 0x222   :  { %v939_v7 = vpop.xlane.xlu2 %938 }
 0x223   :  { %v940_v8 = vsub.f32 %v936_v60, %v939_v7 }
 0x225   :  { %v1433_v9 = vpop.eup %1432  ;;  %v941_v10 = vmul.f32 1.442695, %v940_v8 }
 0x226   :  { %v345_v11 = vsel %vm157_vm10, %v1433_v9, 0.0 }
 0x227   :  { %1434 = vpow2.f32 %v941_v10  ;;  %346 = vadd.xlane.f32.xlu0 %v345_v11 }
 0x22a   :  { %v165_v17 = vpop.xlane.xlu2 %164 }
 0x22b   :  { %v1688_v19 = vadd.f32 %v338_v54, %v165_v17 }
 0x22d   :  { %v1435_v14 = vpop.eup %1434  ;;  %v489_v21 = vsel %vm157_vm10, %v1688_v19, -inf }
 0x22e   :  { %v943_v15 = vsel %vm157_vm10, %v1435_v14, 0.0 }
 0x22f   :  { %944 = vadd.xlane.f32.xlu1 %v943_v15  ;;  %763 = vadd.xlane.f32.xlu0 %v762_v16 }
 0x237   :  { %490 = vmax.xlane.f32.xlu1 %v489_v21  ;;  %169 = vadd.xlane.f32.xlu0 %v168_v22  ;;  %v771_v22 = vsel %vm1674_vm11, %v770_v18, 0.0 }
 0x23f   :  { %768 = vadd.xlane.f32.xlu1 %v767_v25  ;;  %v772_v25 = vsel %vm157_vm10, %v771_v22, 0.0 }
 0x29a   :  { %v347_v26 = vpop.xlane.xlu0 %346 }
 0x29b   :  { %1436 = vlog2.f32 %v347_v26 }
 0x2a1   :  { %v1437_v27 = vpop.eup %1436 }
 0x2a2   :  { %v349_v28 = vmul.f32 0.6931472, %v1437_v27  ;;  %v945_v29 = vpop.xlane.xlu1 %944  ;;  %v764_v30 = vpop.xlane.xlu0 %763 }
 0x2a3   :  { %1438 = vlog2.f32 %v945_v29  ;;  %v1699_v31 = vadd.f32 %v936_v60, %v764_v30 }
 0x2a4   :  { %v350_v32 = vadd.f32 %v349_v28, %v341_v4 }
 0x2a5   :  { %v1085_v33 = vsel %vm157_vm10, %v1699_v31, -inf }
 0x2a6   :  { %v351_v34 = vadd.f32 %v350_v32, %v165_v17  ;;  %1086 = vmax.xlane.f32.xlu2 %v1085_v33 }
 0x2a8   :  { %v352_v35 = vadd.f32 %v351_v34, %v1640_v42 }
 0x2a9   :  { %v1439_v36 = vpop.eup %1438 }
 0x2aa   :  { %v353_v37 = vsel %vm157_vm10, %v352_v35, -inf  ;;  %v947_v38 = vmul.f32 0.6931472, %v1439_v36  ;;  %v1705_v40 = vpop.xlane.xlu1 %490  ;;  %v1722_v12 = vpop.xlane.xlu0 %169 }
 0x2ab   :  { %v354_v41 = vrot.slane %v353_v37, 4  ;;  %v509_v44 = vadd.f32 %v1705_v40, %v1640_v42 }
 0x2ac   :  { %v948_v45 = vadd.f32 %v947_v38, %v939_v7 }
 0x2ad   :  { %v355_v46 = vmax.f32 %v353_v37, %v354_v41  ;;  %v1710_v47 = vadd.f32 %v510_v43, %v509_v44 }
 0x2ae   :  { %v949_v48 = vadd.f32 %v948_v45, %v764_v30 }
 0x2af   :  { %v512_v50 = vsel %vm157_vm10, %v1710_v47, -inf  ;;  %v356_v51 = vrot.slane %v355_v46, 2 }
 0x2b0   :  { %v950_v52 = vadd.f32 %v949_v48, %v1640_v42  ;;  %v513_v54 = vrot.slane %v512_v50, 4 }
 0x2b1   :  { %v357_v55 = vmax.f32 %v355_v46, %v356_v51 }
 0x2b2   :  { %v951_v56 = vsel %vm157_vm10, %v950_v52, -inf  ;;  %v514_v57 = vmax.f32 %v512_v50, %v513_v54 }
 0x2b3   :  { %v952_v58 = vrot.slane %v951_v56, 4  ;;  %v358_v59 = vrot.slane %v357_v55, 1 }
 0x2b4   :  { %v515_v60 = vrot.slane %v514_v57, 2 }
 0x2b5   :  { %v953_v62 = vmax.f32 %v951_v56, %v952_v58  ;;  %v359_v0 = vmax.f32 %v357_v55, %v358_v59  ;;  %v171_v58 = vperm.slane %v1635_v39, 5 }
 0x2b6   :  { %v516_v2 = vmax.f32 %v514_v57, %v515_v60 }
 0x2b7   :  { %v954_v3 = vrot.slane %v953_v62, 2  ;;  %v360_v4 = vsub.f32 %v352_v35, %v359_v0  ;;  %v172_v59 = vsel %vm1674_vm11, %v171_v58, 0.0  ;;  %v1150_v58 = vperm.slane %v1654_v53, 4 }
 0x2b8   :  { %v517_v5 = vrot.slane %v516_v2, 1  ;;  %v173_v60 = vsel %vm157_vm10, %v172_v59, 0.0 }
 0x2b9   :  { %v955_v6 = vmax.f32 %v953_v62, %v954_v3  ;;  %v361_v7 = vmul.f32 1.442695, %v360_v4 }
 0x2ba   :  { %v1716_v8 = vmax.f32 %v516_v2, %v517_v5 }
 0x2bb   :  { %v956_v9 = vrot.slane %v955_v6, 1  ;;  %1440 = vpow2.f32 %v361_v7 }
 0x2bc   :  { %vm519_vm12 = vcmp.eq.f32.partialorder %v1710_v47, %v1716_v8  ;;  %v531_v10 = vadd.f32 %v1716_v8, %v1652_v49 }
 0x2bd   :  { %v957_v11 = vmax.f32 %v955_v6, %v956_v9 }
 0x2be   :  { %v1725_v13 = vadd.f32 %v531_v10, %v1722_v12 }
 0x2bf   :  { %v958_v14 = vsub.f32 %v950_v52, %v957_v11 }
 0x2c0   :  { %v533_v15 = vsel %vm157_vm10, %v1725_v13, -inf }
 0x2c1   :  { %v1441_v16 = vpop.eup %1440  ;;  %v959_v17 = vmul.f32 1.442695, %v958_v14  ;;  %534 = vmax.xlane.f32.xlu1 %v533_v15  ;;  %v1760_v15 = vpop.xlane.xlu1 %768 }
 0x2c2   :  { %v363_v20 = vsel %vm157_vm10, %v1441_v16, 0.0 }
 0x2c3   :  { %1442 = vpow2.f32 %v959_v17  ;;  %v364_v21 = vrot.slane %v363_v20, 4 }
 0x2c5   :  { %v365_v23 = vadd.f32 %v364_v21, %v363_v20  ;;  %v554_v20 = vperm.slane %v1635_v39, 4 }
 0x2c7   :  { %v366_v24 = vrot.slane %v365_v23, 2 }
 0x2c9   :  { %v1443_v26 = vpop.eup %1442  ;;  %773 = vadd.xlane.f32.xlu1 %v772_v25  ;;  %v367_v27 = vadd.f32 %v366_v24, %v365_v23 }
 0x2ca   :  { %v961_v28 = vsel %vm157_vm10, %v1443_v26, 0.0 }
 0x2cb   :  { %v962_v29 = vrot.slane %v961_v28, 4  ;;  %v368_v30 = vrot.slane %v367_v27, 1 }
 0x2cd   :  { %v963_v32 = vadd.f32 %v962_v29, %v961_v28  ;;  %v369_v33 = vadd.f32 %v368_v30, %v367_v27 }
 0x2cf   :  { %1444 = vlog2.f32 %v369_v33  ;;  %v964_v34 = vrot.slane %v963_v32, 2 }
 0x2d1   :  { %v965_v35 = vadd.f32 %v964_v34, %v963_v32 }
 0x2d3   :  { %v966_v36 = vrot.slane %v965_v35, 1 }
 0x2d5   :  { %v1445_v37 = vpop.eup %1444  ;;  %v967_v38 = vadd.f32 %v966_v36, %v965_v35 }
 0x2d6   :  { %v371_v41 = vmul.f32 0.6931472, %v1445_v37 }
 0x2d7   :  { %1446 = vlog2.f32 %v967_v38 }
 0x2d8   :  { %v372_v43 = vadd.f32 %v371_v41, %v359_v0  ;;  %v1106_v0 = vperm.slane %v1654_v53, 2 }
 0x2da   :  { %v373_v44 = vadd.f32 %v372_v43, %v1635_v39 }
 0x2dc   :  { %v374_v45 = vperm.slane %v373_v44, 2 }
 0x2dd   :  { %v1447_v46 = vpop.eup %1446 }
 0x2de   :  { %v375_v48 = vadd.f32 %v374_v45, %v1652_v49  ;;  %v969_v50 = vmul.f32 0.6931472, %v1447_v46 }
 0x2e0   :  { %v376_v51 = vsel %vm157_vm10, %v375_v48, -inf  ;;  %v970_v52 = vadd.f32 %v969_v50, %v957_v11  ;;  %v775_v50 = vperm.slane %v1654_v53, 7 }
 0x2e1   :  { %377 = vmax.xlane.f32.xlu2 %v376_v51  ;;  %v176_v51 = vperm.slane %v1635_v39, 7 }
 0x2e2   :  { %v971_v54 = vadd.f32 %v970_v52, %v1654_v53  ;;  %v776_v52 = vsel %vm1674_vm11, %v775_v50, 0.0 }
 0x2e4   :  { %v972_v55 = vperm.slane %v971_v54, 2  ;;  %v177_v54 = vsel %vm1674_vm11, %v176_v51, 0.0 }
 0x2e6   :  { %v973_v56 = vadd.f32 %v972_v55, %v1652_v49  ;;  %v777_v55 = vsel %vm157_vm10, %v776_v52, 0.0 }
 0x2e8   :  { %v974_v57 = vsel %vm157_vm10, %v973_v56, -inf }
 0x2e9   :  { %975 = vmax.xlane.f32.xlu0 %v974_v57 }
 0x2f1   :  { %174 = vadd.xlane.f32.xlu0 %v173_v60 }
 0x319   :  { %v1745_v62 = vpop.xlane.xlu2 %1086 }
 0x31a   :  { %v1105_v2 = vadd.f32 %v1745_v62, %v1640_v42 }
 0x31c   :  { %v1750_v3 = vadd.f32 %v1106_v0, %v1105_v2 }
 0x31e   :  { %v1108_v4 = vsel %vm157_vm10, %v1750_v3, -inf }
 0x31f   :  { %v1109_v5 = vrot.slane %v1108_v4, 4 }
 0x321   :  { %v1110_v6 = vmax.f32 %v1108_v4, %v1109_v5 }
 0x323   :  { %v1111_v7 = vrot.slane %v1110_v6, 2 }
 0x325   :  { %v1112_v9 = vmax.f32 %v1110_v6, %v1111_v7 }
 0x327   :  { %v1113_v10 = vrot.slane %v1112_v9, 1 }
 0x329   :  { %v1754_v11 = vmax.f32 %v1112_v9, %v1113_v10 }
 0x32b   :  { %vm1115_vm13 = vcmp.eq.f32.partialorder %v1750_v3, %v1754_v11  ;;  %v1127_v14 = vadd.f32 %v1754_v11, %v1652_v49 }
 0x32d   :  { %v1763_v16 = vadd.f32 %v1127_v14, %v1760_v15 }
 0x32f   :  { %v1129_v17 = vsel %vm157_vm10, %v1763_v16, -inf }
 0x330   :  { %1130 = vmax.xlane.f32.xlu2 %v1129_v17 }
 0x334   :  { %v1767_v18 = vpop.xlane.xlu1 %534 }
 0x335   :  { %v553_v21 = vadd.f32 %v1767_v18, %v1640_v42 }
 0x337   :  { %v1772_v22 = vadd.f32 %v554_v20, %v553_v21 }
 0x339   :  { %v556_v23 = vsel %vm157_vm10, %v1772_v22, -inf }
 0x33a   :  { %v557_v24 = vrot.slane %v556_v23, 4 }
 0x33c   :  { %v558_v25 = vmax.f32 %v556_v23, %v557_v24  ;;  %v1814_v14 = vpop.xlane.xlu1 %773 }
 0x33e   :  { %v559_v26 = vrot.slane %v558_v25, 2 }
 0x340   :  { %v560_v27 = vmax.f32 %v558_v25, %v559_v26  ;;  %v598_v26 = vperm.slane %v1635_v39, 6 }
 0x342   :  { %v561_v28 = vrot.slane %v560_v27, 1 }
 0x344   :  { %v1776_v29 = vmax.f32 %v560_v27, %v561_v28 }
 0x346   :  { %vm563_vm14 = vcmp.eq.f32.partialorder %v1772_v22, %v1776_v29  ;;  %v575_v41 = vadd.f32 %v1776_v29, %v1652_v49 }
 0x354   :  { %v378_v30 = vpop.xlane.xlu2 %377 }
 0x355   :  { %v379_v32 = vsub.f32 %v375_v48, %v378_v30 }
 0x357   :  { %v380_v33 = vmul.f32 1.442695, %v379_v32 }
 0x359   :  { %1448 = vpow2.f32 %v380_v33 }
 0x35c   :  { %v976_v34 = vpop.xlane.xlu0 %975 }
 0x35d   :  { %v977_v35 = vsub.f32 %v973_v56, %v976_v34  ;;  %v178_v56 = vsel %vm157_vm10, %v177_v54, 0.0 }
 0x35f   :  { %v1449_v36 = vpop.eup %1448  ;;  %v978_v37 = vmul.f32 1.442695, %v977_v35 }
 0x360   :  { %v382_v38 = vsel %vm157_vm10, %v1449_v36, 0.0 }
 0x361   :  { %1450 = vpow2.f32 %v978_v37  ;;  %383 = vadd.xlane.f32.xlu2 %v382_v38 }
 0x364   :  { %v1783_v43 = vpop.xlane.xlu0 %174 }
 0x365   :  { %v1786_v44 = vadd.f32 %v575_v41, %v1783_v43 }
 0x367   :  { %v1451_v45 = vpop.eup %1450  ;;  %v577_v46 = vsel %vm157_vm10, %v1786_v44, -inf }
 0x368   :  { %578 = vmax.xlane.f32.xlu1 %v577_v46  ;;  %v980_v48 = vsel %vm157_vm10, %v1451_v45, 0.0 }
 0x369   :  { %981 = vadd.xlane.f32.xlu0 %v980_v48 }
 0x370   :  { %778 = vadd.xlane.f32.xlu1 %v777_v55 }
 0x371   :  { %179 = vadd.xlane.f32.xlu0 %v178_v56 }
 0x3a3   :  { %v1799_v57 = vpop.xlane.xlu2 %1130 }
 0x3a4   :  { %v1149_v59 = vadd.f32 %v1799_v57, %v1640_v42 }
 0x3a6   :  { %v1804_v60 = vadd.f32 %v1150_v58, %v1149_v59 }
 0x3a8   :  { %v1152_v0 = vsel %vm157_vm10, %v1804_v60, -inf }
 0x3a9   :  { %v1153_v2 = vrot.slane %v1152_v0, 4 }
 0x3ab   :  { %v1154_v4 = vmax.f32 %v1152_v0, %v1153_v2 }
 0x3ad   :  { %v1155_v5 = vrot.slane %v1154_v4, 2 }
 0x3af   :  { %v1156_v6 = vmax.f32 %v1154_v4, %v1155_v5 }
 0x3b1   :  { %v1157_v7 = vrot.slane %v1156_v6, 1 }
 0x3b3   :  { %v1808_v9 = vmax.f32 %v1156_v6, %v1157_v7 }
 0x3b5   :  { %vm1159_vm15 = vcmp.eq.f32.partialorder %v1804_v60, %v1808_v9  ;;  %v1171_v10 = vadd.f32 %v1808_v9, %v1652_v49 }
 0x3b7   :  { %v1817_v17 = vadd.f32 %v1171_v10, %v1814_v14 }
 0x3b9   :  { %v1173_v20 = vsel %vm157_vm10, %v1817_v17, -inf }
 0x3ba   :  { %1174 = vmax.xlane.f32.xlu2 %v1173_v20 }
 0x3d4   :  { %v384_v21 = vpop.xlane.xlu2 %383 }
 0x3d5   :  { %1452 = vlog2.f32 %v384_v21 }
 0x3db   :  { %v1453_v23 = vpop.eup %1452  ;;  %v1821_v24 = vpop.xlane.xlu1 %578 }
 0x3dc   :  { %v386_v25 = vmul.f32 0.6931472, %v1453_v23  ;;  %v597_v27 = vadd.f32 %v1821_v24, %v1640_v42  ;;  %v982_v28 = vpop.xlane.xlu0 %981  ;;  %vm580_vm5 = vcmp.eq.f32.partialorder %v1786_v44, %v1821_v24 }
 0x3dd   :  { %1454 = vlog2.f32 %v982_v28 }
 0x3de   :  { %v387_v32 = vadd.f32 %v386_v25, %v378_v30  ;;  %v1826_v33 = vadd.f32 %v598_v26, %v597_v27 }
 0x3e0   :  { %v388_v35 = vadd.f32 %v387_v32, %v1722_v12  ;;  %v600_v36 = vsel %vm157_vm10, %v1826_v33, -inf }
 0x3e1   :  { %v601_v37 = vrot.slane %v600_v36, 4 }
 0x3e2   :  { %v389_v38 = vadd.f32 %v388_v35, %v1640_v42 }
 0x3e3   :  { %v1455_v41 = vpop.eup %1454  ;;  %v602_v45 = vmax.f32 %v600_v36, %v601_v37 }
 0x3e4   :  { %v390_v46 = vsel %vm157_vm10, %v389_v38, -inf  ;;  %v984_v48 = vmul.f32 0.6931472, %v1455_v41  ;;  %v1842_v6 = vpop.xlane.xlu0 %179 }
 0x3e5   :  { %v391_v50 = vrot.slane %v390_v46, 4  ;;  %v603_v51 = vrot.slane %v602_v45, 2 }
 0x3e6   :  { %v985_v52 = vadd.f32 %v984_v48, %v976_v34 }
 0x3e7   :  { %v392_v54 = vmax.f32 %v390_v46, %v391_v50  ;;  %v604_v30 = vmax.f32 %v602_v45, %v603_v51 }
 0x3e8   :  { %v986_v55 = vadd.f32 %v985_v52, %v1760_v15 }
 0x3e9   :  { %v605_v56 = vrot.slane %v604_v30, 1  ;;  %v393_v12 = vrot.slane %v392_v54, 2 }
 0x3ea   :  { %v987_v58 = vadd.f32 %v986_v55, %v1640_v42 }
 0x3eb   :  { %v1835_v59 = vmax.f32 %v604_v30, %v605_v56  ;;  %v394_v0 = vmax.f32 %v392_v54, %v393_v12 }
 0x3ec   :  { %v988_v2 = vsel %vm157_vm10, %v987_v58, -inf }
 0x3ed   :  { %vm607_vm0 = vcmp.eq.f32.partialorder %v1826_v33, %v1835_v59  ;;  %v989_v4 = vrot.slane %v988_v2, 4  ;;  %v619_v34 = vadd.f32 %v1835_v59, %v1652_v49  ;;  %v395_v5 = vrot.slane %v394_v0, 1 }
 0x3ef   :  { %v990_v15 = vmax.f32 %v988_v2, %v989_v4  ;;  %v1845_v7 = vadd.f32 %v619_v34, %v1842_v6  ;;  %v396_v10 = vmax.f32 %v394_v0, %v395_v5 }
 0x3f1   :  { %v621_v20 = vsel %vm157_vm10, %v1845_v7, -inf  ;;  %v397_v21 = vsub.f32 %v389_v38, %v396_v10  ;;  %v991_v23 = vrot.slane %v990_v15, 2 }
 0x3f2   :  { %622 = vmax.xlane.f32.xlu2 %v621_v20 }
 0x3f3   :  { %v398_v25 = vmul.f32 1.442695, %v397_v21  ;;  %v992_v26 = vmax.f32 %v990_v15, %v991_v23 }
 0x3f5   :  { %1456 = vpow2.f32 %v398_v25  ;;  %v993_v27 = vrot.slane %v992_v26, 1 }
 0x3f7   :  { %v994_v28 = vmax.f32 %v992_v26, %v993_v27 }
 0x3f9   :  { %v995_v32 = vsub.f32 %v987_v58, %v994_v28 }
 0x3fb   :  { %v1457_v35 = vpop.eup %1456  ;;  %v996_v36 = vmul.f32 1.442695, %v995_v32 }
 0x3fc   :  { %v400_v37 = vsel %vm157_vm10, %v1457_v35, 0.0  ;;  %v155_v35 = vperm.slane %v1640_v42, 7 }
 0x3fd   :  { %v401_v41 = vrot.slane %v400_v37, 4  ;;  %1458 = vpow2.f32 %v996_v36 }
 0x3fe   :  { %v156_v36 = vsel %vm1674_vm11, %v155_v35, 0.0 }
 0x3ff   :  { %v402_v45 = vadd.f32 %v401_v41, %v400_v37  ;;  %v158_v37 = vsel %vm157_vm10, %v156_v36, 0.0 }
 0x401   :  { %v403_v46 = vrot.slane %v402_v45, 2 }
 0x403   :  { %v1459_v48 = vpop.eup %1458  ;;  %v404_v50 = vadd.f32 %v403_v46, %v402_v45 }
 0x404   :  { %v998_v38 = vsel %vm157_vm10, %v1459_v48, 0.0 }
 0x405   :  { %v405_v51 = vrot.slane %v404_v50, 1  ;;  %v999_v52 = vrot.slane %v998_v38, 4 }
 0x407   :  { %v406_v54 = vadd.f32 %v405_v51, %v404_v50  ;;  %v1000_v30 = vadd.f32 %v999_v52, %v998_v38 }
 0x409   :  { %1460 = vlog2.f32 %v406_v54  ;;  %v1001_v55 = vrot.slane %v1000_v30, 2 }
 0x40b   :  { %v1002_v56 = vadd.f32 %v1001_v55, %v1000_v30  ;;  %v1873_v55 = vpop.xlane.xlu1 %778 }
 0x40d   :  { %v1003_v12 = vrot.slane %v1002_v56, 1 }
 0x40f   :  { %v1461_v58 = vpop.eup %1460  ;;  %v1004_v0 = vadd.f32 %v1003_v12, %v1002_v56 }
 0x410   :  { %v408_v2 = vmul.f32 0.6931472, %v1461_v58 }
 0x411   :  { %1462 = vlog2.f32 %v1004_v0 }
 0x412   :  { %v409_v4 = vadd.f32 %v408_v2, %v396_v10 }
 0x414   :  { %v410_v34 = vadd.f32 %v409_v4, %v1635_v39 }
 0x416   :  { %v411_v5 = vperm.slane %v410_v34, 4 }
 0x417   :  { %v1463_v15 = vpop.eup %1462 }
 0x418   :  { %v412_v20 = vadd.f32 %v411_v5, %v1652_v49  ;;  %v1006_v21 = vmul.f32 0.6931472, %v1463_v15 }
 0x41a   :  { %v413_v23 = vsel %vm157_vm10, %v412_v20, -inf  ;;  %v1007_v25 = vadd.f32 %v1006_v21, %v994_v28  ;;  %v1194_v28 = vperm.slane %v1654_v53, 6 }
 0x41b   :  { %414 = vmax.xlane.f32.xlu1 %v413_v23 }
 0x41c   :  { %v1008_v26 = vadd.f32 %v1007_v25, %v1654_v53 }
 0x41e   :  { %v1009_v27 = vperm.slane %v1008_v26, 4 }
 0x420   :  { %v1010_v32 = vadd.f32 %v1009_v27, %v1652_v49 }
 0x422   :  { %v1011_v10 = vsel %vm157_vm10, %v1010_v32, -inf }
 0x423   :  { %1012 = vmax.xlane.f32.xlu2 %v1011_v10 }
 0x42b   :  { %159 = vadd.xlane.f32.xlu2 %v158_v37 }
 0x42d   :  { %v1175_v41 = vpop.xlane.xlu2 %1174 }
 0x42e   :  { %v1193_v45 = vadd.f32 %v1175_v41, %v1640_v42  ;;  %vm1176_vm6 = vcmp.eq.f32.partialorder %v1817_v17, %v1175_v41 }
 0x42f   :  { %v1177_v44 = vsel %vm1176_vm6, %v1669_v63, 6 }
 0x430   :  { %v1863_v46 = vadd.f32 %v1194_v28, %v1193_v45  ;;  %v581_v45 = vsel %vm580_vm5, %v1669_v63, 6 }
 0x432   :  { %v1196_v48 = vsel %vm157_vm10, %v1863_v46, -inf }
 0x433   :  { %v1197_v50 = vrot.slane %v1196_v48, 4 }
 0x435   :  { %v1198_v38 = vmax.f32 %v1196_v48, %v1197_v50  ;;  %v1894_v48 = vsel %vm157_vm10, %v581_v45, 2147483647 }
 0x436   :  { %v584_v50 = vshra.s32 %v1894_v48, 16 }
 0x437   :  { %v1199_v51 = vrot.slane %v1198_v38, 2 }
 0x439   :  { %v1200_v52 = vmax.f32 %v1198_v38, %v1199_v51  ;;  %v1897_v38 = vcvt.s32.f32 %v584_v50 }
 0x43b   :  { %v1201_v54 = vrot.slane %v1200_v52, 1 }
 0x43d   :  { %v1867_v1 = vmax.f32 %v1200_v52, %v1201_v54 }
 0x43f   :  { %vm1203_vm2 = vcmp.eq.f32.partialorder %v1863_v46, %v1867_v1  ;;  %v1215_v30 = vadd.f32 %v1867_v1, %v1652_v49 }
 0x441   :  { %v1216_v56 = vadd.f32 %v1215_v30, %v1873_v55  ;;  %v1906_v30 = vsel %vm157_vm10, %v1177_v44, 2147483647 }
 0x443   :  { %v1217_v12 = vsel %vm157_vm10, %v1216_v56, -inf }
 0x444   :  { %1218 = vmax.xlane.f32.xlu0 %v1217_v12 }
 0x465   :  { %v623_v58 = vpop.xlane.xlu2 %622 }
 0x466   :  { %vm624_vm3 = vcmp.eq.f32.partialorder %v1845_v7, %v623_v58 }
 0x467   :  { %v625_v0 = vsel %vm624_vm3, %v1669_v63, 6 }
 0x468   :  { %v626_v2 = vsel %vm157_vm10, %v625_v0, 2147483647 }
 0x469   :  { %v628_v4 = vshra.s32 %v626_v2, 16  ;;  %v627_v51 = vand.u32 65535, %v626_v2 }
 0x46b   :  { %v630_v34 = vcvt.s32.f32 %v628_v4  ;;  %v629_v52 = vcvt.s32.f32 %v627_v51 }
 0x46d   :  { %631 = vmin.xlane.f32.xlu0 %v630_v34 }
 0x48e   :  { %v415_v5 = vpop.xlane.xlu1 %414 }
 0x48f   :  { %v416_v15 = vsub.f32 %v412_v20, %v415_v5 }
 0x491   :  { %v417_v21 = vmul.f32 1.442695, %v416_v15 }
 0x493   :  { %1464 = vpow2.f32 %v417_v21 }
 0x496   :  { %v1881_v26 = vpop.xlane.xlu2 %1012 }
 0x497   :  { %v1014_v27 = vsub.f32 %v1010_v32, %v1881_v26 }
 0x499   :  { %v1465_v23 = vpop.eup %1464  ;;  %v1015_v35 = vmul.f32 1.442695, %v1014_v27 }
 0x49a   :  { %v419_v25 = vsel %vm157_vm10, %v1465_v23, 0.0 }
 0x49b   :  { %420 = vadd.xlane.f32.xlu0 %v419_v25  ;;  %1466 = vpow2.f32 %v1015_v35 }
 0x49e   :  { %v1912_v41 = vpop.xlane.xlu2 %159 }
 0x49f   :  { %v641_v0 = vadd.f32 %v623_v58, %v1912_v41 }
 0x4a1   :  { %v1467_v28 = vpop.eup %1466 }
 0x4a2   :  { %v1017_v32 = vsel %vm157_vm10, %v1467_v28, 0.0 }
 0x4b7   :  { %v1884_v7 = vpop.xlane.xlu0 %1218 }
 0x4b8   :  { %vm1220_vm4 = vcmp.eq.f32.partialorder %v1216_v56, %v1884_v7  ;;  %v1180_v56 = vshra.s32 %v1906_v30, 16 }
 0x4b9   :  { %v1221_v10 = vsel %vm1220_vm4, %v1669_v63, 6 }
 0x4ba   :  { %v1222_v36 = vsel %vm157_vm10, %v1221_v10, 2147483647  ;;  %v1909_v12 = vcvt.s32.f32 %v1180_v56 }
 0x4bb   :  { %v1224_v20 = vshra.s32 %v1222_v36, 16  ;;  %v1223_v51 = vand.u32 65535, %v1222_v36 }
 0x4bd   :  { %v1226_v37 = vcvt.s32.f32 %v1224_v20 }
 0x4bf   :  { %1227 = vmin.xlane.f32.xlu1 %v1226_v37 }
 0x4c7   :  { %1018 = vadd.xlane.f32.xlu1 %v1017_v32 }
 0x4cf   :  { %587 = vmin.xlane.f32.xlu1 %v1897_v38 }
 0x4e0   :  { %v1902_v24 = vpop.xlane.xlu0 %631 }
 0x4e1   :  { %vm633_vm7 = vcmp.eq.f32.partialorder %v630_v34, %v1902_v24  ;;  %v642_v34 = vsel %vm464_vm8, %v641_v0, -inf }
 0x4e2   :  { %v634_v54 = vsel %vm633_vm7, %v629_v52, inf  ;;  %v643_v23 = vrot.slane %v642_v34, 4 }
 0x4e3   :  { %635 = vmin.xlane.f32.xlu2 %v634_v54 }
 0x4e4   :  { %v644_v35 = vmax.f32 %v642_v34, %v643_v23 }
 0x4e6   :  { %v645_v28 = vrot.slane %v644_v35, 2 }
 0x4e8   :  { %v646_v32 = vmax.f32 %v644_v35, %v645_v28 }
 0x4ea   :  { %v647_v50 = vrot.slane %v646_v32, 1 }
 0x4eb   :  { %1183 = vmin.xlane.f32.xlu2 %v1909_v12 }
 0x4ec   :  { %v648_v52 = vmax.f32 %v646_v32, %v647_v50 }
 0x4ee   :  { %vm649_vm9 = vcmp.eq.f32.partialorder %v641_v0, %v648_v52 }
 0x50e   :  { %v421_v17 = vpop.xlane.xlu0 %420 }
 0x50f   :  { %1468 = vlog2.f32 %v421_v17  ;;  %v650_v17 = vsel %vm649_vm9, %v1666_v61, 6  ;;  %vm661_vm9 = vcmp.eq.s32.totalorder %v1669_v63, 7 }
 0x515   :  { %v1469_v2 = vpop.eup %1468 }
 0x516   :  { %v423_v4 = vmul.f32 0.6931472, %v1469_v2 }
 0x518   :  { %v424_v15 = vadd.f32 %v423_v4, %v415_v5  ;;  %v1225_v5 = vcvt.s32.f32 %v1223_v51  ;;  %v651_v4 = vsel %vm464_vm8, %v650_v17, 2147483647 }
 0x519   :  { %v652_v36 = vrot.slane %v651_v4, 4 }
 0x51a   :  { %v425_v21 = vadd.f32 %v424_v15, %v1783_v43 }
 0x51b   :  { %vm653_vm3 = vcmp.lt.s32.totalorder %v651_v4, %v652_v36 }
 0x51c   :  { %v426_v25 = vadd.f32 %v425_v21, %v1640_v42  ;;  %v654_v15 = vsel %vm653_vm3, %v651_v4, %v652_v36  ;;  %vm672_vm3 = vcmp.eq.s32.totalorder %v1669_v63, 6 }
 0x51d   :  { %v655_v23 = vrot.slane %v654_v15, 2 }
 0x51e   :  { %v427_v27 = vsel %vm157_vm10, %v426_v25, -inf }
 0x51f   :  { %v428_v10 = vrot.slane %v427_v27, 4  ;;  %vm656_vm4 = vcmp.lt.s32.totalorder %v654_v15, %v655_v23 }
 0x520   :  { %v657_v35 = vsel %vm656_vm4, %v654_v15, %v655_v23 }
 0x521   :  { %v429_v20 = vmax.f32 %v427_v27, %v428_v10  ;;  %v658_v28 = vrot.slane %v657_v35, 1 }
 0x523   :  { %v430_v45 = vrot.slane %v429_v20, 2  ;;  %vm659_vm6 = vcmp.lt.s32.totalorder %v657_v35, %v658_v28 }
 0x524   :  { %v660_v59 = vsel %vm659_vm6, %v657_v35, %v658_v28 }
 0x525   :  { %v431_v58 = vmax.f32 %v429_v20, %v430_v45 }
 0x527   :  { %v432_v44 = vrot.slane %v431_v58, 1 }
 0x529   :  { %v1921_v43 = vmax.f32 %v431_v58, %v432_v44  ;;  %v638_v58 = vcvt.f32.s32 %v1902_v24 }
 0x52b   :  { %v434_v2 = vsub.f32 %v426_v25, %v1921_v43  ;;  %v639_v33 = vshll.u32 %v638_v58, 16 }
 0x52d   :  { %v435_v34 = vmul.f32 1.442695, %v434_v2 }
 0x52f   :  { %1470 = vpow2.f32 %v435_v34 }
 0x532   :  { %v1919_v54 = vpop.xlane.xlu1 %1227 }
 0x533   :  { %vm1229_vm11 = vcmp.eq.f32.partialorder %v1226_v37, %v1919_v54  ;;  %v608_v37 = vsel %vm607_vm0, %v1666_v61, 6  ;;  %vm663_vm0 = vcmp.eq.s32.totalorder %v1666_v61, %v660_v59 }
 0x534   :  { %v1230_v56 = vsel %vm1229_vm11, %v1225_v5, inf  ;;  %v609_v25 = vsel %vm157_vm10, %v608_v37, 2147483647 }
 0x535   :  { %1231 = vmin.xlane.f32.xlu0 %v1230_v56  ;;  %v1471_v21 = vpop.eup %1470  ;;  %v610_v10 = vrot.slane %v609_v25, 4 }
 0x536   :  { %v437_v27 = vsel %vm157_vm10, %v1471_v21, 0.0 }
 0x537   :  { %v438_v0 = vrot.slane %v437_v27, 4  ;;  %vm611_vm5 = vcmp.lt.s32.totalorder %v609_v25, %v610_v10 }
 0x538   :  { %v612_v50 = vsel %vm611_vm5, %v609_v25, %v610_v10 }
 0x539   :  { %v439_v20 = vadd.f32 %v438_v0, %v437_v27  ;;  %v613_v5 = vrot.slane %v612_v50, 2 }
 0x53a   :  { %v1019_v45 = vpop.xlane.xlu1 %1018 }
 0x53b   :  { %v440_v32 = vrot.slane %v439_v20, 2  ;;  %1472 = vlog2.f32 %v1019_v45  ;;  %vm614_vm7 = vcmp.lt.s32.totalorder %v612_v50, %v613_v5 }
 0x53c   :  { %v615_v23 = vsel %vm614_vm7, %v612_v50, %v613_v5 }
 0x53d   :  { %v441_v44 = vadd.f32 %v440_v32, %v439_v20  ;;  %v616_v0 = vrot.slane %v615_v23, 1  ;;  %v1237_v20 = vadd.f32 %v1884_v7, %v1912_v41 }
 0x53f   :  { %v442_v2 = vrot.slane %v441_v44, 1  ;;  %vm617_vm11 = vcmp.lt.s32.totalorder %v615_v23, %v616_v0  ;;  %v1238_v50 = vsel %vm464_vm8, %v1237_v20, -inf }
 0x540   :  { %v618_v58 = vsel %vm617_vm11, %v615_v23, %v616_v0  ;;  %v1239_v5 = vrot.slane %v1238_v50, 4 }
 0x541   :  { %v1473_v17 = vpop.eup %1472  ;;  %v443_v15 = vadd.f32 %v442_v2, %v441_v44 }
 0x542   :  { %v1021_v36 = vmul.f32 0.6931472, %v1473_v17 }
 0x543   :  { %1474 = vlog2.f32 %v443_v15 }
 0x544   :  { %v1022_v27 = vadd.f32 %v1021_v36, %v1881_v26  ;;  %v662_v26 = vsel %vm661_vm9, %v660_v59, 0  ;;  %v1179_v36 = vand.u32 65535, %v1906_v30 }
 0x546   :  { %v1023_v35 = vadd.f32 %v1022_v27, %v1814_v14  ;;  %v1181_v23 = vcvt.s32.f32 %v1179_v36 }
 0x548   :  { %v1024_v32 = vadd.f32 %v1023_v35, %v1640_v42 }
 0x549   :  { %v1475_v45 = vpop.eup %1474 }
 0x54a   :  { %v445_v44 = vmul.f32 0.6931472, %v1475_v45  ;;  %v1025_v59 = vsel %vm157_vm10, %v1024_v32, -inf }
 0x54b   :  { %v1026_v2 = vrot.slane %v1025_v59, 4 }
 0x54c   :  { %v446_v17 = vadd.f32 %v445_v44, %v1921_v43 }
 0x54d   :  { %v1027_v15 = vmax.f32 %v1025_v59, %v1026_v2 }
 0x54f   :  { %v1028_v43 = vrot.slane %v1027_v15, 2 }
 0x551   :  { %v1029_v35 = vmax.f32 %v1027_v15, %v1028_v43 }
 0x556   :  { %v636_v51 = vpop.xlane.xlu2 %635 }
 0x557   :  { %v637_v52 = vcvt.f32.s32 %v636_v51 }
 0x559   :  { %v640_v56 = vadd.s32 %v639_v33, %v637_v52 }
 0x55b   :  { %v664_v4 = vsel %vm663_vm0, %v640_v56, 0 }
 0x55c   :  { %v665_v34 = vsel %vm464_vm8, %v664_v4, 0  ;;  %v1240_v4 = vmax.f32 %v1238_v50, %v1239_v5 }
 0x55d   :  { %v666_v24 = vrot.slane %v665_v34, 4 }
 0x55f   :  { %v667_v21 = vadd.s32 %v666_v24, %v665_v34  ;;  %v1954_v34 = vpop.xlane.xlu2 %1183  ;;  %v447_v24 = vadd.f32 %v446_v17, %v1635_v39 }
 0x560   :  { %vm1185_vm5 = vcmp.eq.f32.partialorder %v1909_v12, %v1954_v34 }
 0x561   :  { %v668_v37 = vrot.slane %v667_v21, 2  ;;  %v1186_v27 = vsel %vm1185_vm5, %v1181_v23, inf }
 0x563   :  { %v669_v25 = vadd.s32 %v668_v37, %v667_v21  ;;  %v1241_v21 = vrot.slane %v1240_v4, 2  ;;  %v448_v37 = vperm.slane %v447_v24, 6 }
 0x565   :  { %v670_v10 = vrot.slane %v669_v25, 1  ;;  %v1242_v0 = vmax.f32 %v1240_v4, %v1241_v21  ;;  %v1234_v4 = vcvt.f32.s32 %v1919_v54 }
 0x567   :  { %v671_v28 = vadd.s32 %v670_v10, %v669_v25  ;;  %v1961_v25 = vadd.f32 %v448_v37, %v1652_v49  ;;  %v1243_v10 = vrot.slane %v1242_v0, 1  ;;  %v1235_v21 = vshll.u32 %v1234_v4, 16 }
 0x569   :  { %vm674_vm4 = vcmp.eq.s32.totalorder %v1669_v63, %v671_v28  ;;  %v1948_v14 = vsel %vm672_vm3, %v671_v28, %v662_v26  ;;  %v450_v30 = vsel %vm157_vm10, %v1961_v25, -inf  ;;  %v1030_v28 = vrot.slane %v1029_v35, 1 }
 0x56a   :  { %v675_v7 = vsel %vm674_vm4, %v618_v58, 0  ;;  %v1244_v45 = vmax.f32 %v1242_v0, %v1243_v10 }
 0x56b   :  { %v676_v51 = vsel %vm97_vm1, %v675_v7, 0  ;;  %v1965_v26 = vmax.f32 %v1029_v35, %v1030_v28 }
 0x56c   :  { %v678_v33 = vshrl.u32 %v676_v51, 16  ;;  %v677_v52 = vand.u32 65535, %v676_v51  ;;  %vm1245_vm6 = vcmp.eq.f32.partialorder %v1237_v20, %v1244_v45  ;;  %v1204_v20 = vsel %vm1203_vm2, %v1666_v61, 6 }
 0x56d   :  { %v1246_v12 = vsel %vm1245_vm6, %v1666_v61, 6  ;;  %v1032_v58 = vsub.f32 %v1024_v32, %v1965_v26  ;;  %v1205_v32 = vsel %vm157_vm10, %v1204_v20, 2147483647 }
 0x56e   :  { %v680_v56 = vcvt.s32.f32 %v678_v33  ;;  %v679_v42 = vcvt.s32.f32 %v677_v52  ;;  %v1247_v50 = vsel %vm464_vm8, %v1246_v12, 2147483647 }
 0x56f   :  { %v1033_v7 = vmul.f32 1.442695, %v1032_v58  ;;  %v1248_v49 = vrot.slane %v1247_v50, 4 }
 0x570   :  { %683 = vadd.xlane.f32.xlu0 %v680_v56  ;;  %681 = vadd.xlane.f32.xlu2 %v679_v42  ;;  %v1206_v56 = vrot.slane %v1205_v32, 4 }
 0x571   :  { %1476 = vpow2.f32 %v1033_v7  ;;  %vm1249_vm0 = vcmp.lt.s32.totalorder %v1247_v50, %v1248_v49 }
 0x572   :  { %v1250_v51 = vsel %vm1249_vm0, %v1247_v50, %v1248_v49  ;;  %vm1207_vm11 = vcmp.lt.s32.totalorder %v1205_v32, %v1206_v56  ;;  %vm536_vm0 = vcmp.eq.f32.partialorder %v1725_v13, %v1767_v18  ;;  %v588_v18 = vpop.xlane.xlu1 %587 }
 0x573   :  { %v1251_v33 = vrot.slane %v1250_v51, 2  ;;  %v1208_v36 = vsel %vm1207_vm11, %v1205_v32, %v1206_v56  ;;  %vm689_vm11 = vcmp.eq.s32.totalorder %v1669_v63, 5  ;;  %v594_v29 = vcvt.f32.s32 %v588_v18 }
 0x574   :  { %v1209_v1 = vrot.slane %v1208_v36, 2 }
 0x575   :  { %vm1252_vm7 = vcmp.lt.s32.totalorder %v1250_v51, %v1251_v33 }
 0x576   :  { %v1253_v59 = vsel %vm1252_vm7, %v1250_v51, %v1251_v33  ;;  %vm1210_vm5 = vcmp.lt.s32.totalorder %v1208_v36, %v1209_v1 }
 0x577   :  { %v1477_v44 = vpop.eup %1476  ;;  %v1254_v17 = vrot.slane %v1253_v59, 1  ;;  %v1211_v54 = vsel %vm1210_vm5, %v1208_v36, %v1209_v1 }
 0x578   :  { %1187 = vmin.xlane.f32.xlu2 %v1186_v27  ;;  %v1035_v52 = vsel %vm157_vm10, %v1477_v44, 0.0  ;;  %v1212_v45 = vrot.slane %v1211_v54, 1 }
 0x579   :  { %v1036_v5 = vrot.slane %v1035_v52, 4  ;;  %vm1255_vm4 = vcmp.lt.s32.totalorder %v1253_v59, %v1254_v17 }
 0x57a   :  { %v1256_v23 = vsel %vm1255_vm4, %v1253_v59, %v1254_v17  ;;  %vm1213_vm6 = vcmp.lt.s32.totalorder %v1211_v54, %v1212_v45 }
 0x57b   :  { %v1037_v42 = vadd.f32 %v1036_v5, %v1035_v52  ;;  %vm1258_vm2 = vcmp.eq.s32.totalorder %v1666_v61, %v1256_v23  ;;  %v1257_v49 = vsel %vm661_vm9, %v1256_v23, 0  ;;  %v1214_v51 = vsel %vm1213_vm6, %v1211_v54, %v1212_v45 }
 0x57c   :  { %v537_v5 = vsel %vm536_vm0, %v1669_v63, 6  ;;  %vm1132_vm9 = vcmp.eq.f32.partialorder %v1763_v16, %v1799_v57  ;;  %v1496_v57 = vld [vmem:[%s2506_s6] sm:$0x3f]  ;;  %v1160_v54 = vsel %vm1159_vm15, %v1666_v61, 6  ;;  %s2101_s6 = sld [smem:[#allocation2 + $0x1]] }
 0x57d   :  { %v1038_v2 = vrot.slane %v1037_v42, 2  ;;  %v1991_v17 = vsel %vm157_vm10, %v537_v5, 2147483647  ;;  %v1161_v45 = vsel %vm157_vm10, %v1160_v54, 2147483647 }
 0x57e   :  { %v540_v4 = vshra.s32 %v1991_v17, 16 }
 0x57f   :  { %v1039_v15 = vadd.f32 %v1038_v2, %v1037_v42  ;;  %v583_v2 = vand.u32 65535, %v1894_v48 }
 0x580   :  { %451 = vmax.xlane.f32.xlu2 %v450_v30 }
 0x581   :  { %v1040_v37 = vrot.slane %v1039_v15, 1 }
 0x582   :  { %v279_v8 = vstv %s2101_s6  ;;  %s199_s2 = sshra.s32 %s2101_s6, 7  ;;  %s211_s28 = sadd.s32 %s2101_s6, %s209_s27 }
 0x583   :  { %v1041_v10 = vadd.f32 %v1040_v37, %v1039_v15  ;;  %v585_v15 = vcvt.s32.f32 %v583_v2  ;;  %s201_s4 = sadd.s32 %s199_s2, %s2103_s13  ;;  %s204_s10 = sand.u32 127, %s2101_s6 }
 0x584   :  { %s1383_s5 = sshll.u32 %s201_s4, 7  ;;  %s1384_s11 = sshll.u32 %s211_s28, 7 }
 0x585   :  { %1478 = vlog2.f32 %v1041_v10  ;;  %s205_s26 = sadd.s32 %s1383_s5, %s204_s10  ;;  %s229_s2 = sshra.s32 %s2114_s16, 7 }
 0x586   :  { %s215_s27 = sadd.s32 %s1384_s11, %s214_s7  ;;  %s221_s4 = sadd.s32 %s2109_s14, %s219_s9 }
 0x587   :  { %s2364_s6 = sld [smem:[#allocation6 + %s205_s26]]  ;;  %s231_s28 = sadd.s32 %s2111_s15, %s229_s2 }
 0x588   :  { %s2367_s29 = sld [smem:[#allocation6 + %s215_s27]]  ;;  %s1385_s5 = sshll.u32 %s221_s4, 7 }
 0x589   :  { %s224_s10 = sand.u32 127, %s2111_s15  ;;  %s1386_s11 = sshll.u32 %s231_s28, 7 }
 0x58a   :  { %s234_s7 = sand.u32 127, %s2114_s16  ;;  %s244_s9 = sand.u32 127, %s2120_s18 }
 0x58b   :  { %v1479_v7 = vpop.eup %1478  ;;  %s249_s26 = sshra.s32 %s2122_s0, 7  ;;  %s235_s2 = sadd.s32 %s1386_s11, %s234_s7 }
 0x58c   :  { %v1043_v20 = vmul.f32 0.6931472, %v1479_v7  ;;  %s788_s27 = sshra.s32 %s2133_s19, 7  ;;  %s798_s4 = sshra.s32 %s2117_s17, 7 }
 0x58d   :  { %s2384_s28 = sld [smem:[#allocation6 + %s235_s2]]  ;;  %s808_s7 = sshra.s32 %s2144_s1, 7 }
 0x58e   :  { %v1044_v13 = vadd.f32 %v1043_v20, %v1965_v26  ;;  %s810_s2 = sadd.s32 %s2117_s17, %s808_s7  ;;  %s828_s7 = sshra.s32 %s2202_s21, 7 }
 0x590   :  { %v1045_v36 = vadd.f32 %v1044_v13, %v1654_v53 }
 0x5a8   :  { %v1232_v24 = vpop.xlane.xlu0 %1231 }
 0x5a9   :  { %v1233_v46 = vcvt.f32.s32 %v1232_v24  ;;  %v1133_v24 = vsel %vm1132_vm9, %v1669_v63, 6 }
 0x5aa   :  { %v2004_v23 = vsel %vm157_vm10, %v1133_v24, 2147483647 }
 0x5ab   :  { %v1236_v27 = vadd.s32 %v1235_v21, %v1233_v46  ;;  %v2001_v21 = vcvt.s32.f32 %v540_v4  ;;  %v1046_v46 = vperm.slane %v1045_v36, 6  ;;  %v1136_v16 = vshra.s32 %v2004_v23, 16 }
 0x5ac   :  { %v595_v4 = vshll.u32 %v594_v29, 16 }
 0x5ad   :  { %v1259_v43 = vsel %vm1258_vm2, %v1236_v27, 0  ;;  %v2011_v48 = vadd.f32 %v1496_v57, %v1046_v46 }
 0x5ae   :  { %v1260_v0 = vsel %vm464_vm8, %v1259_v43, 0 }
 0x5af   :  { %v1261_v35 = vrot.slane %v1260_v0, 4  ;;  %v1048_v1 = vsel %vm157_vm10, %v2011_v48, -inf }
 0x5b1   :  { %v1262_v30 = vadd.s32 %v1261_v35, %v1260_v0 }
 0x5b3   :  { %v1263_v28 = vrot.slane %v1262_v30, 2 }
 0x5b5   :  { %v1264_v12 = vadd.s32 %v1263_v28, %v1262_v30  ;;  %v564_v28 = vsel %vm563_vm14, %v1666_v61, 6 }
 0x5b7   :  { %v1265_v58 = vrot.slane %v1264_v12, 1 }
 0x5b9   :  { %v1266_v50 = vadd.s32 %v1265_v58, %v1264_v12  ;;  %v565_v12 = vsel %vm157_vm10, %v564_v28, 2147483647  ;;  %v1162_v58 = vrot.slane %v1161_v45, 4 }
 0x5bb   :  { %vm1268_vm7 = vcmp.eq.s32.totalorder %v1669_v63, %v1266_v50  ;;  %v1986_v44 = vsel %vm672_vm3, %v1266_v50, %v1257_v49  ;;  %vm589_vm3 = vcmp.eq.f32.partialorder %v1897_v38, %v588_v18  ;;  %v2013_v38 = vcvt.s32.f32 %v1136_v16 }
 0x5bc   :  { %v1269_v33 = vsel %vm1268_vm7, %v1214_v51, 0  ;;  %v590_v26 = vsel %vm589_vm3, %v585_v15, inf  ;;  %v566_v50 = vrot.slane %v565_v12, 4  ;;  %vm1163_vm4 = vcmp.lt.s32.totalorder %v1161_v45, %v1162_v58 }
 0x5bd   :  { %v1270_v52 = vsel %vm97_vm1, %v1269_v33, 0  ;;  %v1164_v9 = vsel %vm1163_vm4, %v1161_v45, %v1162_v58  ;;  %vm700_vm7 = vcmp.eq.s32.totalorder %v1669_v63, 4 }
 0x5be   :  { %v1272_v32 = vshrl.u32 %v1270_v52, 16  ;;  %v1271_v59 = vand.u32 65535, %v1270_v52  ;;  %vm567_vm2 = vcmp.lt.s32.totalorder %v565_v12, %v566_v50 }
 0x5c0   :  { %v1274_v56 = vcvt.s32.f32 %v1272_v32  ;;  %v1273_v42 = vcvt.s32.f32 %v1271_v59  ;;  %v1165_v32 = vrot.slane %v1164_v9, 2  ;;  %v568_v59 = vsel %vm567_vm2, %v565_v12, %v566_v50 }
 0x5c1   :  { %v569_v2 = vrot.slane %v568_v59, 2  ;;  %vm492_vm2 = vcmp.eq.f32.partialorder %v1688_v19, %v1705_v40 }
 0x5c2   :  { %1277 = vadd.xlane.f32.xlu1 %v1274_v56  ;;  %1275 = vadd.xlane.f32.xlu0 %v1273_v42  ;;  %vm1166_vm15 = vcmp.lt.s32.totalorder %v1164_v9, %v1165_v32 }
 0x5c3   :  { %v1167_v46 = vsel %vm1166_vm15, %v1164_v9, %v1165_v32  ;;  %vm570_vm6 = vcmp.lt.s32.totalorder %v568_v59, %v569_v2  ;;  %vm1088_vm15 = vcmp.eq.f32.partialorder %v1699_v31, %v1745_v62 }
 0x5ca   :  { %591 = vmin.xlane.f32.xlu1 %v590_v26  ;;  %543 = vmin.xlane.f32.xlu0 %v2001_v21 }
 0x5d2   :  { %1139 = vmin.xlane.f32.xlu1 %v2013_v38  ;;  %1049 = vmax.xlane.f32.xlu0 %v1048_v1 }
 0x5e3   :  { %v682_v27 = vpop.xlane.xlu2 %681  ;;  %v684_v37 = vpop.xlane.xlu0 %683 }
 0x5e4   :  { %v686_v43 = vcvt.f32.s32 %v684_v37  ;;  %v685_v0 = vcvt.f32.s32 %v682_v27  ;;  %v1168_v37 = vrot.slane %v1167_v46, 1 }
 0x5e6   :  { %v687_v35 = vshll.u32 %v686_v43, 16  ;;  %vm1169_vm0 = vcmp.lt.s32.totalorder %v1167_v46, %v1168_v37 }
 0x5e7   :  { %v1170_v58 = vsel %vm1169_vm0, %v1167_v46, %v1168_v37  ;;  %v520_v37 = vsel %vm519_vm12, %v1666_v61, 6  ;;  %vm717_vm12 = vcmp.eq.s32.totalorder %v1669_v63, 3 }
 0x5e8   :  { %v688_v10 = vadd.s32 %v687_v35, %v685_v0  ;;  %v571_v0 = vsel %vm570_vm6, %v568_v59, %v569_v2 }
 0x5e9   :  { %v572_v45 = vrot.slane %v571_v0, 1 }
 0x5ea   :  { %v2022_v30 = vsel %vm689_vm11, %v688_v10, %v1948_v14  ;;  %v1190_v14 = vcvt.f32.s32 %v1954_v34  ;;  %vm691_vm5 = vcmp.eq.s32.totalorder %v1666_v61, %v688_v10 }
 0x5eb   :  { %v1188_v7 = vpop.xlane.xlu2 %1187  ;;  %vm573_vm3 = vcmp.lt.s32.totalorder %v571_v0, %v572_v45 }
 0x5ec   :  { %v1189_v60 = vcvt.f32.s32 %v1188_v7  ;;  %v1191_v22 = vshll.u32 %v1190_v14, 16  ;;  %v574_v9 = vsel %vm573_vm3, %v571_v0, %v572_v45 }
 0x5ee   :  { %v1192_v56 = vadd.s32 %v1191_v22, %v1189_v60 }
 0x635   :  { %v1278_v49 = vpop.xlane.xlu1 %1277  ;;  %v1276_v51 = vpop.xlane.xlu0 %1275 }
 0x636   :  { %v1280_v33 = vcvt.f32.s32 %v1278_v49  ;;  %v1279_v20 = vcvt.f32.s32 %v1276_v51 }
 0x638   :  { %v1281_v52 = vshll.u32 %v1280_v33, 16 }
 0x63a   :  { %v1282_v5 = vadd.s32 %v1281_v52, %v1279_v20 }
 0x63c   :  { %v1283_v42 = vsel %vm689_vm11, %v1282_v5, %v1986_v44  ;;  %vm1284_vm14 = vcmp.eq.s32.totalorder %v1666_v61, %v1282_v5  ;;  %v2061_v5 = vpop.xlane.xlu2 %451 }
 0x63d   :  { %v1285_v34 = vsel %vm1284_vm14, %v1192_v56, 0  ;;  %v592_v13 = vpop.xlane.xlu1 %591  ;;  %v2042_v1 = vpop.xlane.xlu0 %543 }
 0x63e   :  { %v1286_v36 = vsel %vm464_vm8, %v1285_v34, 0  ;;  %v593_v24 = vcvt.f32.s32 %v592_v13  ;;  %vm545_vm4 = vcmp.eq.f32.partialorder %v2001_v21, %v2042_v1 }
 0x63f   :  { %v1287_v15 = vrot.slane %v1286_v36, 4 }
 0x640   :  { %v596_v18 = vadd.s32 %v595_v4, %v593_v24 }
 0x641   :  { %v1288_v26 = vadd.s32 %v1287_v15, %v1286_v36 }
 0x642   :  { %v692_v16 = vsel %vm691_vm5, %v596_v18, 0 }
 0x643   :  { %v1289_v57 = vrot.slane %v1288_v26, 2  ;;  %v693_v44 = vsel %vm464_vm8, %v692_v16, 0 }
 0x644   :  { %v694_v27 = vrot.slane %v693_v44, 4 }
 0x645   :  { %v1290_v43 = vadd.s32 %v1289_v57, %v1288_v26  ;;  %v2050_v49 = vpop.xlane.xlu0 %1049  ;;  %v2071_v4 = vpop.xlane.xlu1 %1139 }
 0x646   :  { %v695_v35 = vadd.s32 %v694_v27, %v693_v44  ;;  %v1051_v52 = vsub.f32 %v2011_v48, %v2050_v49  ;;  %v453_v48 = vsub.f32 %v1961_v25, %v2061_v5  ;;  %v493_v25 = vsel %vm492_vm2, %v1669_v63, 6 }
 0x647   :  { %v1291_v54 = vrot.slane %v1290_v43, 1  ;;  %vm1141_vm14 = vcmp.eq.f32.partialorder %v2013_v38, %v2071_v4  ;;  %v2078_v19 = vsel %vm157_vm10, %v493_v25, 2147483647  ;;  %v1089_v38 = vsel %vm1088_vm15, %v1669_v63, 6 }
 0x648   :  { %v696_v28 = vrot.slane %v695_v35, 2  ;;  %v1052_v34 = vmul.f32 1.442695, %v1051_v52  ;;  %v454_v36 = vmul.f32 1.442695, %v453_v48  ;;  %v1146_v52 = vcvt.f32.s32 %v2071_v4 }
 0x649   :  { %v1292_v10 = vadd.s32 %v1291_v54, %v1290_v43  ;;  %v2089_v27 = vsel %vm157_vm10, %v1089_v38, 2147483647  ;;  %v521_v43 = vsel %vm157_vm10, %v520_v37, 2147483647  ;;  %v293_v48 = vstv %s2111_s15 }
 0x64a   :  { %v697_v12 = vadd.s32 %v696_v28, %v695_v35  ;;  %1480 = vpow2.f32 %v1052_v34  ;;  %v1092_v31 = vshra.s32 %v2089_v27, 16  ;;  %v522_v0 = vrot.slane %v521_v43, 4 }
 0x64b   :  { %vm1294_vm9 = vcmp.eq.s32.totalorder %v1669_v63, %v1292_v10  ;;  %v2048_v50 = vsel %vm700_vm7, %v1292_v10, %v1283_v42  ;;  %v539_v42 = vand.u32 65535, %v1991_v17  ;;  %v1135_v17 = vand.u32 65535, %v2004_v23 }
 0x64c   :  { %v1295_v7 = vsel %vm1294_vm9, %v1170_v58, 0  ;;  %v698_v14 = vrot.slane %v697_v12, 1  ;;  %1482 = vpow2.f32 %v454_v36  ;;  %v496_v23 = vshra.s32 %v2078_v19, 16 }
 0x64d   :  { %v1296_v51 = vsel %vm97_vm1, %v1295_v7, 0  ;;  %v1137_v21 = vcvt.s32.f32 %v1135_v17  ;;  %v2093_v62 = vcvt.s32.f32 %v1092_v31  ;;  %v1116_v35 = vsel %vm1115_vm13, %v1666_v61, 6 }
 0x64e   :  { %v1298_v33 = vshrl.u32 %v1296_v51, 16  ;;  %v699_v60 = vadd.s32 %v698_v14, %v697_v12  ;;  %v1297_v15 = vand.u32 65535, %v1296_v51  ;;  %v2085_v57 = vcvt.s32.f32 %v496_v23 }
 0x64f   :  { %v1142_v46 = vsel %vm1141_vm14, %v1137_v21, inf  ;;  %vm523_vm5 = vcmp.lt.s32.totalorder %v521_v43, %v522_v0  ;;  %v1117_v47 = vsel %vm157_vm10, %v1116_v35, 2147483647  ;;  %v550_v28 = vcvt.f32.s32 %v2042_v1 }
 0x650   :  { %v1300_v20 = vcvt.s32.f32 %v1298_v33  ;;  %vm702_vm11 = vcmp.eq.s32.totalorder %v1669_v63, %v699_v60  ;;  %v2059_v22 = vsel %vm700_vm7, %v699_v60, %v2022_v30  ;;  %v541_v30 = vcvt.s32.f32 %v539_v42  ;;  %v1481_v26 = vpop.eup %1480 }
 0x651   :  { %v703_v29 = vsel %vm702_vm11, %v574_v9, 0  ;;  %v1299_v18 = vcvt.s32.f32 %v1297_v15  ;;  %v1054_v40 = vsel %vm157_vm10, %v1481_v26, 0.0  ;;  %v524_v11 = vsel %vm523_vm5, %v521_v43, %v522_v0 }
 0x652   :  { %1303 = vadd.xlane.f32.xlu2 %v1300_v20  ;;  %v704_v32 = vsel %vm97_vm1, %v703_v29, 0  ;;  %v546_v24 = vsel %vm545_vm4, %v541_v30, inf  ;;  %v1483_v16 = vpop.eup %1482  ;;  %v1118_v10 = vrot.slane %v1117_v47, 4  ;;  %v275_v58 = vstv %s2103_s13  ;;  %s2360_s13 = sld [smem:[#allocation6 + %s195_s12]]  ;;  %s1387_s12 = sshll.u32 %s241_s30, 7 }
 0x653   :  { %v706_v59 = vshrl.u32 %v704_v32, 16  ;;  %v705_v56 = vand.u32 65535, %v704_v32  ;;  %v456_v44 = vsel %vm157_vm10, %v1483_v16, 0.0  ;;  %vm2126_vm10 = vcmp.eq.s32.totalorder %v1669_v63, %v279_v8  ;;  %s245_s3 = sadd.s32 %s1387_s12, %s244_s9  ;;  %s1412_s30 = sshll.u32 %s788_s27, 7 }
 0x654   :  { %v525_v1 = vrot.slane %v524_v11, 2  ;;  %v286_v60 = vstv %s2109_s14  ;;  %v551_v9 = vshll.u32 %v550_v28, 16  ;;  %vm2135_vm13 = vcmp.lt.s32.totalorder %v1117_v47, %v1118_v10  ;;  %s225_s14 = sadd.s32 %s1385_s5, %s224_s10  ;;  %s2386_s5 = sld [smem:[#allocation6 + %s245_s3]] }
 0x655   :  { %v708_v13 = vcvt.s32.f32 %v706_v59  ;;  %v707_v2 = vcvt.s32.f32 %v705_v56  ;;  %vm2140_vm6 = vcmp.eq.s32.totalorder %v1669_v63, %v275_v58  ;;  %vm2147_vm0 = vcmp.eq.s32.totalorder %v1669_v63, %v286_v60  ;;  %s2379_s15 = sld [smem:[#allocation6 + %s225_s14]]  ;;  %s800_s10 = sadd.s32 %s2133_s19, %s798_s4 }
 0x656   :  { %v281_v30 = vsel %vm2126_vm10, %v1635_v39, 0.0  ;;  %v878_v4 = vstv %s2117_s17  ;;  %v1147_v17 = vshll.u32 %v1146_v52, 16  ;;  %vm2163_vm9 = vcmp.lt.s32.totalorder %v524_v11, %v525_v1  ;;  %s1413_s12 = sadd.s32 768, %s1412_s30  ;;  %s793_s9 = sand.u32 127, %s2133_s19 }
 0x657   :  { %711 = vadd.xlane.f32.xlu1 %v708_v13  ;;  %709 = vadd.xlane.f32.xlu0 %v707_v2  ;;  %v300_v13 = vstv %s2114_s16  ;;  %vm2173_vm3 = vcmp.eq.s32.totalorder %v1669_v63, %v293_v48  ;;  %v307_v16 = vstv %s2120_s18  ;;  %v314_v38 = vstv %s2122_s0  ;;  %s2382_s16 = sadd.s32 %s2120_s18, %s249_s26  ;;  %s1400_s14 = sshll.u32 %s800_s10, 7 }
 0x658   :  { %vm2180_vm11 = vcmp.eq.s32.totalorder %v1669_v63, %v878_v4  ;;  %v527_v35 = vsel %vm2163_vm9, %v524_v11, %v525_v1  ;;  %vm2187_vm4 = vcmp.eq.s32.totalorder %v1669_v63, %v300_v13  ;;  %v874_v28 = vstv %s2133_s19  ;;  %s803_s18 = sand.u32 127, %s2117_s17  ;;  %s254_s26 = sand.u32 127, %s2122_s0 }
 0x659   :  { %v288_v11 = vsel %vm2147_vm0, %v1635_v39, 0.0  ;;  %v528_v58 = vrot.slane %v527_v35, 1  ;;  %v277_v7 = vsel %vm2140_vm6, %v1635_v39, 0.0  ;;  %v892_v1 = vstv %s2169_s20  ;;  %s794_s27 = sadd.s32 %s1413_s12, %s793_s9  ;;  %s818_s3 = sshra.s32 %s2169_s20, 7 }
 0x65a   :  { %547 = vmin.xlane.f32.xlu2 %v546_v24  ;;  %v290_v60 = vrot.slane %v288_v11, 2  ;;  %vm2215_vm15 = vcmp.eq.s32.totalorder %v1669_v63, %v874_v28  ;;  %v295_v56 = vsel %vm2173_vm3, %v1635_v39, 0.0  ;;  %vm728_vm6 = vcmp.eq.s32.totalorder %v1669_v63, 2  ;;  %s259_s4 = sshra.s32 %s2231_s23, 7  ;;  %s804_s30 = sadd.s32 %s1400_s14, %s803_s18 }
 0x65b   :  { %vm2227_vm10 = vcmp.lt.s32.totalorder %v527_v35, %v528_v58  ;;  %vm2247_vm0 = vcmp.eq.s32.totalorder %v1669_v63, %v314_v38  ;;  %v297_v25 = vrot.slane %v295_v56, 3  ;;  %v302_v23 = vsel %vm2187_vm4, %v1635_v39, 0.0  ;;  %s1401_s19 = sshll.u32 %s810_s2, 7  ;;  %s813_s10 = sand.u32 127, %s2144_s1 }
 0x65c   :  { %v906_v38 = vstv %s2211_s22  ;;  %v316_v56 = vsel %vm2247_vm0, %v1635_v39, 0.0  ;;  %s2399_s11 = sld [smem:[#allocation6 + %s794_s27]]  ;;  %s820_s8 = sadd.s32 %s2144_s1, %s818_s3  ;;  %vm756_vm0 = vcmp.eq.s32.totalorder %v1669_v63, 0 }
 0x65d   :  { %vm2292_vm4 = vcmp.eq.s32.totalorder %v1669_v63, %v906_v38  ;;  %s2402_s17 = sld [smem:[#allocation6 + %s804_s30]]  ;;  %s2408_s12 = sadd.s32 %s2122_s0, %s259_s4 }
 0x65e   :  { %s814_s9 = sadd.s32 %s1401_s19, %s813_s10  ;;  %s1402_s14 = sshll.u32 %s820_s8, 7 }
 0x65f   :  { %1143 = vmin.xlane.f32.xlu0 %v1142_v46  ;;  %1301 = vadd.xlane.f32.xlu1 %v1299_v18  ;;  %s823_s18 = sand.u32 127, %s2169_s20  ;;  %s830_s27 = sadd.s32 %s2169_s20, %s828_s7 }
 0x660   :  { %s2417_s0 = sld [smem:[#allocation6 + %s814_s9]]  ;;  %s838_s3 = sshra.s32 %s2211_s22, 7 }
 0x661   :  { %s1389_s30 = sshll.u32 %s2408_s12, 7  ;;  %s1403_s8 = sshll.u32 %s830_s27, 7 }
 0x662   :  { %1055 = vadd.xlane.f32.xlu2 %v1054_v40  ;;  %s840_s20 = sadd.s32 %s2202_s21, %s838_s3  ;;  %s848_s19 = sshra.s32 %s2268_s24, 7 }
 0x663   :  { %s1404_s7 = sshll.u32 %s840_s20, 7  ;;  %s843_s12 = sand.u32 127, %s2211_s22 }
 0x664   :  { %s858_s9 = sshra.s32 %s2285_s25, 7 }
 0x667   :  { %499 = vmin.xlane.f32.xlu0 %v2085_v57  ;;  %457 = vadd.xlane.f32.xlu1 %v456_v44 }
 0x66f   :  { %1095 = vmin.xlane.f32.xlu1 %v2093_v62 }
 0x6c5   :  { %v1304_v54 = vpop.xlane.xlu2 %1303 }
 0x6c6   :  { %v1306_v32 = vcvt.f32.s32 %v1304_v54  ;;  %v283_v54 = vrot.slane %v281_v30, 1 }
 0x6c8   :  { %v1307_v21 = vshll.u32 %v1306_v32, 16 }
 0x6ca   :  { %v712_v45 = vpop.xlane.xlu1 %711  ;;  %v710_v3 = vpop.xlane.xlu0 %709 }
 0x6cb   :  { %v714_v12 = vcvt.f32.s32 %v712_v45  ;;  %v713_v51 = vcvt.f32.s32 %v710_v3  ;;  %v885_v45 = vstv %s2144_s1  ;;  %s2551_s1 = sshll.u32 %s2382_s16, 7  ;;  %s264_s16 = sand.u32 127, %s2231_s23 }
 0x6cc   :  { %vm2220_vm5 = vcmp.eq.s32.totalorder %v1669_v63, %v885_v45  ;;  %s255_s2 = sadd.s32 %s2551_s1, %s254_s26  ;;  %s853_s1 = sand.u32 127, %s2268_s24 }
 0x6cd   :  { %v715_v14 = vshll.u32 %v714_v12, 16  ;;  %v548_v33 = vpop.xlane.xlu2 %547  ;;  %v880_v12 = vsel %vm2180_vm11, %v1654_v53, 0.0  ;;  %s2430_s10 = sld [smem:[#allocation6 + %s255_s2]]  ;;  %s860_s2 = sadd.s32 %s2268_s24, %s858_s9 }
 0x6ce   :  { %v549_v20 = vcvt.f32.s32 %v548_v33  ;;  %v285_v33 = vadd.f32 %v283_v54, %v277_v7  ;;  %v882_v52 = vrot.slane %v880_v12, 1  ;;  %v321_v12 = vstv %s2231_s23  ;;  %s1406_s3 = sshll.u32 %s860_s2, 7 }
 0x6cf   :  { %v716_v59 = vadd.s32 %v715_v14, %v713_v51 }
 0x6d0   :  { %v552_v42 = vadd.s32 %v551_v9, %v549_v20 }
 0x6d1   :  { %v2156_v2 = vsel %vm717_vm12, %v716_v59, %v2059_v22  ;;  %vm719_vm7 = vcmp.eq.s32.totalorder %v1666_v61, %v716_v59  ;;  %v1120_v22 = vsel %vm2135_vm13, %v1117_v47, %v1118_v10  ;;  %vm2239_vm13 = vcmp.eq.s32.totalorder %v1669_v63, %v892_v1 }
 0x6d2   :  { %v720_v36 = vsel %vm719_vm7, %v552_v42, 0  ;;  %v1302_v24 = vpop.xlane.xlu1 %1301  ;;  %v1144_v15 = vpop.xlane.xlu0 %1143  ;;  %v1121_v37 = vrot.slane %v1120_v22, 2  ;;  %v304_v47 = vrot.slane %v302_v23, 4  ;;  %v913_v42 = vstv %s2268_s24  ;;  %s1414_s24 = sshll.u32 %s858_s9, 7 }
 0x6d3   :  { %v721_v18 = vsel %vm464_vm8, %v720_v36, 0  ;;  %v1305_v26 = vcvt.f32.s32 %v1302_v24  ;;  %v1145_v46 = vcvt.f32.s32 %v1144_v15  ;;  %v876_v24 = vsel %vm2215_vm15, %v1654_v53, 0.0 }
 0x6d4   :  { %v722_v40 = vrot.slane %v721_v18, 4  ;;  %vm1122_vm14 = vcmp.lt.s32.totalorder %v1120_v22, %v1121_v37 }
 0x6d5   :  { %v1308_v44 = vadd.s32 %v1307_v21, %v1305_v26  ;;  %v1148_v31 = vadd.s32 %v1147_v17, %v1145_v46  ;;  %v1123_v59 = vsel %vm1122_vm14, %v1120_v22, %v1121_v37  ;;  %v292_v17 = vadd.f32 %v290_v60, %v285_v33 }
 0x6d6   :  { %v723_v0 = vadd.s32 %v722_v40, %v721_v18  ;;  %v1124_v15 = vrot.slane %v1123_v59, 1  ;;  %v884_v22 = vadd.f32 %v882_v52, %v876_v24  ;;  %v887_v21 = vsel %vm2220_vm5, %v1654_v53, 0.0 }
 0x6d7   :  { %v2194_v8 = vsel %vm717_vm12, %v1308_v44, %v2048_v50  ;;  %vm1310_vm2 = vcmp.eq.s32.totalorder %v1666_v61, %v1308_v44  ;;  %vm2234_vm12 = vcmp.eq.s32.totalorder %v1669_v63, %v307_v16  ;;  %v530_v26 = vsel %vm2227_vm10, %v527_v35, %v528_v58 }
 0x6d8   :  { %v724_v3 = vrot.slane %v723_v0, 2  ;;  %v1311_v10 = vsel %vm1310_vm2, %v1148_v31, 0  ;;  %v899_v16 = vstv %s2202_s21  ;;  %v299_v37 = vadd.f32 %v297_v25, %v292_v17 }
 0x6d9   :  { %v1312_v50 = vsel %vm464_vm8, %v1311_v10, 0  ;;  %v889_v43 = vrot.slane %v887_v21, 2  ;;  %vm1125_vm9 = vcmp.lt.s32.totalorder %v1123_v59, %v1124_v15  ;;  %vm2277_vm3 = vcmp.eq.s32.totalorder %v1669_v63, %v899_v16 }
 0x6da   :  { %v725_v14 = vadd.s32 %v724_v3, %v723_v0  ;;  %v1313_v51 = vrot.slane %v1312_v50, 4  ;;  %v2244_v30 = vpop.xlane.xlu1 %457  ;;  %v309_v11 = vsel %vm2234_vm12, %v1635_v39, 0.0  ;;  %v306_v58 = vadd.f32 %v304_v47, %v299_v37  ;;  %v1056_v47 = vpop.xlane.xlu2 %1055 }
 0x6db   :  { %v891_v28 = vadd.f32 %v889_v43, %v884_v22  ;;  %v1091_v52 = vand.u32 65535, %v2089_v27  ;;  %v311_v20 = vrot.slane %v309_v11, 5  ;;  %vm2310_vm2 = vcmp.eq.s32.totalorder %v1669_v63, %v321_v12 }
 0x6dc   :  { %v1314_v29 = vadd.s32 %v1313_v51, %v1312_v50  ;;  %v726_v32 = vrot.slane %v725_v14, 1  ;;  %v1126_v50 = vsel %vm1125_vm9, %v1123_v59, %v1124_v15  ;;  %v901_v51 = vsel %vm2277_vm3, %v1654_v53, 0.0 }
 0x6dd   :  { %v313_v34 = vadd.f32 %v311_v20, %v306_v58  ;;  %v903_v48 = vrot.slane %v901_v51, 4  ;;  %v908_v27 = vsel %vm2292_vm4, %v1654_v53, 0.0  ;;  %v318_v17 = vrot.slane %v316_v56, 6 }
 0x6de   :  { %v1315_v13 = vrot.slane %v1314_v29, 2  ;;  %v727_v4 = vadd.s32 %v726_v32, %v725_v14  ;;  %vm2320_vm14 = vcmp.eq.s32.totalorder %v1669_v63, %v913_v42  ;;  %v323_v25 = vsel %vm2310_vm2, %v1635_v39, 0.0 }
 0x6df   :  { %v920_v22 = vstv %s2285_s25  ;;  %v915_v23 = vsel %vm2320_vm14, %v1654_v53, 0.0  ;;  %v325_v16 = vrot.slane %v323_v25, 7  ;;  %vm328_vm10 = vcmask 40960  }
 0x6e0   :  { %v1316_v18 = vadd.s32 %v1315_v13, %v1314_v29  ;;  %vm730_vm7 = vcmp.eq.s32.totalorder %v1669_v63, %v727_v4  ;;  %v2263_v46 = vsel %vm728_vm6, %v727_v4, %v2156_v2  ;;  %v894_v2 = vsel %vm2239_vm13, %v1654_v53, 0.0 }
 0x6e1   :  { %v731_v40 = vsel %vm730_vm7, %v530_v26, 0  ;;  %v896_v7 = vrot.slane %v894_v2, 3  ;;  %v1093_v4 = vcvt.s32.f32 %v1091_v52  ;;  %v320_v26 = vadd.f32 %v318_v17, %v313_v34 }
 0x6e2   :  { %v732_v44 = vsel %vm97_vm1, %v731_v40, 0  ;;  %v1317_v31 = vrot.slane %v1316_v18, 1  ;;  %v2301_v60 = vpop.xlane.xlu1 %1095  ;;  %v910_v40 = vrot.slane %v908_v27, 5  ;;  %vm921_vm15 = vcmp.eq.s32.totalorder %v1669_v63, %v920_v22 }
 0x6e3   :  { %v734_v0 = vshrl.u32 %v732_v44, 16  ;;  %v733_v35 = vand.u32 65535, %v732_v44  ;;  %v898_v29 = vadd.f32 %v896_v7, %v891_v28  ;;  %v327_v44 = vadd.f32 %v325_v16, %v320_v26 }
 0x6e4   :  { %v1318_v54 = vadd.s32 %v1317_v31, %v1316_v18  ;;  %v495_v18 = vand.u32 65535, %v2078_v19  ;;  %v917_v31 = vrot.slane %v915_v23, 6  ;;  %v922_v19 = vsel %vm921_vm15, %v1654_v53, 0.0 }
 0x6e5   :  { %v736_v3 = vcvt.s32.f32 %v734_v0  ;;  %v735_v10 = vcvt.s32.f32 %v733_v35  ;;  %v905_v36 = vadd.f32 %v903_v48, %v898_v29  ;;  %v329_v0 = vsel %vm328_vm10, %v327_v44, 0.0 }
 0x6e6   :  { %vm1320_vm11 = vcmp.eq.s32.totalorder %v1669_v63, %v1318_v54  ;;  %v2299_v1 = vsel %vm728_vm6, %v1318_v54, %v2194_v8  ;;  %v497_v39 = vcvt.s32.f32 %v495_v18  ;;  %v924_v35 = vrot.slane %v922_v19, 7 }
 0x6e7   :  { %739 = vadd.xlane.f32.xlu2 %v736_v3  ;;  %737 = vadd.xlane.f32.xlu1 %v735_v10  ;;  %v1321_v14 = vsel %vm1320_vm11, %v1126_v50, 0  ;;  %v912_v38 = vadd.f32 %v910_v40, %v905_v36  ;;  %1484 = vlog2.f32 %v2244_v30  ;;  %v197_v27 = vstv %s2360_s13  ;;  %s824_s13 = sadd.s32 %s1402_s14, %s823_s18  ;;  %s1410_s14 = sshll.u32 %s259_s4, 7 }
 0x6e8   :  { %v1322_v9 = vsel %vm97_vm1, %v1321_v14, 0  ;;  %vm1097_vm1 = vcmp.eq.f32.partialorder %v2093_v62, %v2301_v60  ;;  %v2328_v62 = vpop.xlane.xlu0 %499  ;;  %1486 = vlog2.f32 %v1056_v47  ;;  %v806_v18 = vstv %s2402_s17  ;;  %s2427_s26 = sld [smem:[#allocation6 + %s824_s13]] }
 0x6e9   :  { %v1324_v32 = vshrl.u32 %v1322_v9, 16  ;;  %v1323_v59 = vand.u32 65535, %v1322_v9  ;;  %v1098_v21 = vsel %vm1097_vm1, %v1093_v4, inf  ;;  %vm501_vm5 = vcmp.eq.f32.partialorder %v2085_v57, %v2328_v62 }
 0x6ea   :  { %v502_v37 = vsel %vm501_vm5, %v497_v39, inf  ;;  %v919_v43 = vadd.f32 %v917_v31, %v912_v38  ;;  %v207_v4 = vstv %s2364_s6  ;;  %s833_s6 = sand.u32 127, %s2202_s21  ;;  %v227_v40 = vstv %s2379_s15  ;;  %s265_s21 = sadd.s32 %s1389_s30, %s264_s16 }
 0x6eb   :  { %v1326_v13 = vcvt.s32.f32 %v1324_v32  ;;  %v1325_v15 = vcvt.s32.f32 %v1323_v59  ;;  %v208_v24 = vadd.f32 %v207_v4, %v197_v27  ;;  %v816_v39 = vstv %s2417_s0  ;;  %s844_s15 = sadd.s32 %s1404_s7, %s843_s12  ;;  %s2449_s0 = sld [smem:[#allocation6 + %s265_s21]] }
 0x6ec   :  { %v926_v2 = vadd.f32 %v924_v35, %v919_v43  ;;  %v237_v31 = vstv %s2384_s28  ;;  %s2447_s27 = sld [smem:[#allocation6 + %s844_s15]]  ;;  %s863_s28 = sand.u32 127, %s2285_s25  ;;  %vm486_vm6 = vcmask 0   ;;  %vm745_vm7 = vcmp.eq.s32.totalorder %v1669_v63, 1 }
 0x6ed   :  { %1329 = vadd.xlane.f32.xlu0 %v1326_v13  ;;  %v1485_v28 = vpop.eup %1484  ;;  %s1553_s7 = smov [#allocation7]  }
 0x6ee   :  { %v927_v54 = vsel %vm328_vm10, %v926_v2, 0.0  ;;  %v460_v57 = vmul.f32 0.6931472, %v1485_v28  ;;  %v1487_v45 = vpop.eup %1486  ;;  %v247_v2 = vstv %s2386_s5  ;;  %s1415_s5 = sadd.s32 896, %s1414_s24  ;;  %s1356_s12 = sshll.u32 %s1553_s7, 4  ;;  %s1357_s12 = int_to_ptr.vmem [resolvable:$true] %s1356_s12 }
 0x6ef   :  { %1099 = vmin.xlane.f32.xlu1 %v1098_v21  ;;  %1327 = vadd.xlane.f32.xlu2 %v1325_v15  ;;  %v1058_v53 = vmul.f32 0.6931472, %v1487_v45  ;;  %v217_v15 = vstv %s2367_s29  ;;  %v796_v21 = vstv %s2399_s11  ;;  %s834_s29 = sadd.s32 %s1403_s8, %s833_s6  ;;  %s850_s11 = sadd.s32 %s2211_s22, %s848_s19 }
 0x6f0   :  { %v461_v3 = vadd.f32 %v460_v57, %v2061_v5  ;;  %v218_v26 = vadd.f32 %v217_v15, %v208_v24  ;;  %v807_v16 = vadd.f32 %v806_v18, %v796_v21  ;;  %s2438_s17 = sld [smem:[#allocation6 + %s834_s29]]  ;;  %s1405_s18 = sshll.u32 %s850_s11, 7 }
 0x6f1   :  { %v1059_v11 = vadd.f32 %v1058_v53, %v2050_v49  ;;  %s1411_s22 = sadd.s32 896, %s1410_s14  ;;  %s854_s4 = sadd.s32 %s1405_s18, %s853_s1 }
 0x6f2   :  { %v462_v10 = vadd.f32 %v461_v3, %v1842_v6  ;;  %v228_v44 = vadd.f32 %v227_v40, %v218_v26  ;;  %s271_s30 = sadd.s32 %s1411_s22, %s264_s16  ;;  %s2456_s13 = sld [smem:[#allocation6 + %s854_s4]] }
 0x6f3   :  { %v1060_v30 = vadd.f32 %v1059_v11, %v1873_v55  ;;  %s864_s8 = sadd.s32 %s1406_s3, %s863_s28  ;;  %s2459_s6 = sld [smem:[#allocation6 + %s271_s30]] }
 0x6f4   :  { %v463_v12 = vadd.f32 %v462_v10, %v1912_v41  ;;  %v238_v35 = vadd.f32 %v237_v31, %v228_v44  ;;  %v257_v10 = vstv %s2430_s10  ;;  %s2463_s23 = sld [smem:[#allocation6 + %s864_s8]]  ;;  %s870_s25 = sadd.s32 %s1415_s5, %s863_s28 }
 0x6f5   :  { %503 = vmin.xlane.f32.xlu0 %v502_v37  ;;  %v1061_v58 = vadd.f32 %v1060_v30, %v1912_v41  ;;  %v817_v37 = vadd.f32 %v816_v39, %v807_v16  ;;  %v1102_v30 = vcvt.f32.s32 %v2301_v60  ;;  %s2467_s16 = sld [smem:[#allocation6 + %s870_s25]] }
 0x6f6   :  { %v465_v50 = vsel %vm464_vm8, %v463_v12, -inf  ;;  %v836_v3 = vstv %s2438_s17  ;;  %v248_v53 = vadd.f32 %v247_v2, %v238_v35  ;;  %s2552_s19 = sld [smem:[#allocation11_spill]] }
 0x6f7   :  { %330 = vadd.xlane.f32.xlu2 %v329_v0  ;;  %v466_v7 = vrot.slane %v465_v50, 4  ;;  %v1062_v5 = vsel %vm464_vm8, %v1061_v58, -inf  ;;  %v826_v0 = vstv %s2427_s26  ;;  %s2553_s17 = sld [smem:[#allocation12_spill]] }
 0x6f8   :  { %v1063_v51 = vrot.slane %v1062_v5, 4  ;;  %v827_v47 = vadd.f32 %v826_v0, %v817_v37 }
 0x6f9   :  { %v467_v14 = vmax.f32 %v465_v50, %v466_v7  ;;  %v846_v50 = vstv %s2447_s27 }
 0x6fa   :  { %v1064_v33 = vmax.f32 %v1062_v5, %v1063_v51 }
 0x6fb   :  { %v468_v6 = vrot.slane %v467_v14, 2 }
 0x6fc   :  { %v1065_v55 = vrot.slane %v1064_v33, 2 }
 0x6fd   :  { %928 = vadd.xlane.f32.xlu0 %v927_v54  ;;  %v469_v49 = vmax.f32 %v467_v14, %v468_v6  ;;  %v267_v14 = vstv %s2449_s0  ;;  %s1358_s9 = sshll.u32 %s2553_s17, 4  ;;  %s1359_s9 = int_to_ptr.hbm [resolvable:$true] %s1358_s9 }
 0x6fe   :  { %v1066_v9 = vmax.f32 %v1064_v33, %v1065_v55 }
 0x6ff   :  { %v470_v41 = vrot.slane %v469_v49, 1 }
 0x700   :  { %v1067_v20 = vrot.slane %v1066_v9, 1 }
 0x701   :  { %v2355_v52 = vmax.f32 %v469_v49, %v470_v41  ;;  %v1103_v49 = vshll.u32 %v1102_v30, 16 }
 0x702   :  { %v2370_v32 = vmax.f32 %v1066_v9, %v1067_v20  ;;  %v856_v9 = vstv %s2456_s13 }
 0x703   :  { %v472_v29 = vsub.f32 %v463_v12, %v2355_v52  ;;  %v837_v12 = vadd.f32 %v836_v3, %v827_v47 }
 0x704   :  { %v1069_v56 = vsub.f32 %v1061_v58, %v2370_v32  ;;  %v258_v58 = vadd.f32 %v257_v10, %v248_v53 }
 0x705   :  { %v473_v59 = vmul.f32 1.442695, %v472_v29  ;;  %v847_v33 = vadd.f32 %v846_v50, %v837_v12 }
 0x706   :  { %v1070_v42 = vmul.f32 1.442695, %v1069_v56 }
 0x707   :  { %1488 = vpow2.f32 %v473_v59  ;;  %v268_v59 = vadd.f32 %v267_v14, %v258_v58  ;;  %v857_v27 = vadd.f32 %v856_v9, %v847_v33 }
 0x708   :  { %1490 = vpow2.f32 %v1070_v42 }
 0x70d   :  { %v1489_v34 = vpop.eup %1488 }
 0x70e   :  { %v475_v8 = vsel %vm464_vm8, %v1489_v34, 0.0  ;;  %v1491_v48 = vpop.eup %1490  ;;  %v273_v34 = vstv %s2459_s6 }
 0x70f   :  { %v476_v13 = vrot.slane %v475_v8, 4  ;;  %v1072_v17 = vsel %vm464_vm8, %v1491_v48, 0.0 }
 0x710   :  { %v1073_v25 = vrot.slane %v1072_v17, 4 }
 0x711   :  { %v477_v36 = vadd.f32 %v476_v13, %v475_v8  ;;  %v506_v8 = vcvt.f32.s32 %v2328_v62 }
 0x712   :  { %v1074_v23 = vadd.f32 %v1073_v25, %v1072_v17  ;;  %v866_v17 = vstv %s2463_s23 }
 0x713   :  { %v478_v22 = vrot.slane %v477_v36, 2  ;;  %v507_v21 = vshll.u32 %v506_v8, 16  ;;  %v867_v40 = vadd.f32 %v866_v17, %v857_v27 }
 0x714   :  { %v1075_v19 = vrot.slane %v1074_v23, 2 }
 0x715   :  { %v479_v38 = vadd.f32 %v478_v22, %v477_v36  ;;  %v274_v36 = vadd.f32 %v273_v34, %v268_v59 }
 0x716   :  { %v1076_v54 = vadd.f32 %v1075_v19, %v1074_v23 }
 0x717   :  { %v480_v43 = vrot.slane %v479_v38, 1 }
 0x718   :  { %v1077_v11 = vrot.slane %v1076_v54, 1 }
 0x719   :  { %v481_v45 = vadd.f32 %v480_v43, %v479_v38  ;;  %v872_v38 = vstv %s2467_s16 }
 0x71a   :  { %v1078_v51 = vadd.f32 %v1077_v11, %v1076_v54  ;;  %v873_v0 = vadd.f32 %v872_v38, %v867_v40 }
 0x71b   :  { %1492 = vlog2.f32 %v481_v45 }
 0x71c   :  { %1494 = vlog2.f32 %v1078_v51 }
 0x721   :  { %v1493_v56 = vpop.eup %1492 }
 0x722   :  { %v483_v24 = vmul.f32 0.6931472, %v1493_v56  ;;  %v1495_v23 = vpop.eup %1494 }
 0x723   :  { %v1080_v35 = vmul.f32 0.6931472, %v1495_v23 }
 0x724   :  { %v484_v44 = vadd.f32 %v483_v24, %v2355_v52 }
 0x75a   :  { %v740_v28 = vpop.xlane.xlu2 %739  ;;  %v738_v57 = vpop.xlane.xlu1 %737 }
 0x75b   :  { %v742_v7 = vcvt.f32.s32 %v740_v28  ;;  %v741_v4 = vcvt.f32.s32 %v738_v57 }
 0x75d   :  { %v743_v42 = vshll.u32 %v742_v7, 16 }
 0x75f   :  { %v744_v15 = vadd.s32 %v743_v42, %v741_v4 }
 0x760   :  { %v1330_v5 = vpop.xlane.xlu0 %1329 }
 0x761   :  { %v1332_v6 = vcvt.f32.s32 %v1330_v5  ;;  %vm747_vm13 = vcmp.eq.s32.totalorder %v1666_v61, %v744_v15  ;;  %v746_v7 = vsel %vm745_vm7, %v744_v15, %v2263_v46 }
 0x762   :  { %v1100_v55 = vpop.xlane.xlu1 %1099  ;;  %v1328_v41 = vpop.xlane.xlu2 %1327 }
 0x763   :  { %v1333_v60 = vshll.u32 %v1332_v6, 16  ;;  %v1101_v20 = vcvt.f32.s32 %v1100_v55  ;;  %v1331_v29 = vcvt.f32.s32 %v1328_v41 }
 0x765   :  { %v1104_v48 = vadd.s32 %v1103_v49, %v1101_v20  ;;  %v1334_v13 = vadd.s32 %v1333_v60, %v1331_v29 }
 0x767   :  { %vm1336_vm12 = vcmp.eq.s32.totalorder %v1666_v61, %v1334_v13  ;;  %v1081_v61 = vadd.f32 %v1080_v35, %v2370_v32  ;;  %v1335_v30 = vsel %vm745_vm7, %v1334_v13, %v2299_v1 }
 0x768   :  { %v1337_v25 = vsel %vm1336_vm12, %v1104_v48, 0  ;;  %v504_v22 = vpop.xlane.xlu0 %503 }
 0x769   :  { %v1338_v18 = vsel %vm464_vm8, %v1337_v25, 0  ;;  %v505_v26 = vcvt.f32.s32 %v504_v22 }
 0x76a   :  { %v1339_v62 = vrot.slane %v1338_v18, 4  ;;  %v331_v16 = vpop.xlane.xlu2 %330 }
 0x76b   :  { %v508_v39 = vadd.s32 %v507_v21, %v505_v26  ;;  %v332_v31 = vadd.f32 %v331_v16, %v274_v36 }
 0x76c   :  { %v1340_v19 = vadd.s32 %v1339_v62, %v1338_v18 }
 0x76d   :  { %v748_v37 = vsel %vm747_vm13, %v508_v39, 0  ;;  %v485_v43 = vsub.f32 %v484_v44, %v332_v31 }
 0x76e   :  { %v1341_v2 = vrot.slane %v1340_v19, 2  ;;  %v749_v54 = vsel %vm464_vm8, %v748_v37, 0  ;;  %vm758_vm8 = vcmask 57344  }
 0x76f   :  { %v750_v47 = vrot.slane %v749_v54, 4  ;;  %487 = vst.msk [vmem:[%s2552_s19] sm:$0x1] %vm486_vm6, %v485_v43 }
 0x770   :  { %v1342_v28 = vadd.s32 %v1341_v2, %v1340_v19  ;;  %v929_v52 = vpop.xlane.xlu0 %928 }
 0x771   :  { %v751_v57 = vadd.s32 %v750_v47, %v749_v54  ;;  %v930_v45 = vadd.f32 %v929_v52, %v873_v0 }
 0x772   :  { %v1343_v3 = vrot.slane %v1342_v28, 1 }
 0x773   :  { %v752_v53 = vrot.slane %v751_v57, 2  ;;  %v1082_v10 = vsub.f32 %v1081_v61, %v930_v45 }
 0x774   :  { %v1344_v11 = vadd.s32 %v1343_v3, %v1342_v28 }
 0x775   :  { %v753_v12 = vadd.s32 %v752_v53, %v751_v57  ;;  %1083 = vst.msk [vmem:[%s2552_s19 + $0x1] sm:$0x1] %vm486_vm6, %v1082_v10 }
 0x776   :  { %v1345_v32 = vsel %vm756_vm0, %v1344_v11, %v1335_v30 }
 0x777   :  { %v754_v50 = vrot.slane %v753_v12, 1  ;;  %1346 = vst.msk [vmem:[#allocation7 + $0x1] sm:$0x1] %vm758_vm8, %v1345_v32 }
 0x779   :  { %v755_v58 = vadd.s32 %v754_v50, %v753_v12 }
 0x77b   :  { %v757_v1 = vsel %vm756_vm0, %v755_v58, %v746_v7 }
 0x77c   :  { %759 = vst.msk [vmem:[#allocation7] sm:$0x1] %vm758_vm8, %v757_v1 }
 0x77d   :  { %1361 = dma.vmem_to_hbm [thread:$0]  %s1357_s12, 32, %s1359_s9, [#allocation3]  }
 0x77e   :  { %1549 = dma.done.wait [#allocation3], 32  }
 0x77f   :  { %1550 = vsyncadd [#allocation3], 4294967264 }
 0x780   :  { %1370 = vsyncpa [#allocation3], 1 }
 0x781   :  { %1371 = vsyncpa [#allocation4], 1 }
 0x782   :  { %1372 = vsyncpa [#allocation5], 1 }

</bundles_post_ra>
